<compile_context>
chip_gen: v7x
topology: tpu7x:2x2x1
jax: 0.10.0
libtpu: 0.0.40
codegen_flags: <defaults>
</compile_context>

<pallas_src>
import functools
import math

import jax
import jax.numpy as jnp
import numpy as np
from jax import lax
from jax.experimental import pallas as pl
from jax.experimental.pallas import tpu as pltpu

# ----------------------------- configuration --------------------------------
BATCH = 2
IN_CH = 3
IN_H = IN_W = 16
TARGET = (32, 32)            # small analogue of (224, 224)
PATCH = 8
HIDDEN = 32
NUM_HEADS = 4
HEAD_DIM = HIDDEN // NUM_HEADS
MLP_DIM = 64
NUM_LAYERS = 2
LN_EPS = 1e-6                # torchvision ViT uses LayerNorm(eps=1e-6)
GRID_H = TARGET[0] // PATCH
GRID_W = TARGET[1] // PATCH
NUM_PATCHES = GRID_H * GRID_W          # 16
SEQ = NUM_PATCHES + 1                  # 17 (+1 class token)
SEQ_PAD = 24                           # SEQ rounded to a sublane multiple (8)
WIN = 6                                # input rows/cols feeding one 8-px patch
PATCH_FEATS = IN_CH * WIN * WIN        # 108
KEY_ROWS = NUM_HEADS * SEQ_PAD         # 96
# pos_embedding is added TWICE by the reference: once explicitly in
# InputResizerVIT.forward and once again inside torchvision's Encoder.forward.
POS_FACTOR = 2.0


# ------------------------------ small helpers -------------------------------
def _rep_spec(shape):
    """BlockSpec for a weight replicated across every grid step."""
    zeros = (0,) * len(shape)
    return pl.BlockSpec(shape, lambda *_: zeros)


def _layernorm(v, g, b):
    mu = jnp.mean(v, axis=-1, keepdims=True)
    var = jnp.mean((v - mu) ** 2, axis=-1, keepdims=True)
    return (v - mu) * lax.rsqrt(var + LN_EPS) * g + b


def _mm_nt(a, b):
    """a[m,k] @ b[n,k]^T without materializing a transpose."""
    return lax.dot_general(a, b, (((1,), (1,)), ((), ())),
                           preferred_element_type=jnp.float32)


def _interior_interp_weights():
    """Translation-invariant bilinear taps of one 8-row output patch onto the
    6-row input window anchored at (4*g - 1), matching
    F.interpolate(mode='bilinear', align_corners=False) for the exact 2x
    upsample.  Border behaviour is reproduced exactly by the clamped window
    gather (bilinear taps that torch clamps onto the edge pixel land on the
    same pixel through the clamped gather)."""
    assert TARGET[0] == 2 * IN_H and TARGET[1] == 2 * IN_W and PATCH == 8
    w = np.zeros((PATCH, WIN), np.float64)
    for i in range(PATCH):
        rel = (2 * i + 3) / 4.0            # source offset w.r.t. window anchor
        lo = int(np.floor(rel))
        lam = rel - lo
        w[i, lo] += 1.0 - lam
        w[i, lo + 1] += lam
    return w


def _window_indices(n_in, n_grid):
    m = np.arange(WIN)
    g = np.arange(n_grid)
    return np.clip(4 * g[:, None] - 1 + m[None, :], 0, n_in - 1)     # [grid, 6]


def _images_per_grid_step(batch):
    """One image per ("parallel") grid step only on parts with >1 TensorCore;
    otherwise merge the whole batch into a single grid step (on v5e/v6e the
    grid is a purely serial loop, so merging halves fixed per-step overhead)."""
    try:
        kind = jax.devices()[0].device_kind.lower()
    except Exception:
        kind = ""
    multi_core = any(tag in kind for tag in ("v7", "7x", "v4", "v5p"))
    return 1 if (multi_core and batch > 1) else batch


# ------------------------------ model / params -------------------------------
def init_params(key):
    keys = jax.random.split(key, 3 + NUM_LAYERS)

    def nrm(k, shape, scale=0.02):
        return scale * jax.random.normal(k, shape, jnp.float32)

    params = {
        # conv_proj weight reshaped to [C*p*p, hidden] ((c,kh,kw)-flat) + bias
        "w_patch": nrm(keys[0], (IN_CH * PATCH * PATCH, HIDDEN)),
        "b_patch": jnp.zeros((HIDDEN,), jnp.float32),
        "cls": nrm(keys[1], (1, 1, HIDDEN)),             # class_token
        "pos": nrm(keys[2], (1, SEQ, HIDDEN)),           # encoder.pos_embedding
        "ln_g": jnp.ones((HIDDEN,), jnp.float32),        # encoder final LN
        "ln_b": jnp.zeros((HIDDEN,), jnp.float32),
        "layers": [],
    }
    for l in range(NUM_LAYERS):
        lk = jax.random.split(keys[3 + l], 4)
        params["layers"].append((
            jnp.ones((HIDDEN,), jnp.float32), jnp.zeros((HIDDEN,), jnp.float32),      # ln_1
            nrm(lk[0], (HIDDEN, 3 * HIDDEN)), jnp.zeros((3 * HIDDEN,), jnp.float32),  # in_proj
            nrm(lk[1], (HIDDEN, HIDDEN)), jnp.zeros((HIDDEN,), jnp.float32),          # out_proj
            jnp.ones((HIDDEN,), jnp.float32), jnp.zeros((HIDDEN,), jnp.float32),      # ln_2
            nrm(lk[2], (HIDDEN, MLP_DIM)), jnp.zeros((MLP_DIM,), jnp.float32),        # mlp fc1
            nrm(lk[3], (MLP_DIM, HIDDEN)), jnp.zeros((HIDDEN,), jnp.float32),         # mlp fc2
        ))
    return params


_WEIGHTS = ("g_win", "zbias", "hm_big", "eseg", "hm8",
            "l1g", "l1b", "wqkv", "bqkv", "wo", "bo",
            "l2g", "l2b", "wm1", "bm1", "wm2", "bm2", "ln_g", "ln_b")


def prepare_fused_params(params):
    """One-time host-side preprocessing (outside jit): fold bilinear resize +
    conv_proj into a per-patch window matmul, fold scalar constants (attention
    scale, double pos-add, conv bias, class token) into the weights, stack the
    per-layer weights and build the head-fusion masks."""
    # resize+conv fold -> [C*6*6, HIDDEN] window matmul
    wint = _interior_interp_weights()                                  # [8, 6]
    wp = np.asarray(params["w_patch"], np.float64).reshape(
        IN_CH, PATCH, PATCH, HIDDEN)
    g_win = np.einsum("cijd,im,jn->cmnd", wp, wint, wint)
    g_win = g_win.reshape(PATCH_FEATS, HIDDEN).astype(np.float32)

    # token bias: conv bias + 2*pos (+ class token); internal row order is
    # patches 0..15, class token at row 16, zero padding rows 17..23.
    pos = np.asarray(params["pos"], np.float64).reshape(SEQ, HIDDEN)
    zbias = np.zeros((SEQ_PAD, HIDDEN), np.float64)
    zbias[:NUM_PATCHES] = (np.asarray(params["b_patch"], np.float64)[None, :]
                           + POS_FACTOR * pos[1:])
    zbias[NUM_PATCHES] = (np.asarray(params["cls"], np.float64).reshape(HIDDEN)
                          + POS_FACTOR * pos[0])
    zbias = zbias.astype(np.float32)

    # head-fusion constants (block-diagonal-over-heads masks / selectors)
    head_of_row = np.repeat(np.arange(NUM_HEADS), SEQ_PAD)             # [96]
    valid_row = np.tile(np.arange(SEQ_PAD) < SEQ, NUM_HEADS)           # [96]
    chan_head = np.arange(HIDDEN) // HEAD_DIM                          # [32]
    hm_big = ((head_of_row[:, None] == chan_head[None, :])
              & valid_row[:, None]).astype(np.float32)                 # [96,32]
    eseg = ((head_of_row[:, None] == np.arange(NUM_HEADS)[None, :])
            & valid_row[:, None]).astype(np.float32)                   # [96, 4]
    hm8 = (np.arange(NUM_HEADS)[:, None]
           == chan_head[None, :]).astype(np.float32)                   # [4, 32]

    scale = 1.0 / math.sqrt(HEAD_DIM)
    layers = params["layers"]

    def fold_qkv_w(w):
        w = np.asarray(w, np.float32).copy()
        w[:, :HIDDEN] *= scale                # fold attention scale into Wq
        return w

    def fold_qkv_b(b):
        b = np.asarray(b, np.float32).copy()
        b[:HIDDEN] *= scale
        return b.reshape(1, 3 * HIDDEN)

    def stack_vec(idx, width):
        return jnp.stack([jnp.asarray(layers[l][idx]).reshape(1, width)
                          for l in range(NUM_LAYERS)])

    def stack_mat(idx):
        return jnp.stack([jnp.asarray(layers[l][idx])
                          for l in range(NUM_LAYERS)])

    return {
        "g_win": jnp.asarray(g_win),
        "zbias": jnp.asarray(zbias),
        "hm_big": jnp.asarray(hm_big),
        "eseg": jnp.asarray(eseg),
        "hm8": jnp.asarray(hm8),
        "l1g": stack_vec(0, HIDDEN), "l1b": stack_vec(1, HIDDEN),
        "wqkv": jnp.stack([jnp.asarray(fold_qkv_w(layers[l][2]))
                           for l in range(NUM_LAYERS)]),
        "bqkv": jnp.stack([jnp.asarray(fold_qkv_b(layers[l][3]))
                           for l in range(NUM_LAYERS)]),
        "wo": stack_mat(4), "bo": stack_vec(5, HIDDEN),
        "l2g": stack_vec(6, HIDDEN), "l2b": stack_vec(7, HIDDEN),
        "wm1": stack_mat(8), "bm1": stack_vec(9, MLP_DIM),
        "wm2": stack_mat(10), "bm2": stack_vec(11, HIDDEN),
        "ln_g": jnp.asarray(params["ln_g"]).reshape(1, HIDDEN),
        "ln_b": jnp.asarray(params["ln_b"]).reshape(1, HIDDEN),
    }


# --------------------------------- kernel -----------------------------------
def _fused_vit_kernel(xw_ref, gwin_ref, zbias_ref, hmb_ref, eseg_ref, hm8_ref,
                      l1g_ref, l1b_ref, wqkv_ref, bqkv_ref, wo_ref, bo_ref,
                      l2g_ref, l2b_ref, wm1_ref, bm1_ref, wm2_ref, bm2_ref,
                      lng_ref, lnb_ref, o_ref, *, nb, num_heads, num_layers):
    # ---- patch embed: resize + conv_proj folded into one [108, 32] matmul ----
    # xw rows are (image, patch), so tokens come out already token-major.
    tokens = jnp.dot(xw_ref[...], gwin_ref[...],
                     preferred_element_type=jnp.float32)        # [nb*16, 32]

    zbias = zbias_ref[...]                                      # [24, 32]
    pad = jnp.zeros((SEQ_PAD - NUM_PATCHES, HIDDEN), jnp.float32)
    blocks = []
    for b in range(nb):
        tb = tokens[b * NUM_PATCHES:(b + 1) * NUM_PATCHES, :]
        # per-image rows: patches 0..15, class token at 16, zero pad 17..23;
        # conv bias + 2*pos (+ cls) are pre-folded into zbias.
        blocks.append(jnp.concatenate([tb, pad], axis=0) + zbias)
    z = jnp.concatenate(blocks, axis=0)                         # [nb*24, 32]

    hm_big = hmb_ref[...]      # [96, 32] head/validity mask for K,V rows
    eseg = eseg_ref[...]       # [96, 4]  per-head segment-sum selector
    hm8 = hm8_ref[...]         # [4, 32]  head -> channel broadcast

    for l in range(num_layers):
        # ---- self-attention branch (pre-LN, packed QKV, fused heads) --------
        yln = _layernorm(z, l1g_ref[l], l1b_ref[l])
        qkv = jnp.dot(yln, wqkv_ref[l],
                      preferred_element_type=jnp.float32) + bqkv_ref[l]
        q = qkv[:, :HIDDEN]                 # 1/sqrt(head_dim) folded into Wq/bq
        k = qkv[:, HIDDEN:2 * HIDDEN]
        v = qkv[:, 2 * HIDDEN:]

        att_blocks = []
        for b in range(nb):                 # static unroll over images
            r0 = b * SEQ_PAD
            qb = q[r0:r0 + SEQ_PAD, :]
            kb = k[r0:r0 + SEQ_PAD, :]
            vb = v[r0:r0 + SEQ_PAD, :]
            # Block-diagonal K/V over heads: row (h, t) keeps only head-h
            # channels and only valid tokens t < SEQ, so all 4 heads' QK^T
            # and AV collapse into one MXU matmul each.
            kbig = jnp.concatenate([kb] * num_heads, axis=0) * hm_big  # [96,32]
            vbig = jnp.concatenate([vb] * num_heads, axis=0) * hm_big  # [96,32]
            s = _mm_nt(qb, kbig)                                       # [24,96]
            # Row-global max shift: softmax is shift-invariant per head, so
            # one per-row constant is exact (per-head max would need a
            # segmented reduce and is unnecessary at these score magnitudes).
            e = jnp.exp(s - jnp.max(s, axis=-1, keepdims=True))
            num = jnp.dot(e, vbig, preferred_element_type=jnp.float32)  # [24,32]
            den = jnp.dot(e, eseg, preferred_element_type=jnp.float32)  # [24, 4]
            dinv = pl.reciprocal(den, approx=True)        # EUP slot, VPU free
            att_blocks.append(
                num * jnp.dot(dinv, hm8, preferred_element_type=jnp.float32))
        attn = jnp.concatenate(att_blocks, axis=0)                     # [NS,32]
        z = z + jnp.dot(attn, wo_ref[l],
                        preferred_element_type=jnp.float32) + bo_ref[l]

        # ---- MLP branch (pre-LN) ---------------------------------------------
        y2 = _layernorm(z, l2g_ref[l], l2b_ref[l])
        h1 = jnp.dot(y2, wm1_ref[l],
                     preferred_element_type=jnp.float32) + bm1_ref[l]
        # TODO(synk): torch nn.GELU() is exact erf-GELU; tanh approximation is
        # used for robust Mosaic lowering (max deviation ~1e-3).
        h1 = jax.nn.gelu(h1, approximate=True)
        z = z + jnp.dot(h1, wm2_ref[l],
                        preferred_element_type=jnp.float32) + bm2_ref[l]

    # ---- final LayerNorm + natural token-major store (32-lane, full tiles) ---
    zf = _layernorm(z, lng_ref[...], lnb_ref[...])
    for b in range(nb):
        o_ref[b] = zf[b * SEQ_PAD:(b + 1) * SEQ_PAD, :]


# ------------------------------ pallas wrapper --------------------------------
def _patchify(x):
    """XLA-side clamped window gather: [B,C,16,16] -> [B*NP, C*6*6] rows that,
    multiplied by the folded window matrix, reproduce bilinear-resize +
    conv_proj exactly (tokens land on sublanes, no in-kernel scatter)."""
    row_idx = _window_indices(IN_H, GRID_H)            # [4, 6] static
    col_idx = _window_indices(IN_W, GRID_W)            # [4, 6] static
    xr = x[:, :, row_idx, :]                           # [B, C, 4, 6, 16]
    xrc = xr[..., col_idx]                             # [B, C, 4, 6, 4, 6]
    xw = jnp.transpose(xrc, (0, 2, 4, 1, 3, 5))        # [B, gh, gw, C, mr, mc]
    return xw.reshape(x.shape[0] * NUM_PATCHES, PATCH_FEATS)


def _pallas_vit(xw, fp, *, nb):
    batch = xw.shape[0] // NUM_PATCHES
    weights = [fp[k] for k in _WEIGHTS]
    kernel = functools.partial(_fused_vit_kernel, nb=nb,
                               num_heads=NUM_HEADS, num_layers=NUM_LAYERS)
    return pl.pallas_call(
        kernel,
        grid=(batch // nb,),
        in_specs=[pl.BlockSpec((nb * NUM_PATCHES, PATCH_FEATS),
                               lambda g: (g, 0))]
                 + [_rep_spec(w.shape) for w in weights],
        out_specs=pl.BlockSpec((nb, SEQ_PAD, HIDDEN), lambda g: (g, 0, 0)),
        out_shape=jax.ShapeDtypeStruct((batch, SEQ_PAD, HIDDEN), jnp.float32),
        compiler_params=pltpu.CompilerParams(
            dimension_semantics=("parallel",)),
    )(xw, *weights)


def _forward(x, fp, *, nb):
    xw = _patchify(x)
    enc = _pallas_vit(xw, fp, nb=nb)                    # [B, SEQ_PAD, HIDDEN]
    # Reorder internal rows (patches 0..15, cls at 16) back to the reference
    # order (cls first), drop padding rows, and apply the module's final
    # transpose -- tiny XLA ops, fused after the kernel.
    cls = enc[:, NUM_PATCHES:NUM_PATCHES + 1, :]
    patches = enc[:, :NUM_PATCHES, :]
    seq = jnp.concatenate([cls, patches], axis=1)       # [B, SEQ, HIDDEN]
    return jnp.transpose(seq, (0, 2, 1))                # [B, HIDDEN, SEQ]


# ----------------------------------- main ------------------------------------
if __name__ == "__main__":
    key = jax.random.PRNGKey(0)
    pkey, xkey = jax.random.split(key)
    params = init_params(pkey)
    fused_params = prepare_fused_params(params)     # one-time host-side folding
    nb = _images_per_grid_step(BATCH)               # merged batch on 1-TC parts
    forward = jax.jit(functools.partial(_forward, nb=nb))

    x = jax.random.normal(xkey, (BATCH, IN_CH, IN_H, IN_W), jnp.float32)  # NCHW
    out = jax.block_until_ready(forward(x, fused_params))
    assert out.shape == (BATCH, HIDDEN, SEQ), out.shape
    assert bool(jnp.all(jnp.isfinite(out)))
    print("KERNEL_OK")
</pallas_src>

<mosaic_0001>
module attributes {stable_mosaic.version = 11 : i64} {
  func.func @_fused_vit_kernel(%arg0: i32, %arg1: memref<32x108xf32, #tpu.memory_space<vmem>>, %arg2: memref<108x32xf32, #tpu.memory_space<vmem>>, %arg3: memref<24x32xf32, #tpu.memory_space<vmem>>, %arg4: memref<96x32xf32, #tpu.memory_space<vmem>>, %arg5: memref<96x4xf32, #tpu.memory_space<vmem>>, %arg6: memref<4x32xf32, #tpu.memory_space<vmem>>, %arg7: memref<2x1x32xf32, #tpu.memory_space<vmem>>, %arg8: memref<2x1x32xf32, #tpu.memory_space<vmem>>, %arg9: memref<2x32x96xf32, #tpu.memory_space<vmem>>, %arg10: memref<2x1x96xf32, #tpu.memory_space<vmem>>, %arg11: memref<2x32x32xf32, #tpu.memory_space<vmem>>, %arg12: memref<2x1x32xf32, #tpu.memory_space<vmem>>, %arg13: memref<2x1x32xf32, #tpu.memory_space<vmem>>, %arg14: memref<2x1x32xf32, #tpu.memory_space<vmem>>, %arg15: memref<2x32x64xf32, #tpu.memory_space<vmem>>, %arg16: memref<2x1x64xf32, #tpu.memory_space<vmem>>, %arg17: memref<2x64x32xf32, #tpu.memory_space<vmem>>, %arg18: memref<2x1x32xf32, #tpu.memory_space<vmem>>, %arg19: memref<1x32xf32, #tpu.memory_space<vmem>>, %arg20: memref<1x32xf32, #tpu.memory_space<vmem>>, %arg21: memref<2x24x32xf32, #tpu.memory_space<vmem>>) attributes {dimension_semantics = [#tpu.dimension_semantics<parallel>], iteration_bounds = array<i64: 1>, scalar_prefetch = 0 : i64, scratch_operands = 0 : i64, tpu.core_type = #tpu.core_type<tc>, window_params = [{transform_indices = @transform_0, window_bounds = array<i64: 32, 108>}, {pipeline_mode = #tpu.pipeline_mode<synchronous>, transform_indices = @transform_1, window_bounds = array<i64: 108, 32>}, {pipeline_mode = #tpu.pipeline_mode<synchronous>, transform_indices = @transform_2, window_bounds = array<i64: 24, 32>}, {pipeline_mode = #tpu.pipeline_mode<synchronous>, transform_indices = @transform_3, window_bounds = array<i64: 96, 32>}, {pipeline_mode = #tpu.pipeline_mode<synchronous>, transform_indices = @transform_4, window_bounds = array<i64: 96, 4>}, {pipeline_mode = #tpu.pipeline_mode<synchronous>, transform_indices = @transform_5, window_bounds = array<i64: 4, 32>}, {pipeline_mode = #tpu.pipeline_mode<synchronous>, transform_indices = @transform_6, window_bounds = array<i64: 2, 1, 32>}, {pipeline_mode = #tpu.pipeline_mode<synchronous>, transform_indices = @transform_7, window_bounds = array<i64: 2, 1, 32>}, {pipeline_mode = #tpu.pipeline_mode<synchronous>, transform_indices = @transform_8, window_bounds = array<i64: 2, 32, 96>}, {pipeline_mode = #tpu.pipeline_mode<synchronous>, transform_indices = @transform_9, window_bounds = array<i64: 2, 1, 96>}, {pipeline_mode = #tpu.pipeline_mode<synchronous>, transform_indices = @transform_10, window_bounds = array<i64: 2, 32, 32>}, {pipeline_mode = #tpu.pipeline_mode<synchronous>, transform_indices = @transform_11, window_bounds = array<i64: 2, 1, 32>}, {pipeline_mode = #tpu.pipeline_mode<synchronous>, transform_indices = @transform_12, window_bounds = array<i64: 2, 1, 32>}, {pipeline_mode = #tpu.pipeline_mode<synchronous>, transform_indices = @transform_13, window_bounds = array<i64: 2, 1, 32>}, {pipeline_mode = #tpu.pipeline_mode<synchronous>, transform_indices = @transform_14, window_bounds = array<i64: 2, 32, 64>}, {pipeline_mode = #tpu.pipeline_mode<synchronous>, transform_indices = @transform_15, window_bounds = array<i64: 2, 1, 64>}, {pipeline_mode = #tpu.pipeline_mode<synchronous>, transform_indices = @transform_16, window_bounds = array<i64: 2, 64, 32>}, {pipeline_mode = #tpu.pipeline_mode<synchronous>, transform_indices = @transform_17, window_bounds = array<i64: 2, 1, 32>}, {pipeline_mode = #tpu.pipeline_mode<synchronous>, transform_indices = @transform_18, window_bounds = array<i64: 1, 32>}, {pipeline_mode = #tpu.pipeline_mode<synchronous>, transform_indices = @transform_19, window_bounds = array<i64: 1, 32>}, {transform_indices = @transform_20, window_bounds = array<i64: 2, 24, 32>}]} {
    %c0 = arith.constant 0 : index
    %c0_0 = arith.constant 0 : index
    %0 = vector.load %arg1[%c0, %c0_0] : memref<32x108xf32, #tpu.memory_space<vmem>>, vector<32x108xf32>
    %c0_1 = arith.constant 0 : index
    %c0_2 = arith.constant 0 : index
    %1 = vector.load %arg2[%c0_1, %c0_2] : memref<108x32xf32, #tpu.memory_space<vmem>>, vector<108x32xf32>
    %cst = arith.constant dense<0.000000e+00> : vector<32x32xf32>
    %2 = tpu.matmul %0, %1, %cst {dimension_numbers = #tpu.dot_dimension_numbers<[1], [0], [0], [1], [0, 0, 1, 1], [], []>} : vector<32x108xf32>, vector<108x32xf32>, vector<32x32xf32> -> vector<32x32xf32>
    %c0_3 = arith.constant 0 : index
    %c0_4 = arith.constant 0 : index
    %3 = vector.load %arg3[%c0_3, %c0_4] : memref<24x32xf32, #tpu.memory_space<vmem>>, vector<24x32xf32>
    %cst_5 = arith.constant 0.000000e+00 : f32
    %4 = vector.broadcast %cst_5 : f32 to vector<8x32xf32>
    %5 = vector.extract_strided_slice %2 {offsets = [0, 0], sizes = [16, 32], strides = [1, 1]} : vector<32x32xf32> to vector<16x32xf32>
    %6 = tpu.concatenate %5, %4 in 0 : vector<16x32xf32>, vector<8x32xf32> -> vector<24x32xf32>
    %7 = arith.addf %6, %3 : vector<24x32xf32>
    %8 = vector.extract_strided_slice %2 {offsets = [16, 0], sizes = [16, 32], strides = [1, 1]} : vector<32x32xf32> to vector<16x32xf32>
    %9 = tpu.concatenate %8, %4 in 0 : vector<16x32xf32>, vector<8x32xf32> -> vector<24x32xf32>
    %10 = arith.addf %9, %3 : vector<24x32xf32>
    %11 = tpu.concatenate %7, %10 in 0 : vector<24x32xf32>, vector<24x32xf32> -> vector<48x32xf32>
    %c0_6 = arith.constant 0 : index
    %c0_7 = arith.constant 0 : index
    %12 = vector.load %arg4[%c0_6, %c0_7] : memref<96x32xf32, #tpu.memory_space<vmem>>, vector<96x32xf32>
    %c0_8 = arith.constant 0 : index
    %c0_9 = arith.constant 0 : index
    %13 = vector.load %arg5[%c0_8, %c0_9] : memref<96x4xf32, #tpu.memory_space<vmem>>, vector<96x4xf32>
    %c0_10 = arith.constant 0 : index
    %c0_11 = arith.constant 0 : index
    %14 = vector.load %arg6[%c0_10, %c0_11] : memref<4x32xf32, #tpu.memory_space<vmem>>, vector<4x32xf32>
    %c0_12 = arith.constant 0 : index
    %c0_13 = arith.constant 0 : index
    %c0_14 = arith.constant 0 : index
    %15 = vector.load %arg7[%c0_12, %c0_13, %c0_14] : memref<2x1x32xf32, #tpu.memory_space<vmem>>, vector<1x1x32xf32>
    %16 = vector.shape_cast %15 : vector<1x1x32xf32> to vector<1x32xf32>
    %c0_15 = arith.constant 0 : index
    %c0_16 = arith.constant 0 : index
    %c0_17 = arith.constant 0 : index
    %17 = vector.load %arg8[%c0_15, %c0_16, %c0_17] : memref<2x1x32xf32, #tpu.memory_space<vmem>>, vector<1x1x32xf32>
    %18 = vector.shape_cast %17 : vector<1x1x32xf32> to vector<1x32xf32>
    %cst_18 = arith.constant dense<0.000000e+00> : vector<48xf32>
    %19 = vector.multi_reduction <add>, %11, %cst_18 [1] : vector<48x32xf32> to vector<48xf32>
    %20 = vector.shape_cast %19 : vector<48xf32> to vector<48x1xf32>
    %cst_19 = arith.constant 3.200000e+01 : f32
    %21 = vector.broadcast %cst_19 : f32 to vector<48x1xf32>
    %22 = arith.divf %20, %21 : vector<48x1xf32>
    %23 = vector.broadcast %22 : vector<48x1xf32> to vector<48x32xf32>
    %24 = arith.subf %11, %23 : vector<48x32xf32>
    %25 = arith.mulf %24, %24 : vector<48x32xf32>
    %cst_20 = arith.constant dense<0.000000e+00> : vector<48xf32>
    %26 = vector.multi_reduction <add>, %25, %cst_20 [1] : vector<48x32xf32> to vector<48xf32>
    %27 = vector.shape_cast %26 : vector<48xf32> to vector<48x1xf32>
    %cst_21 = arith.constant 3.200000e+01 : f32
    %28 = vector.broadcast %cst_21 : f32 to vector<48x1xf32>
    %29 = arith.divf %27, %28 : vector<48x1xf32>
    %30 = vector.broadcast %22 : vector<48x1xf32> to vector<48x32xf32>
    %31 = arith.subf %11, %30 : vector<48x32xf32>
    %cst_22 = arith.constant 9.99999997E-7 : f32
    %32 = vector.broadcast %cst_22 : f32 to vector<48x1xf32>
    %33 = arith.addf %29, %32 : vector<48x1xf32>
    %34 = math.rsqrt %33 : vector<48x1xf32>
    %35 = vector.broadcast %34 : vector<48x1xf32> to vector<48x32xf32>
    %36 = arith.mulf %31, %35 : vector<48x32xf32>
    %37 = vector.broadcast %16 : vector<1x32xf32> to vector<48x32xf32>
    %38 = arith.mulf %36, %37 : vector<48x32xf32>
    %39 = vector.broadcast %18 : vector<1x32xf32> to vector<48x32xf32>
    %40 = arith.addf %38, %39 : vector<48x32xf32>
    %c0_23 = arith.constant 0 : index
    %c0_24 = arith.constant 0 : index
    %c0_25 = arith.constant 0 : index
    %41 = vector.load %arg9[%c0_23, %c0_24, %c0_25] : memref<2x32x96xf32, #tpu.memory_space<vmem>>, vector<1x32x96xf32>
    %42 = vector.shape_cast %41 : vector<1x32x96xf32> to vector<32x96xf32>
    %cst_26 = arith.constant dense<0.000000e+00> : vector<48x96xf32>
    %43 = tpu.matmul %40, %42, %cst_26 {dimension_numbers = #tpu.dot_dimension_numbers<[1], [0], [0], [1], [0, 0, 1, 1], [], []>} : vector<48x32xf32>, vector<32x96xf32>, vector<48x96xf32> -> vector<48x96xf32>
    %c0_27 = arith.constant 0 : index
    %c0_28 = arith.constant 0 : index
    %c0_29 = arith.constant 0 : index
    %44 = vector.load %arg10[%c0_27, %c0_28, %c0_29] : memref<2x1x96xf32, #tpu.memory_space<vmem>>, vector<1x1x96xf32>
    %45 = vector.shape_cast %44 : vector<1x1x96xf32> to vector<1x96xf32>
    %46 = vector.broadcast %45 : vector<1x96xf32> to vector<48x96xf32>
    %47 = arith.addf %43, %46 : vector<48x96xf32>
    %48 = vector.extract_strided_slice %47 {offsets = [0, 0], sizes = [48, 32], strides = [1, 1]} : vector<48x96xf32> to vector<48x32xf32>
    %49 = vector.extract_strided_slice %47 {offsets = [0, 32], sizes = [48, 32], strides = [1, 1]} : vector<48x96xf32> to vector<48x32xf32>
    %50 = vector.extract_strided_slice %47 {offsets = [0, 64], sizes = [48, 32], strides = [1, 1]} : vector<48x96xf32> to vector<48x32xf32>
    %51 = vector.extract_strided_slice %48 {offsets = [0, 0], sizes = [24, 32], strides = [1, 1]} : vector<48x32xf32> to vector<24x32xf32>
    %52 = vector.extract_strided_slice %49 {offsets = [0, 0], sizes = [24, 32], strides = [1, 1]} : vector<48x32xf32> to vector<24x32xf32>
    %53 = vector.extract_strided_slice %50 {offsets = [0, 0], sizes = [24, 32], strides = [1, 1]} : vector<48x32xf32> to vector<24x32xf32>
    %54 = tpu.concatenate %52, %52, %52, %52 in 0 : vector<24x32xf32>, vector<24x32xf32>, vector<24x32xf32>, vector<24x32xf32> -> vector<96x32xf32>
    %55 = arith.mulf %54, %12 : vector<96x32xf32>
    %56 = tpu.concatenate %53, %53, %53, %53 in 0 : vector<24x32xf32>, vector<24x32xf32>, vector<24x32xf32>, vector<24x32xf32> -> vector<96x32xf32>
    %57 = arith.mulf %56, %12 : vector<96x32xf32>
    %cst_30 = arith.constant dense<0.000000e+00> : vector<24x96xf32>
    %58 = tpu.matmul %51, %55, %cst_30 {dimension_numbers = #tpu.dot_dimension_numbers<[1], [1], [0], [0], [0, 0, 1, 0], [], []>} : vector<24x32xf32>, vector<96x32xf32>, vector<24x96xf32> -> vector<24x96xf32>
    %cst_31 = arith.constant dense<0xFF800000> : vector<24xf32>
    %59 = vector.multi_reduction <maximumf>, %58, %cst_31 [1] : vector<24x96xf32> to vector<24xf32>
    %60 = vector.shape_cast %59 : vector<24xf32> to vector<24x1xf32>
    %61 = vector.broadcast %60 : vector<24x1xf32> to vector<24x96xf32>
    %62 = arith.subf %58, %61 : vector<24x96xf32>
    %63 = math.exp %62 : vector<24x96xf32>
    %cst_32 = arith.constant dense<0.000000e+00> : vector<24x32xf32>
    %64 = tpu.matmul %63, %57, %cst_32 {dimension_numbers = #tpu.dot_dimension_numbers<[1], [0], [0], [1], [0, 0, 1, 1], [], []>} : vector<24x96xf32>, vector<96x32xf32>, vector<24x32xf32> -> vector<24x32xf32>
    %cst_33 = arith.constant dense<0.000000e+00> : vector<24x4xf32>
    %65 = tpu.matmul %63, %13, %cst_33 {dimension_numbers = #tpu.dot_dimension_numbers<[1], [0], [0], [1], [0, 0, 1, 1], [], []>} : vector<24x96xf32>, vector<96x4xf32>, vector<24x4xf32> -> vector<24x4xf32>
    %66 = tpu.reciprocal %65 {approx = true} : vector<24x4xf32> -> vector<24x4xf32>
    %cst_34 = arith.constant dense<0.000000e+00> : vector<24x32xf32>
    %67 = tpu.matmul %66, %14, %cst_34 {dimension_numbers = #tpu.dot_dimension_numbers<[1], [0], [0], [1], [0, 0, 1, 1], [], []>} : vector<24x4xf32>, vector<4x32xf32>, vector<24x32xf32> -> vector<24x32xf32>
    %68 = arith.mulf %64, %67 : vector<24x32xf32>
    %69 = vector.extract_strided_slice %48 {offsets = [24, 0], sizes = [24, 32], strides = [1, 1]} : vector<48x32xf32> to vector<24x32xf32>
    %70 = vector.extract_strided_slice %49 {offsets = [24, 0], sizes = [24, 32], strides = [1, 1]} : vector<48x32xf32> to vector<24x32xf32>
    %71 = vector.extract_strided_slice %50 {offsets = [24, 0], sizes = [24, 32], strides = [1, 1]} : vector<48x32xf32> to vector<24x32xf32>
    %72 = tpu.concatenate %70, %70, %70, %70 in 0 : vector<24x32xf32>, vector<24x32xf32>, vector<24x32xf32>, vector<24x32xf32> -> vector<96x32xf32>
    %73 = arith.mulf %72, %12 : vector<96x32xf32>
    %74 = tpu.concatenate %71, %71, %71, %71 in 0 : vector<24x32xf32>, vector<24x32xf32>, vector<24x32xf32>, vector<24x32xf32> -> vector<96x32xf32>
    %75 = arith.mulf %74, %12 : vector<96x32xf32>
    %cst_35 = arith.constant dense<0.000000e+00> : vector<24x96xf32>
    %76 = tpu.matmul %69, %73, %cst_35 {dimension_numbers = #tpu.dot_dimension_numbers<[1], [1], [0], [0], [0, 0, 1, 0], [], []>} : vector<24x32xf32>, vector<96x32xf32>, vector<24x96xf32> -> vector<24x96xf32>
    %cst_36 = arith.constant dense<0xFF800000> : vector<24xf32>
    %77 = vector.multi_reduction <maximumf>, %76, %cst_36 [1] : vector<24x96xf32> to vector<24xf32>
    %78 = vector.shape_cast %77 : vector<24xf32> to vector<24x1xf32>
    %79 = vector.broadcast %78 : vector<24x1xf32> to vector<24x96xf32>
    %80 = arith.subf %76, %79 : vector<24x96xf32>
    %81 = math.exp %80 : vector<24x96xf32>
    %cst_37 = arith.constant dense<0.000000e+00> : vector<24x32xf32>
    %82 = tpu.matmul %81, %75, %cst_37 {dimension_numbers = #tpu.dot_dimension_numbers<[1], [0], [0], [1], [0, 0, 1, 1], [], []>} : vector<24x96xf32>, vector<96x32xf32>, vector<24x32xf32> -> vector<24x32xf32>
    %cst_38 = arith.constant dense<0.000000e+00> : vector<24x4xf32>
    %83 = tpu.matmul %81, %13, %cst_38 {dimension_numbers = #tpu.dot_dimension_numbers<[1], [0], [0], [1], [0, 0, 1, 1], [], []>} : vector<24x96xf32>, vector<96x4xf32>, vector<24x4xf32> -> vector<24x4xf32>
    %84 = tpu.reciprocal %83 {approx = true} : vector<24x4xf32> -> vector<24x4xf32>
    %cst_39 = arith.constant dense<0.000000e+00> : vector<24x32xf32>
    %85 = tpu.matmul %84, %14, %cst_39 {dimension_numbers = #tpu.dot_dimension_numbers<[1], [0], [0], [1], [0, 0, 1, 1], [], []>} : vector<24x4xf32>, vector<4x32xf32>, vector<24x32xf32> -> vector<24x32xf32>
    %86 = arith.mulf %82, %85 : vector<24x32xf32>
    %87 = tpu.concatenate %68, %86 in 0 : vector<24x32xf32>, vector<24x32xf32> -> vector<48x32xf32>
    %c0_40 = arith.constant 0 : index
    %c0_41 = arith.constant 0 : index
    %c0_42 = arith.constant 0 : index
    %88 = vector.load %arg11[%c0_40, %c0_41, %c0_42] : memref<2x32x32xf32, #tpu.memory_space<vmem>>, vector<1x32x32xf32>
    %89 = vector.shape_cast %88 : vector<1x32x32xf32> to vector<32x32xf32>
    %cst_43 = arith.constant dense<0.000000e+00> : vector<48x32xf32>
    %90 = tpu.matmul %87, %89, %cst_43 {dimension_numbers = #tpu.dot_dimension_numbers<[1], [0], [0], [1], [0, 0, 1, 1], [], []>} : vector<48x32xf32>, vector<32x32xf32>, vector<48x32xf32> -> vector<48x32xf32>
    %91 = arith.addf %11, %90 : vector<48x32xf32>
    %c0_44 = arith.constant 0 : index
    %c0_45 = arith.constant 0 : index
    %c0_46 = arith.constant 0 : index
    %92 = vector.load %arg12[%c0_44, %c0_45, %c0_46] : memref<2x1x32xf32, #tpu.memory_space<vmem>>, vector<1x1x32xf32>
    %93 = vector.shape_cast %92 : vector<1x1x32xf32> to vector<1x32xf32>
    %94 = vector.broadcast %93 : vector<1x32xf32> to vector<48x32xf32>
    %95 = arith.addf %91, %94 : vector<48x32xf32>
    %c0_47 = arith.constant 0 : index
    %c0_48 = arith.constant 0 : index
    %c0_49 = arith.constant 0 : index
    %96 = vector.load %arg13[%c0_47, %c0_48, %c0_49] : memref<2x1x32xf32, #tpu.memory_space<vmem>>, vector<1x1x32xf32>
    %97 = vector.shape_cast %96 : vector<1x1x32xf32> to vector<1x32xf32>
    %c0_50 = arith.constant 0 : index
    %c0_51 = arith.constant 0 : index
    %c0_52 = arith.constant 0 : index
    %98 = vector.load %arg14[%c0_50, %c0_51, %c0_52] : memref<2x1x32xf32, #tpu.memory_space<vmem>>, vector<1x1x32xf32>
    %99 = vector.shape_cast %98 : vector<1x1x32xf32> to vector<1x32xf32>
    %cst_53 = arith.constant dense<0.000000e+00> : vector<48xf32>
    %100 = vector.multi_reduction <add>, %95, %cst_53 [1] : vector<48x32xf32> to vector<48xf32>
    %101 = vector.shape_cast %100 : vector<48xf32> to vector<48x1xf32>
    %cst_54 = arith.constant 3.200000e+01 : f32
    %102 = vector.broadcast %cst_54 : f32 to vector<48x1xf32>
    %103 = arith.divf %101, %102 : vector<48x1xf32>
    %104 = vector.broadcast %103 : vector<48x1xf32> to vector<48x32xf32>
    %105 = arith.subf %95, %104 : vector<48x32xf32>
    %106 = arith.mulf %105, %105 : vector<48x32xf32>
    %cst_55 = arith.constant dense<0.000000e+00> : vector<48xf32>
    %107 = vector.multi_reduction <add>, %106, %cst_55 [1] : vector<48x32xf32> to vector<48xf32>
    %108 = vector.shape_cast %107 : vector<48xf32> to vector<48x1xf32>
    %cst_56 = arith.constant 3.200000e+01 : f32
    %109 = vector.broadcast %cst_56 : f32 to vector<48x1xf32>
    %110 = arith.divf %108, %109 : vector<48x1xf32>
    %111 = vector.broadcast %103 : vector<48x1xf32> to vector<48x32xf32>
    %112 = arith.subf %95, %111 : vector<48x32xf32>
    %cst_57 = arith.constant 9.99999997E-7 : f32
    %113 = vector.broadcast %cst_57 : f32 to vector<48x1xf32>
    %114 = arith.addf %110, %113 : vector<48x1xf32>
    %115 = math.rsqrt %114 : vector<48x1xf32>
    %116 = vector.broadcast %115 : vector<48x1xf32> to vector<48x32xf32>
    %117 = arith.mulf %112, %116 : vector<48x32xf32>
    %118 = vector.broadcast %97 : vector<1x32xf32> to vector<48x32xf32>
    %119 = arith.mulf %117, %118 : vector<48x32xf32>
    %120 = vector.broadcast %99 : vector<1x32xf32> to vector<48x32xf32>
    %121 = arith.addf %119, %120 : vector<48x32xf32>
    %c0_58 = arith.constant 0 : index
    %c0_59 = arith.constant 0 : index
    %c0_60 = arith.constant 0 : index
    %122 = vector.load %arg15[%c0_58, %c0_59, %c0_60] : memref<2x32x64xf32, #tpu.memory_space<vmem>>, vector<1x32x64xf32>
    %123 = vector.shape_cast %122 : vector<1x32x64xf32> to vector<32x64xf32>
    %cst_61 = arith.constant dense<0.000000e+00> : vector<48x64xf32>
    %124 = tpu.matmul %121, %123, %cst_61 {dimension_numbers = #tpu.dot_dimension_numbers<[1], [0], [0], [1], [0, 0, 1, 1], [], []>} : vector<48x32xf32>, vector<32x64xf32>, vector<48x64xf32> -> vector<48x64xf32>
    %c0_62 = arith.constant 0 : index
    %c0_63 = arith.constant 0 : index
    %c0_64 = arith.constant 0 : index
    %125 = vector.load %arg16[%c0_62, %c0_63, %c0_64] : memref<2x1x64xf32, #tpu.memory_space<vmem>>, vector<1x1x64xf32>
    %126 = vector.shape_cast %125 : vector<1x1x64xf32> to vector<1x64xf32>
    %127 = vector.broadcast %126 : vector<1x64xf32> to vector<48x64xf32>
    %128 = arith.addf %124, %127 : vector<48x64xf32>
    %129 = arith.mulf %128, %128 : vector<48x64xf32>
    %130 = arith.mulf %128, %129 : vector<48x64xf32>
    %cst_65 = arith.constant 4.471500e-02 : f32
    %131 = vector.broadcast %cst_65 : f32 to vector<48x64xf32>
    %132 = arith.mulf %131, %130 : vector<48x64xf32>
    %133 = arith.addf %128, %132 : vector<48x64xf32>
    %cst_66 = arith.constant 0.797884583 : f32
    %134 = vector.broadcast %cst_66 : f32 to vector<48x64xf32>
    %135 = arith.mulf %134, %133 : vector<48x64xf32>
    %136 = math.tanh %135 : vector<48x64xf32>
    %cst_67 = arith.constant 1.000000e+00 : f32
    %137 = vector.broadcast %cst_67 : f32 to vector<48x64xf32>
    %138 = arith.addf %137, %136 : vector<48x64xf32>
    %cst_68 = arith.constant 5.000000e-01 : f32
    %139 = vector.broadcast %cst_68 : f32 to vector<48x64xf32>
    %140 = arith.mulf %139, %138 : vector<48x64xf32>
    %141 = arith.mulf %128, %140 : vector<48x64xf32>
    %c0_69 = arith.constant 0 : index
    %c0_70 = arith.constant 0 : index
    %c0_71 = arith.constant 0 : index
    %142 = vector.load %arg17[%c0_69, %c0_70, %c0_71] : memref<2x64x32xf32, #tpu.memory_space<vmem>>, vector<1x64x32xf32>
    %143 = vector.shape_cast %142 : vector<1x64x32xf32> to vector<64x32xf32>
    %cst_72 = arith.constant dense<0.000000e+00> : vector<48x32xf32>
    %144 = tpu.matmul %141, %143, %cst_72 {dimension_numbers = #tpu.dot_dimension_numbers<[1], [0], [0], [1], [0, 0, 1, 1], [], []>} : vector<48x64xf32>, vector<64x32xf32>, vector<48x32xf32> -> vector<48x32xf32>
    %145 = arith.addf %95, %144 : vector<48x32xf32>
    %c0_73 = arith.constant 0 : index
    %c0_74 = arith.constant 0 : index
    %c0_75 = arith.constant 0 : index
    %146 = vector.load %arg18[%c0_73, %c0_74, %c0_75] : memref<2x1x32xf32, #tpu.memory_space<vmem>>, vector<1x1x32xf32>
    %147 = vector.shape_cast %146 : vector<1x1x32xf32> to vector<1x32xf32>
    %148 = vector.broadcast %147 : vector<1x32xf32> to vector<48x32xf32>
    %149 = arith.addf %145, %148 : vector<48x32xf32>
    %c1 = arith.constant 1 : index
    %c0_76 = arith.constant 0 : index
    %c0_77 = arith.constant 0 : index
    %150 = vector.load %arg7[%c1, %c0_76, %c0_77] : memref<2x1x32xf32, #tpu.memory_space<vmem>>, vector<1x1x32xf32>
    %151 = vector.shape_cast %150 : vector<1x1x32xf32> to vector<1x32xf32>
    %c1_78 = arith.constant 1 : index
    %c0_79 = arith.constant 0 : index
    %c0_80 = arith.constant 0 : index
    %152 = vector.load %arg8[%c1_78, %c0_79, %c0_80] : memref<2x1x32xf32, #tpu.memory_space<vmem>>, vector<1x1x32xf32>
    %153 = vector.shape_cast %152 : vector<1x1x32xf32> to vector<1x32xf32>
    %cst_81 = arith.constant dense<0.000000e+00> : vector<48xf32>
    %154 = vector.multi_reduction <add>, %149, %cst_81 [1] : vector<48x32xf32> to vector<48xf32>
    %155 = vector.shape_cast %154 : vector<48xf32> to vector<48x1xf32>
    %cst_82 = arith.constant 3.200000e+01 : f32
    %156 = vector.broadcast %cst_82 : f32 to vector<48x1xf32>
    %157 = arith.divf %155, %156 : vector<48x1xf32>
    %158 = vector.broadcast %157 : vector<48x1xf32> to vector<48x32xf32>
    %159 = arith.subf %149, %158 : vector<48x32xf32>
    %160 = arith.mulf %159, %159 : vector<48x32xf32>
    %cst_83 = arith.constant dense<0.000000e+00> : vector<48xf32>
    %161 = vector.multi_reduction <add>, %160, %cst_83 [1] : vector<48x32xf32> to vector<48xf32>
    %162 = vector.shape_cast %161 : vector<48xf32> to vector<48x1xf32>
    %cst_84 = arith.constant 3.200000e+01 : f32
    %163 = vector.broadcast %cst_84 : f32 to vector<48x1xf32>
    %164 = arith.divf %162, %163 : vector<48x1xf32>
    %165 = vector.broadcast %157 : vector<48x1xf32> to vector<48x32xf32>
    %166 = arith.subf %149, %165 : vector<48x32xf32>
    %cst_85 = arith.constant 9.99999997E-7 : f32
    %167 = vector.broadcast %cst_85 : f32 to vector<48x1xf32>
    %168 = arith.addf %164, %167 : vector<48x1xf32>
    %169 = math.rsqrt %168 : vector<48x1xf32>
    %170 = vector.broadcast %169 : vector<48x1xf32> to vector<48x32xf32>
    %171 = arith.mulf %166, %170 : vector<48x32xf32>
    %172 = vector.broadcast %151 : vector<1x32xf32> to vector<48x32xf32>
    %173 = arith.mulf %171, %172 : vector<48x32xf32>
    %174 = vector.broadcast %153 : vector<1x32xf32> to vector<48x32xf32>
    %175 = arith.addf %173, %174 : vector<48x32xf32>
    %c1_86 = arith.constant 1 : index
    %c0_87 = arith.constant 0 : index
    %c0_88 = arith.constant 0 : index
    %176 = vector.load %arg9[%c1_86, %c0_87, %c0_88] : memref<2x32x96xf32, #tpu.memory_space<vmem>>, vector<1x32x96xf32>
    %177 = vector.shape_cast %176 : vector<1x32x96xf32> to vector<32x96xf32>
    %cst_89 = arith.constant dense<0.000000e+00> : vector<48x96xf32>
    %178 = tpu.matmul %175, %177, %cst_89 {dimension_numbers = #tpu.dot_dimension_numbers<[1], [0], [0], [1], [0, 0, 1, 1], [], []>} : vector<48x32xf32>, vector<32x96xf32>, vector<48x96xf32> -> vector<48x96xf32>
    %c1_90 = arith.constant 1 : index
    %c0_91 = arith.constant 0 : index
    %c0_92 = arith.constant 0 : index
    %179 = vector.load %arg10[%c1_90, %c0_91, %c0_92] : memref<2x1x96xf32, #tpu.memory_space<vmem>>, vector<1x1x96xf32>
    %180 = vector.shape_cast %179 : vector<1x1x96xf32> to vector<1x96xf32>
    %181 = vector.broadcast %180 : vector<1x96xf32> to vector<48x96xf32>
    %182 = arith.addf %178, %181 : vector<48x96xf32>
    %183 = vector.extract_strided_slice %182 {offsets = [0, 0], sizes = [48, 32], strides = [1, 1]} : vector<48x96xf32> to vector<48x32xf32>
    %184 = vector.extract_strided_slice %182 {offsets = [0, 32], sizes = [48, 32], strides = [1, 1]} : vector<48x96xf32> to vector<48x32xf32>
    %185 = vector.extract_strided_slice %182 {offsets = [0, 64], sizes = [48, 32], strides = [1, 1]} : vector<48x96xf32> to vector<48x32xf32>
    %186 = vector.extract_strided_slice %183 {offsets = [0, 0], sizes = [24, 32], strides = [1, 1]} : vector<48x32xf32> to vector<24x32xf32>
    %187 = vector.extract_strided_slice %184 {offsets = [0, 0], sizes = [24, 32], strides = [1, 1]} : vector<48x32xf32> to vector<24x32xf32>
    %188 = vector.extract_strided_slice %185 {offsets = [0, 0], sizes = [24, 32], strides = [1, 1]} : vector<48x32xf32> to vector<24x32xf32>
    %189 = tpu.concatenate %187, %187, %187, %187 in 0 : vector<24x32xf32>, vector<24x32xf32>, vector<24x32xf32>, vector<24x32xf32> -> vector<96x32xf32>
    %190 = arith.mulf %189, %12 : vector<96x32xf32>
    %191 = tpu.concatenate %188, %188, %188, %188 in 0 : vector<24x32xf32>, vector<24x32xf32>, vector<24x32xf32>, vector<24x32xf32> -> vector<96x32xf32>
    %192 = arith.mulf %191, %12 : vector<96x32xf32>
    %cst_93 = arith.constant dense<0.000000e+00> : vector<24x96xf32>
    %193 = tpu.matmul %186, %190, %cst_93 {dimension_numbers = #tpu.dot_dimension_numbers<[1], [1], [0], [0], [0, 0, 1, 0], [], []>} : vector<24x32xf32>, vector<96x32xf32>, vector<24x96xf32> -> vector<24x96xf32>
    %cst_94 = arith.constant dense<0xFF800000> : vector<24xf32>
    %194 = vector.multi_reduction <maximumf>, %193, %cst_94 [1] : vector<24x96xf32> to vector<24xf32>
    %195 = vector.shape_cast %194 : vector<24xf32> to vector<24x1xf32>
    %196 = vector.broadcast %195 : vector<24x1xf32> to vector<24x96xf32>
    %197 = arith.subf %193, %196 : vector<24x96xf32>
    %198 = math.exp %197 : vector<24x96xf32>
    %cst_95 = arith.constant dense<0.000000e+00> : vector<24x32xf32>
    %199 = tpu.matmul %198, %192, %cst_95 {dimension_numbers = #tpu.dot_dimension_numbers<[1], [0], [0], [1], [0, 0, 1, 1], [], []>} : vector<24x96xf32>, vector<96x32xf32>, vector<24x32xf32> -> vector<24x32xf32>
    %cst_96 = arith.constant dense<0.000000e+00> : vector<24x4xf32>
    %200 = tpu.matmul %198, %13, %cst_96 {dimension_numbers = #tpu.dot_dimension_numbers<[1], [0], [0], [1], [0, 0, 1, 1], [], []>} : vector<24x96xf32>, vector<96x4xf32>, vector<24x4xf32> -> vector<24x4xf32>
    %201 = tpu.reciprocal %200 {approx = true} : vector<24x4xf32> -> vector<24x4xf32>
    %cst_97 = arith.constant dense<0.000000e+00> : vector<24x32xf32>
    %202 = tpu.matmul %201, %14, %cst_97 {dimension_numbers = #tpu.dot_dimension_numbers<[1], [0], [0], [1], [0, 0, 1, 1], [], []>} : vector<24x4xf32>, vector<4x32xf32>, vector<24x32xf32> -> vector<24x32xf32>
    %203 = arith.mulf %199, %202 : vector<24x32xf32>
    %204 = vector.extract_strided_slice %183 {offsets = [24, 0], sizes = [24, 32], strides = [1, 1]} : vector<48x32xf32> to vector<24x32xf32>
    %205 = vector.extract_strided_slice %184 {offsets = [24, 0], sizes = [24, 32], strides = [1, 1]} : vector<48x32xf32> to vector<24x32xf32>
    %206 = vector.extract_strided_slice %185 {offsets = [24, 0], sizes = [24, 32], strides = [1, 1]} : vector<48x32xf32> to vector<24x32xf32>
    %207 = tpu.concatenate %205, %205, %205, %205 in 0 : vector<24x32xf32>, vector<24x32xf32>, vector<24x32xf32>, vector<24x32xf32> -> vector<96x32xf32>
    %208 = arith.mulf %207, %12 : vector<96x32xf32>
    %209 = tpu.concatenate %206, %206, %206, %206 in 0 : vector<24x32xf32>, vector<24x32xf32>, vector<24x32xf32>, vector<24x32xf32> -> vector<96x32xf32>
    %210 = arith.mulf %209, %12 : vector<96x32xf32>
    %cst_98 = arith.constant dense<0.000000e+00> : vector<24x96xf32>
    %211 = tpu.matmul %204, %208, %cst_98 {dimension_numbers = #tpu.dot_dimension_numbers<[1], [1], [0], [0], [0, 0, 1, 0], [], []>} : vector<24x32xf32>, vector<96x32xf32>, vector<24x96xf32> -> vector<24x96xf32>
    %cst_99 = arith.constant dense<0xFF800000> : vector<24xf32>
    %212 = vector.multi_reduction <maximumf>, %211, %cst_99 [1] : vector<24x96xf32> to vector<24xf32>
    %213 = vector.shape_cast %212 : vector<24xf32> to vector<24x1xf32>
    %214 = vector.broadcast %213 : vector<24x1xf32> to vector<24x96xf32>
    %215 = arith.subf %211, %214 : vector<24x96xf32>
    %216 = math.exp %215 : vector<24x96xf32>
    %cst_100 = arith.constant dense<0.000000e+00> : vector<24x32xf32>
    %217 = tpu.matmul %216, %210, %cst_100 {dimension_numbers = #tpu.dot_dimension_numbers<[1], [0], [0], [1], [0, 0, 1, 1], [], []>} : vector<24x96xf32>, vector<96x32xf32>, vector<24x32xf32> -> vector<24x32xf32>
    %cst_101 = arith.constant dense<0.000000e+00> : vector<24x4xf32>
    %218 = tpu.matmul %216, %13, %cst_101 {dimension_numbers = #tpu.dot_dimension_numbers<[1], [0], [0], [1], [0, 0, 1, 1], [], []>} : vector<24x96xf32>, vector<96x4xf32>, vector<24x4xf32> -> vector<24x4xf32>
    %219 = tpu.reciprocal %218 {approx = true} : vector<24x4xf32> -> vector<24x4xf32>
    %cst_102 = arith.constant dense<0.000000e+00> : vector<24x32xf32>
    %220 = tpu.matmul %219, %14, %cst_102 {dimension_numbers = #tpu.dot_dimension_numbers<[1], [0], [0], [1], [0, 0, 1, 1], [], []>} : vector<24x4xf32>, vector<4x32xf32>, vector<24x32xf32> -> vector<24x32xf32>
    %221 = arith.mulf %217, %220 : vector<24x32xf32>
    %222 = tpu.concatenate %203, %221 in 0 : vector<24x32xf32>, vector<24x32xf32> -> vector<48x32xf32>
    %c1_103 = arith.constant 1 : index
    %c0_104 = arith.constant 0 : index
    %c0_105 = arith.constant 0 : index
    %223 = vector.load %arg11[%c1_103, %c0_104, %c0_105] : memref<2x32x32xf32, #tpu.memory_space<vmem>>, vector<1x32x32xf32>
    %224 = vector.shape_cast %223 : vector<1x32x32xf32> to vector<32x32xf32>
    %cst_106 = arith.constant dense<0.000000e+00> : vector<48x32xf32>
    %225 = tpu.matmul %222, %224, %cst_106 {dimension_numbers = #tpu.dot_dimension_numbers<[1], [0], [0], [1], [0, 0, 1, 1], [], []>} : vector<48x32xf32>, vector<32x32xf32>, vector<48x32xf32> -> vector<48x32xf32>
    %226 = arith.addf %149, %225 : vector<48x32xf32>
    %c1_107 = arith.constant 1 : index
    %c0_108 = arith.constant 0 : index
    %c0_109 = arith.constant 0 : index
    %227 = vector.load %arg12[%c1_107, %c0_108, %c0_109] : memref<2x1x32xf32, #tpu.memory_space<vmem>>, vector<1x1x32xf32>
    %228 = vector.shape_cast %227 : vector<1x1x32xf32> to vector<1x32xf32>
    %229 = vector.broadcast %228 : vector<1x32xf32> to vector<48x32xf32>
    %230 = arith.addf %226, %229 : vector<48x32xf32>
    %c1_110 = arith.constant 1 : index
    %c0_111 = arith.constant 0 : index
    %c0_112 = arith.constant 0 : index
    %231 = vector.load %arg13[%c1_110, %c0_111, %c0_112] : memref<2x1x32xf32, #tpu.memory_space<vmem>>, vector<1x1x32xf32>
    %232 = vector.shape_cast %231 : vector<1x1x32xf32> to vector<1x32xf32>
    %c1_113 = arith.constant 1 : index
    %c0_114 = arith.constant 0 : index
    %c0_115 = arith.constant 0 : index
    %233 = vector.load %arg14[%c1_113, %c0_114, %c0_115] : memref<2x1x32xf32, #tpu.memory_space<vmem>>, vector<1x1x32xf32>
    %234 = vector.shape_cast %233 : vector<1x1x32xf32> to vector<1x32xf32>
    %cst_116 = arith.constant dense<0.000000e+00> : vector<48xf32>
    %235 = vector.multi_reduction <add>, %230, %cst_116 [1] : vector<48x32xf32> to vector<48xf32>
    %236 = vector.shape_cast %235 : vector<48xf32> to vector<48x1xf32>
    %cst_117 = arith.constant 3.200000e+01 : f32
    %237 = vector.broadcast %cst_117 : f32 to vector<48x1xf32>
    %238 = arith.divf %236, %237 : vector<48x1xf32>
    %239 = vector.broadcast %238 : vector<48x1xf32> to vector<48x32xf32>
    %240 = arith.subf %230, %239 : vector<48x32xf32>
    %241 = arith.mulf %240, %240 : vector<48x32xf32>
    %cst_118 = arith.constant dense<0.000000e+00> : vector<48xf32>
    %242 = vector.multi_reduction <add>, %241, %cst_118 [1] : vector<48x32xf32> to vector<48xf32>
    %243 = vector.shape_cast %242 : vector<48xf32> to vector<48x1xf32>
    %cst_119 = arith.constant 3.200000e+01 : f32
    %244 = vector.broadcast %cst_119 : f32 to vector<48x1xf32>
    %245 = arith.divf %243, %244 : vector<48x1xf32>
    %246 = vector.broadcast %238 : vector<48x1xf32> to vector<48x32xf32>
    %247 = arith.subf %230, %246 : vector<48x32xf32>
    %cst_120 = arith.constant 9.99999997E-7 : f32
    %248 = vector.broadcast %cst_120 : f32 to vector<48x1xf32>
    %249 = arith.addf %245, %248 : vector<48x1xf32>
    %250 = math.rsqrt %249 : vector<48x1xf32>
    %251 = vector.broadcast %250 : vector<48x1xf32> to vector<48x32xf32>
    %252 = arith.mulf %247, %251 : vector<48x32xf32>
    %253 = vector.broadcast %232 : vector<1x32xf32> to vector<48x32xf32>
    %254 = arith.mulf %252, %253 : vector<48x32xf32>
    %255 = vector.broadcast %234 : vector<1x32xf32> to vector<48x32xf32>
    %256 = arith.addf %254, %255 : vector<48x32xf32>
    %c1_121 = arith.constant 1 : index
    %c0_122 = arith.constant 0 : index
    %c0_123 = arith.constant 0 : index
    %257 = vector.load %arg15[%c1_121, %c0_122, %c0_123] : memref<2x32x64xf32, #tpu.memory_space<vmem>>, vector<1x32x64xf32>
    %258 = vector.shape_cast %257 : vector<1x32x64xf32> to vector<32x64xf32>
    %cst_124 = arith.constant dense<0.000000e+00> : vector<48x64xf32>
    %259 = tpu.matmul %256, %258, %cst_124 {dimension_numbers = #tpu.dot_dimension_numbers<[1], [0], [0], [1], [0, 0, 1, 1], [], []>} : vector<48x32xf32>, vector<32x64xf32>, vector<48x64xf32> -> vector<48x64xf32>
    %c1_125 = arith.constant 1 : index
    %c0_126 = arith.constant 0 : index
    %c0_127 = arith.constant 0 : index
    %260 = vector.load %arg16[%c1_125, %c0_126, %c0_127] : memref<2x1x64xf32, #tpu.memory_space<vmem>>, vector<1x1x64xf32>
    %261 = vector.shape_cast %260 : vector<1x1x64xf32> to vector<1x64xf32>
    %262 = vector.broadcast %261 : vector<1x64xf32> to vector<48x64xf32>
    %263 = arith.addf %259, %262 : vector<48x64xf32>
    %264 = arith.mulf %263, %263 : vector<48x64xf32>
    %265 = arith.mulf %263, %264 : vector<48x64xf32>
    %cst_128 = arith.constant 4.471500e-02 : f32
    %266 = vector.broadcast %cst_128 : f32 to vector<48x64xf32>
    %267 = arith.mulf %266, %265 : vector<48x64xf32>
    %268 = arith.addf %263, %267 : vector<48x64xf32>
    %cst_129 = arith.constant 0.797884583 : f32
    %269 = vector.broadcast %cst_129 : f32 to vector<48x64xf32>
    %270 = arith.mulf %269, %268 : vector<48x64xf32>
    %271 = math.tanh %270 : vector<48x64xf32>
    %cst_130 = arith.constant 1.000000e+00 : f32
    %272 = vector.broadcast %cst_130 : f32 to vector<48x64xf32>
    %273 = arith.addf %272, %271 : vector<48x64xf32>
    %cst_131 = arith.constant 5.000000e-01 : f32
    %274 = vector.broadcast %cst_131 : f32 to vector<48x64xf32>
    %275 = arith.mulf %274, %273 : vector<48x64xf32>
    %276 = arith.mulf %263, %275 : vector<48x64xf32>
    %c1_132 = arith.constant 1 : index
    %c0_133 = arith.constant 0 : index
    %c0_134 = arith.constant 0 : index
    %277 = vector.load %arg17[%c1_132, %c0_133, %c0_134] : memref<2x64x32xf32, #tpu.memory_space<vmem>>, vector<1x64x32xf32>
    %278 = vector.shape_cast %277 : vector<1x64x32xf32> to vector<64x32xf32>
    %cst_135 = arith.constant dense<0.000000e+00> : vector<48x32xf32>
    %279 = tpu.matmul %276, %278, %cst_135 {dimension_numbers = #tpu.dot_dimension_numbers<[1], [0], [0], [1], [0, 0, 1, 1], [], []>} : vector<48x64xf32>, vector<64x32xf32>, vector<48x32xf32> -> vector<48x32xf32>
    %280 = arith.addf %230, %279 : vector<48x32xf32>
    %c1_136 = arith.constant 1 : index
    %c0_137 = arith.constant 0 : index
    %c0_138 = arith.constant 0 : index
    %281 = vector.load %arg18[%c1_136, %c0_137, %c0_138] : memref<2x1x32xf32, #tpu.memory_space<vmem>>, vector<1x1x32xf32>
    %282 = vector.shape_cast %281 : vector<1x1x32xf32> to vector<1x32xf32>
    %283 = vector.broadcast %282 : vector<1x32xf32> to vector<48x32xf32>
    %284 = arith.addf %280, %283 : vector<48x32xf32>
    %c0_139 = arith.constant 0 : index
    %c0_140 = arith.constant 0 : index
    %285 = vector.load %arg19[%c0_139, %c0_140] : memref<1x32xf32, #tpu.memory_space<vmem>>, vector<1x32xf32>
    %c0_141 = arith.constant 0 : index
    %c0_142 = arith.constant 0 : index
    %286 = vector.load %arg20[%c0_141, %c0_142] : memref<1x32xf32, #tpu.memory_space<vmem>>, vector<1x32xf32>
    %cst_143 = arith.constant dense<0.000000e+00> : vector<48xf32>
    %287 = vector.multi_reduction <add>, %284, %cst_143 [1] : vector<48x32xf32> to vector<48xf32>
    %288 = vector.shape_cast %287 : vector<48xf32> to vector<48x1xf32>
    %cst_144 = arith.constant 3.200000e+01 : f32
    %289 = vector.broadcast %cst_144 : f32 to vector<48x1xf32>
    %290 = arith.divf %288, %289 : vector<48x1xf32>
    %291 = vector.broadcast %290 : vector<48x1xf32> to vector<48x32xf32>
    %292 = arith.subf %284, %291 : vector<48x32xf32>
    %293 = arith.mulf %292, %292 : vector<48x32xf32>
    %cst_145 = arith.constant dense<0.000000e+00> : vector<48xf32>
    %294 = vector.multi_reduction <add>, %293, %cst_145 [1] : vector<48x32xf32> to vector<48xf32>
    %295 = vector.shape_cast %294 : vector<48xf32> to vector<48x1xf32>
    %cst_146 = arith.constant 3.200000e+01 : f32
    %296 = vector.broadcast %cst_146 : f32 to vector<48x1xf32>
    %297 = arith.divf %295, %296 : vector<48x1xf32>
    %298 = vector.broadcast %290 : vector<48x1xf32> to vector<48x32xf32>
    %299 = arith.subf %284, %298 : vector<48x32xf32>
    %cst_147 = arith.constant 9.99999997E-7 : f32
    %300 = vector.broadcast %cst_147 : f32 to vector<48x1xf32>
    %301 = arith.addf %297, %300 : vector<48x1xf32>
    %302 = math.rsqrt %301 : vector<48x1xf32>
    %303 = vector.broadcast %302 : vector<48x1xf32> to vector<48x32xf32>
    %304 = arith.mulf %299, %303 : vector<48x32xf32>
    %305 = vector.broadcast %285 : vector<1x32xf32> to vector<48x32xf32>
    %306 = arith.mulf %304, %305 : vector<48x32xf32>
    %307 = vector.broadcast %286 : vector<1x32xf32> to vector<48x32xf32>
    %308 = arith.addf %306, %307 : vector<48x32xf32>
    %309 = vector.extract_strided_slice %308 {offsets = [0, 0], sizes = [24, 32], strides = [1, 1]} : vector<48x32xf32> to vector<24x32xf32>
    %c0_148 = arith.constant 0 : index
    %c0_149 = arith.constant 0 : index
    %c0_150 = arith.constant 0 : index
    %310 = vector.load %arg21[%c0_148, %c0_149, %c0_150] : memref<2x24x32xf32, #tpu.memory_space<vmem>>, vector<1x24x32xf32>
    %311 = vector.shape_cast %310 : vector<1x24x32xf32> to vector<24x32xf32>
    %312 = vector.shape_cast %309 : vector<24x32xf32> to vector<1x24x32xf32>
    tpu.vector_store %arg21[%c0_148, %c0_149, %c0_150], %312 {strides = array<i32>} : memref<2x24x32xf32, #tpu.memory_space<vmem>>, vector<1x24x32xf32>,
    %313 = vector.extract_strided_slice %308 {offsets = [24, 0], sizes = [24, 32], strides = [1, 1]} : vector<48x32xf32> to vector<24x32xf32>
    %c1_151 = arith.constant 1 : index
    %c0_152 = arith.constant 0 : index
    %c0_153 = arith.constant 0 : index
    %314 = vector.load %arg21[%c1_151, %c0_152, %c0_153] : memref<2x24x32xf32, #tpu.memory_space<vmem>>, vector<1x24x32xf32>
    %315 = vector.shape_cast %314 : vector<1x24x32xf32> to vector<24x32xf32>
    %316 = vector.shape_cast %313 : vector<24x32xf32> to vector<1x24x32xf32>
    tpu.vector_store %arg21[%c1_151, %c0_152, %c0_153], %316 {strides = array<i32>} : memref<2x24x32xf32, #tpu.memory_space<vmem>>, vector<1x24x32xf32>,
    return
  }
  func.func @transform_0(%arg0: i32) -> (i32, i32) {
    %c0_i32 = arith.constant 0 : i32
    %c0_i32_0 = arith.constant 0 : i32
    return %arg0, %c0_i32 : i32, i32
  }
  func.func @transform_1(%arg0: i32) -> (i32, i32) {
    %c0_i32 = arith.constant 0 : i32
    %c0_i32_0 = arith.constant 0 : i32
    %c0_i32_1 = arith.constant 0 : i32
    return %c0_i32, %c0_i32_0 : i32, i32
  }
  func.func @transform_2(%arg0: i32) -> (i32, i32) {
    %c0_i32 = arith.constant 0 : i32
    %c0_i32_0 = arith.constant 0 : i32
    %c0_i32_1 = arith.constant 0 : i32
    return %c0_i32, %c0_i32_0 : i32, i32
  }
  func.func @transform_3(%arg0: i32) -> (i32, i32) {
    %c0_i32 = arith.constant 0 : i32
    %c0_i32_0 = arith.constant 0 : i32
    %c0_i32_1 = arith.constant 0 : i32
    return %c0_i32, %c0_i32_0 : i32, i32
  }
  func.func @transform_4(%arg0: i32) -> (i32, i32) {
    %c0_i32 = arith.constant 0 : i32
    %c0_i32_0 = arith.constant 0 : i32
    %c0_i32_1 = arith.constant 0 : i32
    return %c0_i32, %c0_i32_0 : i32, i32
  }
  func.func @transform_5(%arg0: i32) -> (i32, i32) {
    %c0_i32 = arith.constant 0 : i32
    %c0_i32_0 = arith.constant 0 : i32
    %c0_i32_1 = arith.constant 0 : i32
    return %c0_i32, %c0_i32_0 : i32, i32
  }
  func.func @transform_6(%arg0: i32) -> (i32, i32, i32) {
    %c0_i32 = arith.constant 0 : i32
    %c0_i32_0 = arith.constant 0 : i32
    %c0_i32_1 = arith.constant 0 : i32
    %c0_i32_2 = arith.constant 0 : i32
    return %c0_i32, %c0_i32_0, %c0_i32_1 : i32, i32, i32
  }
  func.func @transform_7(%arg0: i32) -> (i32, i32, i32) {
    %c0_i32 = arith.constant 0 : i32
    %c0_i32_0 = arith.constant 0 : i32
    %c0_i32_1 = arith.constant 0 : i32
    %c0_i32_2 = arith.constant 0 : i32
    return %c0_i32, %c0_i32_0, %c0_i32_1 : i32, i32, i32
  }
  func.func @transform_8(%arg0: i32) -> (i32, i32, i32) {
    %c0_i32 = arith.constant 0 : i32
    %c0_i32_0 = arith.constant 0 : i32
    %c0_i32_1 = arith.constant 0 : i32
    %c0_i32_2 = arith.constant 0 : i32
    return %c0_i32, %c0_i32_0, %c0_i32_1 : i32, i32, i32
  }
  func.func @transform_9(%arg0: i32) -> (i32, i32, i32) {
    %c0_i32 = arith.constant 0 : i32
    %c0_i32_0 = arith.constant 0 : i32
    %c0_i32_1 = arith.constant 0 : i32
    %c0_i32_2 = arith.constant 0 : i32
    return %c0_i32, %c0_i32_0, %c0_i32_1 : i32, i32, i32
  }
  func.func @transform_10(%arg0: i32) -> (i32, i32, i32) {
    %c0_i32 = arith.constant 0 : i32
    %c0_i32_0 = arith.constant 0 : i32
    %c0_i32_1 = arith.constant 0 : i32
    %c0_i32_2 = arith.constant 0 : i32
    return %c0_i32, %c0_i32_0, %c0_i32_1 : i32, i32, i32
  }
  func.func @transform_11(%arg0: i32) -> (i32, i32, i32) {
    %c0_i32 = arith.constant 0 : i32
    %c0_i32_0 = arith.constant 0 : i32
    %c0_i32_1 = arith.constant 0 : i32
    %c0_i32_2 = arith.constant 0 : i32
    return %c0_i32, %c0_i32_0, %c0_i32_1 : i32, i32, i32
  }
  func.func @transform_12(%arg0: i32) -> (i32, i32, i32) {
    %c0_i32 = arith.constant 0 : i32
    %c0_i32_0 = arith.constant 0 : i32
    %c0_i32_1 = arith.constant 0 : i32
    %c0_i32_2 = arith.constant 0 : i32
    return %c0_i32, %c0_i32_0, %c0_i32_1 : i32, i32, i32
  }
  func.func @transform_13(%arg0: i32) -> (i32, i32, i32) {
    %c0_i32 = arith.constant 0 : i32
    %c0_i32_0 = arith.constant 0 : i32
    %c0_i32_1 = arith.constant 0 : i32
    %c0_i32_2 = arith.constant 0 : i32
    return %c0_i32, %c0_i32_0, %c0_i32_1 : i32, i32, i32
  }
  func.func @transform_14(%arg0: i32) -> (i32, i32, i32) {
    %c0_i32 = arith.constant 0 : i32
    %c0_i32_0 = arith.constant 0 : i32
    %c0_i32_1 = arith.constant 0 : i32
    %c0_i32_2 = arith.constant 0 : i32
    return %c0_i32, %c0_i32_0, %c0_i32_1 : i32, i32, i32
  }
  func.func @transform_15(%arg0: i32) -> (i32, i32, i32) {
    %c0_i32 = arith.constant 0 : i32
    %c0_i32_0 = arith.constant 0 : i32
    %c0_i32_1 = arith.constant 0 : i32
    %c0_i32_2 = arith.constant 0 : i32
    return %c0_i32, %c0_i32_0, %c0_i32_1 : i32, i32, i32
  }
  func.func @transform_16(%arg0: i32) -> (i32, i32, i32) {
    %c0_i32 = arith.constant 0 : i32
    %c0_i32_0 = arith.constant 0 : i32
    %c0_i32_1 = arith.constant 0 : i32
    %c0_i32_2 = arith.constant 0 : i32
    return %c0_i32, %c0_i32_0, %c0_i32_1 : i32, i32, i32
  }
  func.func @transform_17(%arg0: i32) -> (i32, i32, i32) {
    %c0_i32 = arith.constant 0 : i32
    %c0_i32_0 = arith.constant 0 : i32
    %c0_i32_1 = arith.constant 0 : i32
    %c0_i32_2 = arith.constant 0 : i32
    return %c0_i32, %c0_i32_0, %c0_i32_1 : i32, i32, i32
  }
  func.func @transform_18(%arg0: i32) -> (i32, i32) {
    %c0_i32 = arith.constant 0 : i32
    %c0_i32_0 = arith.constant 0 : i32
    %c0_i32_1 = arith.constant 0 : i32
    return %c0_i32, %c0_i32_0 : i32, i32
  }
  func.func @transform_19(%arg0: i32) -> (i32, i32) {
    %c0_i32 = arith.constant 0 : i32
    %c0_i32_0 = arith.constant 0 : i32
    %c0_i32_1 = arith.constant 0 : i32
    return %c0_i32, %c0_i32_0 : i32, i32
  }
  func.func @transform_20(%arg0: i32) -> (i32, i32, i32) {
    %c0_i32 = arith.constant 0 : i32
    %c0_i32_0 = arith.constant 0 : i32
    %c0_i32_1 = arith.constant 0 : i32
    return %arg0, %c0_i32, %c0_i32_0 : i32, i32, i32
  }
}

</mosaic_0001>

<bundles_post_ra>
// kernel: _forward.1
= control target key start
LH: loop header
LB: loop body
LE: loop exit
PB: predicated region body
PF: predicated region fallthrough
CT: control target
= control target key end

     0   :  { %vm83_vm0 = vcmask 883712   ;;  %vm96_vm1 = vcmask 1043456   ;;  %vm5862_vm2 = vmmov 1   ;;  %vm220_vm4 = vcmask 261120   ;;  %s5863_s22 = smov 32   ;;  %s5865_s26 = smov 96   ;;  %s7497_s1 = inlined_call_operand.vmem [shape: f32[108,32], index: 1, kind: input, shape index: {}]   ;;  %s7498_s0 = inlined_call_operand.vmem [shape: f32[32,108], index: 0, kind: input, shape index: {}]   ;;  %s7499_s2 = inlined_call_operand.vmem [shape: f32[24,32], index: 2, kind: input, shape index: {}]   ;;  %s7500_s8 = inlined_call_operand.vmem [shape: f32[2,32,96], index: 8, kind: input, shape index: {}]   ;;  %s7501_s3 = inlined_call_operand.vmem [shape: f32[96,32], index: 3, kind: input, shape index: {}]   ;;  %s7502_s6 = inlined_call_operand.vmem [shape: f32[2,1,32], index: 6, kind: input, shape index: {}]   ;;  %s7503_s7 = inlined_call_operand.vmem [shape: f32[2,1,32], index: 7, kind: input, shape index: {}]   ;;  %s7504_s9 = inlined_call_operand.vmem [shape: f32[2,1,96], index: 9, kind: input, shape index: {}]   ;;  %s7505_s4 = inlined_call_operand.vmem [shape: f32[96,4], index: 4, kind: input, shape index: {}]   ;;  %s7506_s5 = inlined_call_operand.vmem [shape: f32[4,32], index: 5, kind: input, shape index: {}]   ;;  %s7507_s10 = inlined_call_operand.vmem [shape: f32[2,32,32], index: 10, kind: input, shape index: {}]   ;;  %s7508_s11 = inlined_call_operand.vmem [shape: f32[2,1,32], index: 11, kind: input, shape index: {}]   ;;  %s7509_s14 = inlined_call_operand.vmem [shape: f32[2,32,64], index: 14, kind: input, shape index: {}]   ;;  %s7510_s12 = inlined_call_operand.vmem [shape: f32[2,1,32], index: 12, kind: input, shape index: {}]   ;;  %s7511_s13 = inlined_call_operand.vmem [shape: f32[2,1,32], index: 13, kind: input, shape index: {}]   ;;  %s7512_s16 = inlined_call_operand.vmem [shape: f32[2,64,32], index: 16, kind: input, shape index: {}]   ;;  %s7513_s15 = inlined_call_operand.vmem [shape: f32[2,1,64], index: 15, kind: input, shape index: {}]   ;;  %s7514_s17 = inlined_call_operand.vmem [shape: f32[2,1,32], index: 17, kind: input, shape index: {}]   ;;  %s7515_s18 = inlined_call_operand.vmem [shape: f32[1,32], index: 18, kind: input, shape index: {}]   ;;  %s7516_s19 = inlined_call_operand.vmem [shape: f32[1,32], index: 19, kind: input, shape index: {}]   ;;  %s7517_s20 = inlined_call_operand.vmem [shape: f32[2,24,32], index: 20, kind: output, shape index: {}]  }
   0x1   :  { %7523 = sst [smem:[#allocation2_spill]] %s7497_s1  ;;  %vm5158_vm3 = vmpackc.low %vm96_vm1, %vm5862_vm2  ;;  %s5866_s27 = smov 64   ;;  %vm5867_vm5 = vmmov 0   ;;  %vm687_vm7 = vcmask 785408   ;;  %vm926_vm8 = vcmask 31744   ;;  %vm1951_vm9 = vcmask 523264  }
   0x2   :  { %7524 = sst [smem:[#allocation3_spill]] %s7498_s0  ;;  %s7528_s23 = sld [smem:[#allocation2_spill]]  ;;  %vm6301_vm6 = vmpackc.low %vm220_vm4, %vm220_vm4 }
   0x3   :  { %7525 = sst [smem:[#allocation4_spill]] %s7499_s2  ;;  %s7529_s0 = sld [smem:[#allocation3_spill]] }
   0x4   :  { %7526 = sst [smem:[#allocation5_spill]] %s7500_s8  ;;  %s7530_s30 = sld [smem:[#allocation4_spill]] }
   0x5   :  { %7527 = sst [smem:[#allocation6_spill]] %s7501_s3  ;;  %s7531_s25 = sld [smem:[#allocation5_spill]] }
   0x6   :  { %s7532_s21 = sld [smem:[#allocation6_spill]] }
   0x8   :  { %v69_v0 = vld [vmem:[%s7528_s23] sm:$0xff]  ;;  %v70_v1 = vld [vmem:[%s7528_s23 + $0x8] sm:$0xff]  ;;  %v71_v2 = vld [vmem:[%s7528_s23 + $0x10] sm:$0xff] }
   0x9   :  { %v5133_v3 = vpack.c.bf16 %v70_v1, %v69_v0  ;;  %v72_v4 = vld [vmem:[%s7528_s23 + $0x18] sm:$0xff]  ;;  %v73_v6 = vld [vmem:[%s7528_s23 + $0x20] sm:$0xff]  ;;  %v74_v7 = vld [vmem:[%s7528_s23 + $0x28] sm:$0xff] }
   0xa   :  { %v5137_v5 = vpack.c.bf16 %v72_v4, %v71_v2  ;;  %v5141_v8 = vpack.c.bf16 %v74_v7, %v73_v6  ;;  %v65_v9 = vld [vmem:[%s7529_s0] sm:$0xff]  ;;  %v75_v10 = vld [vmem:[%s7528_s23 + $0x30] sm:$0xff]  ;;  %v76_v11 = vld [vmem:[%s7528_s23 + $0x38] sm:$0xff] }
   0xb   :  { %5134 = vmatprep.subr.bf16.mxu0 %v5133_v3  ;;  %4535 = vmatprep.mubr.msk.f32.mxu0 %vm83_vm0, %v65_v9  ;;  %v5145_v12 = vpack.c.bf16 %v76_v11, %v75_v10  ;;  %v77_v13 = vld [vmem:[%s7528_s23 + $0x40] sm:$0xff]  ;;  %v78_v14 = vld [vmem:[%s7528_s23 + $0x48] sm:$0xff]  ;;  %v79_v16 = vld [vmem:[%s7528_s23 + $0x50] sm:$0xff] }
   0xc   :  { %5136 = vmatpush3.bf16.msra.mxu0 %v5133_v3  ;;  %v5149_v15 = vpack.c.bf16 %v78_v14, %v77_v13  ;;  %v80_v17 = vld [vmem:[%s7528_s23 + $0x58] sm:$0xff]  ;;  %v81_v19 = vld [vmem:[%s7528_s23 + $0x60] sm:$0xff]  ;;  %v82_v20 = vld [vmem:[%s7528_s23 + $0x68] sm:$0xf] }
   0xd   :  { %5138 = vmatprep.subr.bf16.mxu0 %v5137_v5  ;;  %v5153_v18 = vpack.c.bf16 %v80_v17, %v79_v16  ;;  %v5157_v21 = vpack.c.bf16 %v82_v20, %v81_v19  ;;  %v66_v22 = vld [vmem:[%s7529_s0 + $0x8] sm:$0xff]  ;;  %v67_v23 = vld [vmem:[%s7529_s0 + $0x10] sm:$0xff]  ;;  %v68_v24 = vld [vmem:[%s7529_s0 + $0x18] sm:$0xff] }
   0xe   :  { %v187_v25 = vld [vmem:[%s7530_s30 + $0x10] sm:$0xff]  ;;  %v186_v27 = vld [vmem:[%s7530_s30 + $0x8] sm:$0xff]  ;;  %v185_v28 = vld [vmem:[%s7530_s30] sm:$0xff] }
   0xf   :  { %v227_v26 = vsel %vm220_vm4, %v187_v25, 0.0  ;;  %v309_v61 = vld [vmem:[%s7531_s25] sm:$0xff]  ;;  %v310_v62 = vld [vmem:[%s7531_s25 + $0x8] sm:$0xff]  ;;  %v311_v63 = vld [vmem:[%s7531_s25 + $0x10] sm:$0xff] }
  0x10   :  { %5140 = vmatpush3.bf16.msra.mxu0 %v5137_v5  ;;  %228 = vadd.xlane.f32.xlu1 %v227_v26  ;;  %v5163_v0 = vpack.c.bf16 %v310_v62, %v309_v61  ;;  %v312_v1 = vld [vmem:[%s7531_s25 + $0x18] sm:$0xff]  ;;  %v6097_v3 = vld [vmem:[%s7532_s21] sm:$0xff]  ;;  %v6103_v4 = vld [vmem:[%s7532_s21 + $0x8] sm:$0xff] }
  0x11   :  { %5142 = vmatprep.subr.bf16.mxu0 %v5141_v8  ;;  %v5167_v2 = vpack.c.bf16 %v312_v1, %v311_v63  ;;  %v6108_v5 = vld [vmem:[%s7532_s21 + $0x10] sm:$0xff]  ;;  %v6114_v6 = vld [vmem:[%s7532_s21 + $0x28] sm:$0xff]  ;;  %v6120_v7 = vld [vmem:[%s7532_s21 + $0x18] sm:$0xff] }
  0x12   :  { %5164 = vmatprep.subr.bf16.mxu1 %v5163_v0  ;;  %v6132_v9 = vld [vmem:[%s7532_s21 + $0x20] sm:$0xff]  ;;  %v6138_v10 = vld [vmem:[%s7532_s21 + $0x48] sm:$0xff]  ;;  %v6144_v11 = vld [vmem:[%s7532_s21 + $0x30] sm:$0xff] }
  0x13   :  { %5166 = vmatpush3.bf16.msra.mxu1 %v5163_v0  ;;  %v6156_v13 = vld [vmem:[%s7532_s21 + $0x40] sm:$0xff]  ;;  %v6163_v14 = vld [vmem:[%s7532_s21 + $0x50] sm:$0xff] }
  0x14   :  { %5144 = vmatpush3.bf16.msra.mxu0 %v5141_v8  ;;  %5168 = vmatprep.subr.bf16.mxu1 %v5167_v2  ;;  %v6126_v8 = vld [vmem:[%s7532_s21 + $0x38] sm:$0xff] }
  0x15   :  { %5146 = vmatprep.subr.bf16.mxu0 %v5145_v12 }
  0x17   :  { %5170 = vmatpush3.bf16.msra.mxu1 %v5167_v2 }
  0x18   :  { %5148 = vmatpush3.bf16.msra.mxu0 %v5145_v12  ;;  %v6150_v12 = vld [vmem:[%s7532_s21 + $0x58] sm:$0xff] }
  0x19   :  { %5150 = vmatprep.subr.bf16.mxu0 %v5149_v15 }
  0x1c   :  { %5152 = vmatpush3.bf16.msra.mxu0 %v5149_v15 }
  0x1d   :  { %5154 = vmatprep.subr.bf16.mxu0 %v5153_v18 }
  0x20   :  { %5156 = vmatpush3.bf16.msra.mxu0 %v5153_v18 }
  0x21   :  { %5159 = vmatprep.subr.msk.bf16.mxu0 %vm5158_vm3, %v5157_v21 }
  0x24   :  { %5162 = vmatpush3.bf16.msk.msra.mxu0 %vm5158_vm3, %v5157_v21 }
  0x27   :  { %4536 = vmatmul.mubr.msk.f32.vlgmr.msra.gmra.mrb[0].mxu0 %vm83_vm0, %v66_v22 }
  0x28   :  { %4538 = vmatprep.mubr.msk.f32.mxu0 %vm83_vm0, %v67_v23 }
  0x2b   :  { %4539 = vmatmul.mubr.msk.f32.gmra.mrb[2].mxu0 %vm83_vm0, %v68_v24 }
  0x9d   :  { %v229_v40 = vpop.xlane.xlu1 %228 }
  0x9e   :  { %v239_v41 = vmul.f32 0.03125, %v229_v40 }
  0xa0   :  { %v6057_v43 = vsub.f32 %v187_v25, %v239_v41 }
  0xa2   :  { %v249_v51 = vmul.f32 %v6057_v43, %v6057_v43 }
  0xa4   :  { %v258_v55 = vsel %vm220_vm4, %v249_v51, 0.0 }
  0xfa   :  { %v4537_v29 = vpop.f32.mrb[0].mxu0 }
  0xfb   :  { %v6043_v30 = vadd.f32 %v4537_v29, %v186_v27  ;;  %v166_v31 = vpop.f32.mrb[1].mxu0 }
  0xfc   :  { %v6045_v32 = vadd.f32 %v185_v28, %v166_v31  ;;  %v6175_v31 = vld [vmem:[%s7503_s7] ss:$0 sm:$0xff] }
  0xfd   :  { %v224_v38 = vsel %vm220_vm4, %v6043_v30, 0.0 }
  0xfe   :  { %v4540_v33 = vpop.f32.mrb[2].mxu0  ;;  %v221_v34 = vsel %vm220_vm4, %v6045_v32, 0.0 }
  0xff   :  { %v6049_v35 = vadd.f32 %v4540_v33, %v186_v27  ;;  %222 = vadd.xlane.f32.xlu0 %v221_v34  ;;  %v176_v36 = vpop.f32.mrb[3].mxu0 }
 0x100   :  { %v6051_v37 = vadd.f32 %v185_v28, %v176_v36  ;;  %v6169_v28 = vld [vmem:[%s7502_s6] ss:$0 sm:$0xff] }
 0x101   :  { %v233_v59 = vsel %vm220_vm4, %v6049_v35, 0.0 }
 0x102   :  { %v230_v39 = vsel %vm220_vm4, %v6051_v37, 0.0 }
 0x103   :  { %225 = vadd.xlane.f32.xlu0 %v224_v38  ;;  %231 = vadd.xlane.f32.xlu1 %v230_v39 }
 0x18c   :  { %v223_v42 = vpop.xlane.xlu0 %222 }
 0x18d   :  { %v237_v44 = vmul.f32 0.03125, %v223_v42 }
 0x18f   :  { %v6060_v45 = vsub.f32 %v6045_v32, %v237_v44 }
 0x190   :  { %v226_v46 = vpop.xlane.xlu0 %225  ;;  %v232_v47 = vpop.xlane.xlu1 %231 }
 0x191   :  { %v238_v48 = vmul.f32 0.03125, %v226_v46  ;;  %v240_v49 = vmul.f32 0.03125, %v232_v47  ;;  %v247_v50 = vmul.f32 %v6060_v45, %v6060_v45 }
 0x193   :  { %v6067_v52 = vsub.f32 %v6043_v30, %v238_v48  ;;  %v6070_v53 = vsub.f32 %v6051_v37, %v240_v49  ;;  %v252_v54 = vsel %vm220_vm4, %v247_v50, 0.0 }
 0x194   :  { %253 = vadd.xlane.f32.xlu0 %v252_v54  ;;  %v6206_v54 = vld [vmem:[%s7504_s9] ss:$0 sm:$0xff] }
 0x195   :  { %v248_v56 = vmul.f32 %v6067_v52, %v6067_v52  ;;  %v250_v58 = vmul.f32 %v6070_v53, %v6070_v53 }
 0x197   :  { %v255_v57 = vsel %vm220_vm4, %v248_v56, 0.0  ;;  %v261_v60 = vsel %vm220_vm4, %v250_v58, 0.0 }
 0x198   :  { %259 = vadd.xlane.f32.xlu0 %v258_v55  ;;  %256 = vadd.xlane.f32.xlu1 %v255_v57  ;;  %v5864_v55 = vmov 0.0|0.0  }
 0x199   :  { %5171 = vmatprep.subr.bf16.mxu1 %v5864_v55  ;;  %5195 = vmatprep.subr.bf16.mxu0 %v5864_v55 }
 0x19c   :  { %234 = vadd.xlane.f32.xlu0 %v233_v59  ;;  %262 = vadd.xlane.f32.xlu1 %v261_v60 }
 0x1ad   :  { %442 = vrot.lane.b32.xlu1 %v6097_v3, %s5863_s22 }
 0x1b1   :  { %446 = vrot.lane.b32.xlu1 %v6108_v5, %s5863_s22 }
 0x1b2   :  { %444 = vrot.lane.b32.xlu0 %v6103_v4, %s5863_s22 }
 0x1b5   :  { %448 = vrot.lane.b32.xlu1 %v6120_v7, %s5863_s22 }
 0x1b6   :  { %452 = vrot.lane.b32.xlu0 %v6114_v6, %s5863_s22 }
 0x1b9   :  { %450 = vrot.lane.b32.xlu1 %v6132_v9, %s5863_s22 }
 0x1ba   :  { %456 = vrot.lane.b32.xlu0 %v6126_v8, %s5863_s22 }
 0x1bd   :  { %454 = vrot.lane.b32.xlu1 %v6144_v11, %s5863_s22 }
 0x1be   :  { %460 = vrot.lane.b32.xlu0 %v6138_v10, %s5863_s22 }
 0x1c1   :  { %458 = vrot.lane.b32.xlu1 %v6156_v13, %s5863_s22 }
 0x1c2   :  { %464 = vrot.lane.b32.xlu0 %v6150_v12, %s5863_s22 }
 0x1c5   :  { %462 = vrot.lane.b32.xlu1 %v6163_v14, %s5863_s22 }
 0x221   :  { %v254_v15 = vpop.xlane.xlu0 %253 }
 0x222   :  { %v267_v16 = vmul.f32 0.03125, %v254_v15 }
 0x224   :  { %v272_v17 = vadd.f32 1e-06, %v267_v16 }
 0x225   :  { %v260_v18 = vpop.xlane.xlu0 %259  ;;  %v257_v19 = vpop.xlane.xlu1 %256 }
 0x226   :  { %5730 = vrsqrt.f32 %v272_v17  ;;  %v269_v20 = vmul.f32 0.03125, %v260_v18  ;;  %v268_v21 = vmul.f32 0.03125, %v257_v19 }
 0x228   :  { %v274_v22 = vadd.f32 1e-06, %v269_v20  ;;  %v273_v23 = vadd.f32 1e-06, %v268_v21 }
 0x229   :  { %v263_v24 = vpop.xlane.xlu1 %262  ;;  %v235_v50 = vpop.xlane.xlu0 %234 }
 0x22a   :  { %5732 = vrsqrt.f32 %v274_v22  ;;  %v270_v25 = vmul.f32 0.03125, %v263_v24 }
 0x22b   :  { %5734 = vrsqrt.f32 %v273_v23 }
 0x22c   :  { %v275_v26 = vadd.f32 1e-06, %v270_v25 }
 0x22d   :  { %v6195_v49 = vpop.permute.xlu1 %442 }
 0x22e   :  { %5736 = vrsqrt.f32 %v275_v26 }
 0x230   :  { %v5731_v27 = vpop.eup %5730 }
 0x231   :  { %v282_v29 = vmul.f32 %v5731_v27, %v6060_v45  ;;  %v6197_v51 = vpop.permute.xlu1 %446 }
 0x233   :  { %v293_v33 = vmul.f32 %v6169_v28, %v282_v29 }
 0x234   :  { %v5733_v34 = vpop.eup %5732 }
 0x235   :  { %v5735_v36 = vpop.eup %5734  ;;  %v304_v38 = vadd.f32 %v6175_v31, %v293_v33  ;;  %v284_v39 = vmul.f32 %v5733_v34, %v6057_v43 }
 0x236   :  { %v283_v40 = vmul.f32 %v5735_v36, %v6067_v52  ;;  %v6199_v52 = vpop.permute.xlu0 %444 }
 0x237   :  { %4549 = vmatprep.mubr.msk.f32.mxu1 %vm220_vm4, %v304_v38  ;;  %v295_v41 = vmul.f32 %v6169_v28, %v284_v39 }
 0x238   :  { %v5737_v42 = vpop.eup %5736  ;;  %v294_v44 = vmul.f32 %v6169_v28, %v283_v40 }
 0x239   :  { %v6185_v45 = vadd.f32 %v6175_v31, %v295_v41  ;;  %v285_v46 = vmul.f32 %v5737_v42, %v6070_v53  ;;  %v6201_v53 = vpop.permute.xlu1 %448 }
 0x23a   :  { %v305_v47 = vadd.f32 %v6175_v31, %v294_v44  ;;  %v6210_v57 = vpop.permute.xlu0 %452  ;;  %v241_v44 = vmul.f32 0.03125, %v235_v50 }
 0x23b   :  { %v296_v48 = vmul.f32 %v6169_v28, %v285_v46 }
 0x23c   :  { %4550 = vmatmul.mubr.msk.f32.vlgmr.msra.gmra.mrb[0].mxu1 %vm220_vm4, %v305_v47  ;;  %v6270_v46 = vsub.f32 %v6049_v35, %v241_v44 }
 0x23d   :  { %4552 = vmatprep.mubr.msk.f32.mxu1 %vm220_vm4, %v6185_v45  ;;  %v307_v43 = vadd.f32 %v6175_v31, %v296_v48  ;;  %v6218_v61 = vpop.permute.xlu1 %450 }
 0x23e   :  { %v6229_v16 = vpop.permute.xlu0 %456  ;;  %v251_v47 = vmul.f32 %v6270_v46, %v6270_v46 }
 0x240   :  { %4553 = vmatmul.mubr.msk.f32.gmra.mrb[2].mxu1 %vm220_vm4, %v307_v43  ;;  %v264_v48 = vsel %vm220_vm4, %v251_v47, 0.0 }
 0x241   :  { %v6236_v19 = vpop.permute.xlu1 %454 }
 0x242   :  { %v6243_v23 = vpop.permute.xlu0 %460 }
 0x245   :  { %v6249_v27 = vpop.permute.xlu1 %458 }
 0x246   :  { %v6254_v34 = vpop.permute.xlu0 %464 }
 0x249   :  { %v6259_v38 = vpop.permute.xlu1 %462 }
 0x30f   :  { %v4551_v56 = vpop.f32.mrb[0].mxu1 }
 0x310   :  { %v6213_v58 = vadd.f32 %v4551_v56, %v6206_v54  ;;  %v401_v59 = vpop.f32.mrb[1].mxu1 }
 0x311   :  { %v6216_v60 = vadd.f32 %v6206_v54, %v401_v59 }
 0x312   :  { %v479_v62 = vmul.f32 %v6199_v52, %v6213_v58  ;;  %v482_v22 = vmul.f32 %v6218_v61, %v6213_v58  ;;  %v485_v26 = vmul.f32 %v6229_v16, %v6213_v58  ;;  %v488_v41 = vmul.f32 %v6259_v38, %v6213_v58 }
 0x313   :  { %v6222_v63 = vpop.f32.mrb[2].mxu1  ;;  %v478_v0 = vmul.f32 %v6195_v49, %v6216_v60  ;;  %v481_v18 = vmul.f32 %v6201_v53, %v6216_v60  ;;  %v484_v25 = vmul.f32 %v6236_v19, %v6216_v60  ;;  %v487_v36 = vmul.f32 %v6243_v23, %v6216_v60 }
 0x314   :  { %v411_v1 = vpop.f32.mrb[3].mxu1 }
 0x315   :  { %v6227_v2 = vadd.f32 %v6206_v54, %v411_v1  ;;  %v5490_v15 = vpack.i.bf16 %v479_v62, %v478_v0  ;;  %v5505_v29 = vpack.i.bf16 %v485_v26, %v484_v25 }
 0x317   :  { %5491 = vrot.lane.b32.xlu1 %v5490_v15, %s5865_s26  ;;  %v480_v17 = vmul.f32 %v6197_v51, %v6227_v2  ;;  %v483_v21 = vmul.f32 %v6210_v57, %v6227_v2  ;;  %v486_v33 = vmul.f32 %v6249_v27, %v6227_v2  ;;  %v489_v40 = vmul.f32 %v6254_v34, %v6227_v2 }
 0x319   :  { %v5495_v20 = vpack.i.bf16 %v481_v18, %v480_v17  ;;  %v5500_v24 = vpack.i.bf16 %v483_v21, %v482_v22  ;;  %v5510_v39 = vpack.i.bf16 %v487_v36, %v486_v33  ;;  %v5515_v42 = vpack.i.bf16 %v489_v40, %v488_v41 }
 0x31b   :  { %5496 = vrot.lane.b32.xlu0 %v5495_v20, %s5865_s26 }
 0x31f   :  { %5501 = vrot.lane.b32.xlu0 %v5500_v24, %s5865_s26 }
 0x323   :  { %5506 = vrot.lane.b32.xlu0 %v5505_v29, %s5865_s26 }
 0x327   :  { %5511 = vrot.lane.b32.xlu0 %v5510_v39, %s5865_s26 }
 0x32b   :  { %5516 = vrot.lane.b32.xlu0 %v5515_v42, %s5865_s26 }
 0x32f   :  { %490 = vrot.lane.b32.xlu0 %v6097_v3, %s5866_s27  ;;  %v5868_v3 = vmov 0.0  }
 0x330   :  { %4615 = vmatprep.mubr.msk.f32.mxu0 %vm5867_vm5, %v5868_v3 }
 0x333   :  { %492 = vrot.lane.b32.xlu0 %v6103_v4, %s5866_s27 }
 0x337   :  { %494 = vrot.lane.b32.xlu0 %v6108_v5, %s5866_s27 }
 0x33b   :  { %265 = vadd.xlane.f32.xlu1 %v264_v48  ;;  %496 = vrot.lane.b32.xlu0 %v6120_v7, %s5866_s27 }
 0x33f   :  { %498 = vrot.lane.b32.xlu0 %v6132_v9, %s5866_s27 }
 0x343   :  { %502 = vrot.lane.b32.xlu0 %v6144_v11, %s5866_s27 }
 0x347   :  { %504 = vrot.lane.b32.xlu0 %v6126_v8, %s5866_s27 }
 0x34b   :  { %506 = vrot.lane.b32.xlu0 %v6156_v13, %s5866_s27 }
 0x34c   :  { %500 = vrot.lane.b32.xlu1 %v6114_v6, %s5866_s27 }
 0x34f   :  { %508 = vrot.lane.b32.xlu0 %v6138_v10, %s5866_s27 }
 0x350   :  { %512 = vrot.lane.b32.xlu1 %v6150_v12, %s5866_s27 }
 0x353   :  { %510 = vrot.lane.b32.xlu0 %v6163_v14, %s5866_s27 }
 0x389   :  { %v5492_v4 = vpop.permute.xlu1 %5491 }
 0x38a   :  { %v5494_v5 = vunpack.i.h.bf16 %v5492_v4  ;;  %v5493_v7 = vunpack.i.l.bf16 %v5492_v4 }
 0x38c   :  { %v5172_v8 = vpack.c.bf16 %v5494_v5, %v5493_v7 }
 0x38d   :  { %v5497_v9 = vpop.permute.xlu0 %5496 }
 0x38e   :  { %5174 = vmatpush3.bf16.xpose.msk.msra.mxu1 %vm6301_vm6, %v5172_v8  ;;  %v5499_v10 = vunpack.i.h.bf16 %v5497_v9  ;;  %v5498_v11 = vunpack.i.l.bf16 %v5497_v9 }
 0x38f   :  { %5175 = vmatprep.subr.bf16.mxu1 %v5864_v55 }
 0x390   :  { %v5176_v13 = vpack.c.bf16 %v5499_v10, %v5498_v11 }
 0x391   :  { %v5502_v12 = vpop.permute.xlu0 %5501 }
 0x392   :  { %v5504_v43 = vunpack.i.h.bf16 %v5502_v12  ;;  %v5503_v50 = vunpack.i.l.bf16 %v5502_v12 }
 0x394   :  { %v5180_v59 = vpack.c.bf16 %v5504_v43, %v5503_v50 }
 0x395   :  { %v5507_v14 = vpop.permute.xlu0 %5506 }
 0x396   :  { %5178 = vmatpush3.bf16.xpose.msk.msra.mxu1 %vm6301_vm6, %v5176_v13  ;;  %v5509_v0 = vunpack.i.h.bf16 %v5507_v14  ;;  %v5508_v1 = vunpack.i.l.bf16 %v5507_v14 }
 0x397   :  { %5179 = vmatprep.subr.bf16.mxu1 %v5864_v55 }
 0x398   :  { %v5184_v17 = vpack.c.bf16 %v5509_v0, %v5508_v1 }
 0x399   :  { %v5512_v56 = vpop.permute.xlu0 %5511 }
 0x39a   :  { %v5514_v22 = vunpack.i.h.bf16 %v5512_v56  ;;  %v5513_v24 = vunpack.i.l.bf16 %v5512_v56 }
 0x39c   :  { %v5188_v29 = vpack.c.bf16 %v5514_v22, %v5513_v24 }
 0x39d   :  { %v5517_v62 = vpop.permute.xlu0 %5516 }
 0x39e   :  { %5182 = vmatpush3.bf16.xpose.msk.msra.mxu1 %vm6301_vm6, %v5180_v59  ;;  %v5519_v40 = vunpack.i.h.bf16 %v5517_v62  ;;  %v5518_v41 = vunpack.i.l.bf16 %v5517_v62 }
 0x39f   :  { %5183 = vmatprep.subr.bf16.mxu1 %v5864_v55 }
 0x3a0   :  { %v5192_v47 = vpack.c.bf16 %v5519_v40, %v5518_v41 }
 0x3a1   :  { %v6314_v15 = vpop.permute.xlu0 %490 }
 0x3a2   :  { %v526_v20 = vmul.f32 %v6314_v15, %v6216_v60 }
 0x3a5   :  { %v6316_v18 = vpop.permute.xlu0 %492 }
 0x3a6   :  { %5186 = vmatpush3.bf16.xpose.msk.msra.mxu1 %vm6301_vm6, %v5184_v17  ;;  %v527_v21 = vmul.f32 %v6316_v18, %v6213_v58 }
 0x3a7   :  { %5187 = vmatprep.subr.bf16.mxu1 %v5864_v55 }
 0x3a8   :  { %v5520_v25 = vpack.i.bf16 %v527_v21, %v526_v20 }
 0x3a9   :  { %v6325_v26 = vpop.permute.xlu0 %494 }
 0x3aa   :  { %5521 = vrot.lane.b32.xlu1 %v5520_v25, %s5866_s27  ;;  %v528_v36 = vmul.f32 %v6325_v26, %v6227_v2 }
 0x3ad   :  { %v6328_v33 = vpop.permute.xlu0 %496 }
 0x3ae   :  { %5190 = vmatpush3.bf16.xpose.msk.msra.mxu1 %vm6301_vm6, %v5188_v29  ;;  %v529_v39 = vmul.f32 %v6328_v33, %v6216_v60 }
 0x3af   :  { %5191 = vmatprep.subr.bf16.mxu1 %v5864_v55 }
 0x3b0   :  { %v5530_v42 = vpack.i.bf16 %v529_v39, %v528_v36 }
 0x3b1   :  { %v6337_v44 = vpop.permute.xlu0 %498 }
 0x3b2   :  { %5531 = vrot.lane.b32.xlu1 %v5530_v42, %s5866_s27  ;;  %v530_v13 = vmul.f32 %v6337_v44, %v6213_v58 }
 0x3b5   :  { %v6340_v48 = vpop.permute.xlu0 %502 }
 0x3b6   :  { %5194 = vmatpush3.bf16.xpose.msk.msra.mxu1 %vm6301_vm6, %v5192_v47  ;;  %v532_v5 = vmul.f32 %v6340_v48, %v6216_v60 }
 0x3b7   :  { %4657 = vmatprep.subr.mxu1 %v5868_v3 }
 0x3b9   :  { %v6345_v4 = vpop.permute.xlu0 %504 }
 0x3ba   :  { %v533_v7 = vmul.f32 %v6345_v4, %v6213_v58 }
 0x3bc   :  { %v5525_v8 = vpack.i.bf16 %v533_v7, %v532_v5 }
 0x3bd   :  { %v6383_v22 = vpop.permute.xlu0 %506 }
 0x3be   :  { %5526 = vrot.lane.b32.xlu0 %v5525_v8, %s5866_s27 }
 0x3c1   :  { %v6385_v24 = vpop.permute.xlu0 %508 }
 0x3c5   :  { %v6387_v25 = vpop.permute.xlu0 %510 }
 0x3c8   :  { %v266_v9 = vpop.xlane.xlu1 %265 }
 0x3c9   :  { %v271_v10 = vmul.f32 0.03125, %v266_v9 }
 0x3cb   :  { %v276_v11 = vadd.f32 1e-06, %v271_v10 }
 0x3cc   :  { %v6352_v12 = vpop.permute.xlu1 %500 }
 0x3cd   :  { %5738 = vrsqrt.f32 %v276_v11  ;;  %v531_v14 = vmul.f32 %v6352_v12, %v6227_v2 }
 0x3cf   :  { %v5535_v43 = vpack.i.bf16 %v531_v14, %v530_v13 }
 0x3d1   :  { %5536 = vrot.lane.b32.xlu1 %v5535_v43, %s5866_s27 }
 0x3d7   :  { %v5739_v50 = vpop.eup %5738 }
 0x3d8   :  { %v286_v56 = vmul.f32 %v5739_v50, %v6270_v46 }
 0x3da   :  { %v297_v59 = vmul.f32 %v6169_v28, %v286_v56  ;;  %v6379_v28 = vpop.permute.xlu1 %512 }
 0x3dc   :  { %v308_v62 = vadd.f32 %v6175_v31, %v297_v59 }
 0x3de   :  { %4555 = vmatprep.mubr.msk.f32.mxu1 %vm220_vm4, %v308_v62 }
 0x3df   :  { %4556 = vmatmul.mubr.msk.f32.gmra.mrb[4].mxu1 %vm220_vm4, %v6185_v45 }
 0x3e0   :  { %4582 = vmatprep.mubr.msk.f32.mxu1 %vm5867_vm5, %v5868_v3 }
 0x3e3   :  { %4583 = vmatmul.mubr.msk.f32.vlgmr.msra.gmra.mrb[6].mxu1 %vm220_vm4, %v6216_v60 }
 0x3e4   :  { %4585 = vmatprep.mubr.msk.f32.mxu1 %vm5867_vm5, %v5868_v3 }
 0x3e7   :  { %4586 = vmatmul.mubr.msk.f32.gmra.mrb[8].mxu1 %vm220_vm4, %v6213_v58 }
 0x3e8   :  { %4588 = vmatprep.mubr.msk.f32.mxu1 %vm5867_vm5, %v5868_v3 }
 0x3eb   :  { %4589 = vmatmul.mubr.msk.f32.gmra.mrb[10].mxu1 %vm220_vm4, %v6227_v2 }
 0x3ec   :  { %4659 = vmatprep.mubr.msk.f32.mxu1 %vm5867_vm5, %v5868_v3 }
 0x41c   :  { %v5522_v31 = vpop.permute.xlu1 %5521 }
 0x41d   :  { %v5524_v45 = vunpack.i.h.bf16 %v5522_v31  ;;  %v5523_v46 = vunpack.i.l.bf16 %v5522_v31  ;;  %v537_v31 = vmul.f32 %v6379_v28, %v6227_v2 }
 0x41f   :  { %v5196_v0 = vpack.c.bf16 %v5524_v45, %v5523_v46  ;;  %v6410_v45 = vadd.f32 %v6222_v63, %v6206_v54  ;;  %v536_v46 = vmul.f32 %v6387_v25, %v6213_v58 }
 0x421   :  { %5197 = vmatpush3.bf16.msra.mxu0 %v5196_v0  ;;  %v1022_v63 = vmul.f32 %v6195_v49, %v6410_v45 }
 0x422   :  { %5198 = vmatprep.subr.bf16.mxu0 %v5864_v55 }
 0x424   :  { %v5532_v1 = vpop.permute.xlu1 %5531 }
 0x425   :  { %v5534_v17 = vunpack.i.h.bf16 %v5532_v1  ;;  %v5533_v20 = vunpack.i.l.bf16 %v5532_v1  ;;  %v535_v1 = vmul.f32 %v6385_v24, %v6216_v60 }
 0x427   :  { %v5199_v21 = vpack.c.bf16 %v5534_v17, %v5533_v20  ;;  %v5545_v17 = vpack.i.bf16 %v537_v31, %v536_v46  ;;  %v1034_v46 = vmul.f32 %v6314_v15, %v6410_v45 }
 0x429   :  { %5200 = vmatpush3.bf16.msra.mxu0 %v5199_v21  ;;  %v534_v21 = vmul.f32 %v6383_v22, %v6227_v2  ;;  %v1025_v2 = vmul.f32 %v6201_v53, %v6410_v45 }
 0x42a   :  { %5201 = vmatprep.subr.bf16.mxu0 %v5864_v55 }
 0x430   :  { %v5527_v29 = vpop.permute.xlu0 %5526 }
 0x431   :  { %v5529_v41 = vunpack.i.h.bf16 %v5527_v29  ;;  %v5528_v42 = vunpack.i.l.bf16 %v5527_v29  ;;  %v5540_v29 = vpack.i.bf16 %v535_v1, %v534_v21 }
 0x433   :  { %v5205_v5 = vpack.c.bf16 %v5529_v41, %v5528_v42 }
 0x443   :  { %v5537_v36 = vpop.permute.xlu1 %5536 }
 0x444   :  { %v5539_v39 = vunpack.i.h.bf16 %v5537_v36  ;;  %v5538_v40 = vunpack.i.l.bf16 %v5537_v36  ;;  %v1031_v36 = vmul.f32 %v6243_v23, %v6410_v45 }
 0x446   :  { %v5202_v47 = vpack.c.bf16 %v5539_v39, %v5538_v40 }
 0x448   :  { %5203 = vmatpush3.bf16.msra.mxu0 %v5202_v47 }
 0x449   :  { %5204 = vmatprep.subr.bf16.mxu0 %v5864_v55 }
 0x44c   :  { %5206 = vmatpush3.bf16.msra.mxu0 %v5205_v5  ;;  %v1040_v5 = vmul.f32 %v6340_v48, %v6410_v45 }
 0x44d   :  { %5207 = vmatprep.subr.bf16.mxu0 %v5864_v55 }
 0x4b2   :  { %v4557_v7 = vpop.f32.mrb[4].mxu1 }
 0x4b3   :  { %v421_v8 = vpop.f32.mrb[5].mxu1  ;;  %v6415_v0 = vadd.f32 %v4557_v7, %v6206_v54 }
 0x4b4   :  { %v6404_v62 = vadd.f32 %v6206_v54, %v421_v8 }
 0x4b5   :  { %v1030_v54 = vmul.f32 %v6249_v27, %v6415_v0  ;;  %v1024_v60 = vmul.f32 %v6197_v51, %v6415_v0  ;;  %v1027_v47 = vmul.f32 %v6210_v57, %v6415_v0 }
 0x4b6   :  { %v6391_v9 = vpop.f32.mrb[6].mxu1  ;;  %v1023_v20 = vmul.f32 %v6199_v52, %v6404_v62  ;;  %v1041_v40 = vmul.f32 %v6345_v4, %v6404_v62  ;;  %v1026_v42 = vmul.f32 %v6218_v61, %v6404_v62  ;;  %v1035_v31 = vmul.f32 %v6316_v18, %v6404_v62 }
 0x4b7   :  { %v4584_v10 = vpop.f32.mrb[7].mxu1  ;;  %v688_v11 = vsel %vm687_vm7, %v6391_v9, -inf  ;;  %v5570_v39 = vpack.i.bf16 %v1031_v36, %v1030_v54  ;;  %v5555_v41 = vpack.i.bf16 %v1025_v2, %v1024_v60 }
 0x4b8   :  { %689 = vmax.xlane.f32.xlu0 %v688_v11  ;;  %v5550_v58 = vpack.i.bf16 %v1023_v20, %v1022_v63  ;;  %v5595_v7 = vpack.i.bf16 %v1041_v40, %v1040_v5  ;;  %v5560_v8 = vpack.i.bf16 %v1027_v47, %v1026_v42  ;;  %v1029_v10 = vmul.f32 %v6229_v16, %v6404_v62 }
 0x4b9   :  { %v1028_v11 = vmul.f32 %v6236_v19, %v6410_v45  ;;  %v5580_v1 = vpack.i.bf16 %v1035_v31, %v1034_v46  ;;  %v1037_v20 = vmul.f32 %v6328_v33, %v6410_v45  ;;  %v1038_v63 = vmul.f32 %v6337_v44, %v6404_v62  ;;  %v206_v31 = vld [vmem:[%s7505_s4 + $0x8] sm:$0xff] }
 0x4ba   :  { %v6395_v13 = vpop.f32.mrb[8].mxu1 }
 0x4bb   :  { %v4587_v14 = vpop.f32.mrb[9].mxu1  ;;  %v691_v43 = vsel %vm687_vm7, %v6395_v13, -inf }
 0x4bc   :  { %692 = vmax.xlane.f32.xlu1 %v691_v43  ;;  %v5565_v14 = vpack.i.bf16 %v1029_v10, %v1028_v11  ;;  %v1032_v43 = vmul.f32 %v6259_v38, %v6404_v62 }
 0x4be   :  { %v6399_v50 = vpop.f32.mrb[10].mxu1 }
 0x4bf   :  { %v4590_v56 = vpop.f32.mrb[11].mxu1  ;;  %v694_v59 = vsel %vm687_vm7, %v6399_v50, -inf }
 0x4c0   :  { %695 = vmax.xlane.f32.xlu1 %v694_v59  ;;  %v1033_v56 = vmul.f32 %v6254_v34, %v6415_v0 }
 0x4c2   :  { %v5575_v59 = vpack.i.bf16 %v1033_v56, %v1032_v43 }
 0x4ce   :  { %5546 = vrot.lane.b32.xlu0 %v5545_v17, %s5866_s27  ;;  %v1036_v17 = vmul.f32 %v6325_v26, %v6415_v0 }
 0x4d0   :  { %v5585_v21 = vpack.i.bf16 %v1037_v20, %v1036_v17  ;;  %v208_v17 = vld [vmem:[%s7505_s4 + $0x18] sm:$0xff] }
 0x4d1   :  { %5541 = vrot.lane.b32.xlu1 %v5540_v29, %s5866_s27  ;;  %v1039_v29 = vmul.f32 %v6352_v12, %v6415_v0 }
 0x4d2   :  { %5551 = vrot.lane.b32.xlu0 %v5550_v58, %s5865_s26 }
 0x4d3   :  { %v5590_v54 = vpack.i.bf16 %v1039_v29, %v1038_v63  ;;  %v209_v29 = vld [vmem:[%s7505_s4 + $0x20] sm:$0xff] }
 0x4d5   :  { %5571 = vrot.lane.b32.xlu1 %v5570_v39, %s5865_s26 }
 0x4d6   :  { %5556 = vrot.lane.b32.xlu0 %v5555_v41, %s5865_s26 }
 0x4d9   :  { %5596 = vrot.lane.b32.xlu1 %v5595_v7, %s5866_s27 }
 0x4da   :  { %5561 = vrot.lane.b32.xlu0 %v5560_v8, %s5865_s26 }
 0x4de   :  { %5566 = vrot.lane.b32.xlu0 %v5565_v14, %s5865_s26 }
 0x4e2   :  { %5576 = vrot.lane.b32.xlu0 %v5575_v59, %s5865_s26 }
 0x4e6   :  { %5581 = vrot.lane.b32.xlu0 %v5580_v1, %s5866_s27  ;;  %v207_v1 = vld [vmem:[%s7505_s4 + $0x10] sm:$0xff] }
 0x4e7   :  { %v6504_v63 = vpack.c.bf16 %v208_v17, %v207_v1 }
 0x4ea   :  { %5586 = vrot.lane.b32.xlu0 %v5585_v21, %s5866_s27 }
 0x4ee   :  { %5591 = vrot.lane.b32.xlu0 %v5590_v54, %s5866_s27  ;;  %v210_v54 = vld [vmem:[%s7505_s4 + $0x28] sm:$0xff] }
 0x545   :  { %v690_v58 = vpop.xlane.xlu0 %689 }
 0x546   :  { %v697_v2 = vsub.f32 %v6391_v9, %v690_v58 }
 0x548   :  { %v700_v41 = vmul.f32 1.442695, %v697_v2  ;;  %v211_v2 = vld [vmem:[%s7505_s4 + $0x30] sm:$0xff] }
 0x549   :  { %v5547_v60 = vpop.permute.xlu0 %5546  ;;  %v693_v36 = vpop.xlane.xlu1 %692 }
 0x54a   :  { %v698_v42 = vsub.f32 %v6395_v13, %v693_v36  ;;  %5740 = vpow2.f32 %v700_v41  ;;  %v5549_v14 = vunpack.i.h.bf16 %v5547_v60  ;;  %v5548_v43 = vunpack.i.l.bf16 %v5547_v60  ;;  %v205_v13 = vld [vmem:[%s7505_s4] sm:$0xff] }
 0x54b   :  { %v6489_v46 = vpack.c.bf16 %v206_v31, %v205_v13  ;;  %v6517_v60 = vpack.c.bf16 %v210_v54, %v209_v29 }
 0x54c   :  { %v702_v8 = vmul.f32 1.442695, %v698_v42 }
 0x54d   :  { %v6474_v39 = vpop.permute.xlu0 %5551  ;;  %v696_v40 = vpop.xlane.xlu1 %695 }
 0x54e   :  { %v699_v10 = vsub.f32 %v6399_v50, %v696_v40  ;;  %5742 = vpow2.f32 %v702_v8  ;;  %v5211_v50 = vpack.c.bf16 %v5549_v14, %v5548_v43  ;;  %v212_v40 = vld [vmem:[%s7505_s4 + $0x38] sm:$0xff] }
 0x54f   :  { %v6530_v42 = vpack.c.bf16 %v212_v40, %v211_v2  ;;  %v216_v14 = vld [vmem:[%s7505_s4 + $0x58] sm:$0xff] }
 0x550   :  { %v704_v9 = vmul.f32 1.442695, %v699_v10 }
 0x551   :  { %v5542_v47 = vpop.permute.xlu1 %5541  ;;  %v6477_v5 = vpop.permute.xlu0 %5556 }
 0x552   :  { %v5544_v7 = vunpack.i.h.bf16 %v5542_v47  ;;  %v5543_v11 = vunpack.i.l.bf16 %v5542_v47  ;;  %5744 = vpow2.f32 %v704_v9  ;;  %v213_v47 = vld [vmem:[%s7505_s4 + $0x40] sm:$0xff] }
 0x554   :  { %v5208_v56 = vpack.c.bf16 %v5544_v7, %v5543_v11  ;;  %v5741_v20 = vpop.eup %5740  ;;  %v214_v7 = vld [vmem:[%s7505_s4 + $0x48] sm:$0xff]  ;;  %v215_v11 = vld [vmem:[%s7505_s4 + $0x50] sm:$0xff] }
 0x555   :  { %v6480_v59 = vpop.permute.xlu0 %5561  ;;  %v6542_v10 = vpack.c.bf16 %v214_v7, %v213_v47  ;;  %v6552_v43 = vpack.c.bf16 %v216_v14, %v215_v11  ;;  %v6556_v31 = vpop.permute.xlu1 %5571 }
 0x556   :  { %5209 = vmatpush3.bf16.msra.mxu0 %v5208_v56 }
 0x557   :  { %5210 = vmatprep.subr.bf16.mxu0 %v5864_v55 }
 0x558   :  { %v5743_v58 = vpop.eup %5742 }
 0x559   :  { %v6498_v21 = vpop.permute.xlu0 %5566  ;;  %v5597_v47 = vpop.permute.xlu1 %5596 }
 0x55a   :  { %5212 = vmatpush3.bf16.msra.mxu0 %v5211_v50  ;;  %v5599_v7 = vunpack.i.h.bf16 %v5597_v47 }
 0x55b   :  { %5213 = vmatprep.subr.bf16.mxu0 %v5864_v55 }
 0x55c   :  { %v5745_v41 = vpop.eup %5744 }
 0x55d   :  { %4616 = vmatmul.mubr.msk.f32.vlgmr.msra.gmra.mrb[4].mxu0 %vm687_vm7, %v5741_v20  ;;  %v6519_v36 = vpop.permute.xlu0 %5576 }
 0x55e   :  { %5215 = vmatpush3.bf16.msra.mxu0 %v6489_v46  ;;  %4618 = vmatprep.mubr.msk.f32.mxu0 %vm5867_vm5, %v5868_v3 }
 0x55f   :  { %5216 = vmatprep.subr.bf16.mxu0 %v5864_v55 }
 0x561   :  { %4619 = vmatmul.mubr.msk.f32.gmra.mrb[6].mxu0 %vm687_vm7, %v5743_v58  ;;  %v5582_v8 = vpop.permute.xlu0 %5581 }
 0x562   :  { %5218 = vmatpush3.bf16.msra.mxu0 %v6504_v63  ;;  %4621 = vmatprep.mubr.msk.f32.mxu0 %vm5867_vm5, %v5868_v3  ;;  %v5584_v9 = vunpack.i.h.bf16 %v5582_v8  ;;  %v5583_v13 = vunpack.i.l.bf16 %v5582_v8 }
 0x563   :  { %5219 = vmatprep.subr.bf16.mxu0 %v5864_v55 }
 0x564   :  { %v5256_v50 = vpack.c.bf16 %v5584_v9, %v5583_v13 }
 0x565   :  { %4622 = vmatmul.mubr.msk.f32.gmra.mrb[8].mxu0 %vm687_vm7, %v5745_v41  ;;  %v5587_v56 = vpop.permute.xlu0 %5586 }
 0x566   :  { %5221 = vmatpush3.bf16.msra.mxu0 %v6517_v60  ;;  %4648 = vmatprep.mubr.msk.f32.mxu0 %vm5867_vm5, %v5868_v3  ;;  %v5589_v1 = vunpack.i.h.bf16 %v5587_v56  ;;  %v5588_v17 = vunpack.i.l.bf16 %v5587_v56 }
 0x567   :  { %5222 = vmatprep.subr.bf16.mxu0 %v5864_v55 }
 0x568   :  { %v5259_v54 = vpack.c.bf16 %v5589_v1, %v5588_v17 }
 0x569   :  { %v5592_v29 = vpop.permute.xlu0 %5591 }
 0x56a   :  { %5224 = vmatpush3.bf16.msra.mxu0 %v6530_v42  ;;  %v5594_v2 = vunpack.i.h.bf16 %v5592_v29  ;;  %v5593_v40 = vunpack.i.l.bf16 %v5592_v29 }
 0x56b   :  { %5225 = vmatprep.subr.bf16.mxu0 %v5864_v55 }
 0x56c   :  { %v5262_v8 = vpack.c.bf16 %v5594_v2, %v5593_v40  ;;  %v5554_v2 = vunpack.i.h.bf16 %v6474_v39  ;;  %v5553_v40 = vunpack.i.l.bf16 %v6474_v39  ;;  %v5558_v39 = vunpack.i.l.bf16 %v6477_v5 }
 0x56e   :  { %5227 = vmatpush3.bf16.msra.mxu0 %v6542_v10 }
 0x56f   :  { %5228 = vmatprep.subr.bf16.mxu0 %v5864_v55 }
 0x572   :  { %5230 = vmatpush3.bf16.msra.mxu0 %v6552_v43 }
 0x573   :  { %5255 = vmatprep.subr.bf16.mxu0 %v5864_v55 }
 0x575   :  { %4649 = vmatmul.mubr.msk.f32.vlgmr.msra.gmra.mrb[10].mxu0 %vm687_vm7, %v5741_v20  ;;  %v5598_v20 = vunpack.i.l.bf16 %v5597_v47 }
 0x576   :  { %5257 = vmatpush3.bf16.msra.mxu0 %v5256_v50  ;;  %4651 = vmatprep.mubr.msk.f32.mxu0 %vm5867_vm5, %v5868_v3 }
 0x577   :  { %5258 = vmatprep.subr.bf16.mxu0 %v5864_v55  ;;  %v5265_v11 = vpack.c.bf16 %v5599_v7, %v5598_v20 }
 0x579   :  { %4652 = vmatmul.mubr.msk.f32.gmra.mrb[12].mxu0 %vm687_vm7, %v5743_v58  ;;  %v217_v58 = vld [vmem:[%s7506_s5] sm:$0xf] }
 0x57a   :  { %5260 = vmatpush3.bf16.msra.mxu0 %v5259_v54  ;;  %4654 = vmatprep.mubr.msk.f32.mxu0 %vm5867_vm5, %v5868_v3 }
 0x57b   :  { %5261 = vmatprep.subr.bf16.mxu0 %v5864_v55  ;;  %4658 = vmatpush3.msk.msra.mxu1 %vm96_vm1, %v217_v58 }
 0x57c   :  { %5231 = vmatprep.subr.bf16.mxu1 %v5864_v55 }
 0x57d   :  { %4655 = vmatmul.mubr.msk.f32.gmra.mrb[14].mxu0 %vm687_vm7, %v5745_v41 }
 0x57e   :  { %5263 = vmatpush3.bf16.msra.mxu0 %v5262_v8  ;;  %4725 = vmatprep.mubr.msk.f32.mxu0 %vm5867_vm5, %v5868_v3  ;;  %v5232_v8 = vpack.c.bf16 %v5554_v2, %v5553_v40  ;;  %v5574_v40 = vunpack.i.h.bf16 %v6556_v31 }
 0x57f   :  { %5264 = vmatprep.subr.bf16.mxu0 %v5864_v55 }
 0x582   :  { %5266 = vmatpush3.bf16.msra.mxu0 %v5265_v11 }
 0x583   :  { %5267 = vmatprep.subr.bf16.mxu0 %v5864_v55 }
 0x630   :  { %v6577_v14 = vpop.f32.mrb[4].mxu0 }
 0x631   :  { %v4617_v41 = vpop.f32.mrb[5].mxu0 }
 0x632   :  { %v5559_v41 = vunpack.i.h.bf16 %v6477_v5  ;;  %v5563_v5 = vunpack.i.l.bf16 %v6480_v59 }
 0x634   :  { %v6579_v56 = vpop.f32.mrb[6].mxu0 }
 0x635   :  { %v4620_v9 = vpop.f32.mrb[7].mxu0 }
 0x638   :  { %v6581_v13 = vpop.f32.mrb[8].mxu0 }
 0x639   :  { %v4623_v50 = vpop.f32.mrb[9].mxu0 }
 0x63a   :  { %v5236_v50 = vpack.c.bf16 %v5559_v41, %v5558_v39 }
 0x648   :  { %v909_v1 = vpop.f32.mrb[10].mxu0 }
 0x649   :  { %5746 = vrcp.f32 %v909_v1  ;;  %v4650_v17 = vpop.f32.mrb[11].mxu0  ;;  %v5564_v1 = vunpack.i.h.bf16 %v6480_v59  ;;  %v5573_v59 = vunpack.i.l.bf16 %v6556_v31 }
 0x64b   :  { %v5240_v17 = vpack.c.bf16 %v5564_v1, %v5563_v5 }
 0x64c   :  { %v914_v29 = vpop.f32.mrb[12].mxu0 }
 0x64d   :  { %5748 = vrcp.f32 %v914_v29  ;;  %v4653_v54 = vpop.f32.mrb[13].mxu0  ;;  %v5569_v29 = vunpack.i.h.bf16 %v6498_v21 }
 0x64e   :  { %v5568_v54 = vunpack.i.l.bf16 %v6498_v21  ;;  %v5578_v21 = vunpack.i.l.bf16 %v6519_v36 }
 0x650   :  { %v919_v47 = vpop.f32.mrb[14].mxu0  ;;  %v5244_v2 = vpack.c.bf16 %v5569_v29, %v5568_v54 }
 0x651   :  { %5750 = vrcp.f32 %v919_v47  ;;  %v4656_v7 = vpop.f32.mrb[15].mxu0  ;;  %v5248_v47 = vpack.c.bf16 %v5574_v40, %v5573_v59  ;;  %v1045_v59 = vmul.f32 %v6379_v28, %v6415_v0 }
 0x652   :  { %v5579_v7 = vunpack.i.h.bf16 %v6519_v36 }
 0x653   :  { %v5747_v20 = vpop.eup %5746 }
 0x654   :  { %4660 = vmatmul.mubr.msk.f32.vlgmr.msra.gmra.mrb[12].mxu1 %vm926_vm8, %v5747_v20  ;;  %v5252_v20 = vpack.c.bf16 %v5579_v7, %v5578_v21  ;;  %v1042_v7 = vmul.f32 %v6383_v22, %v6415_v0  ;;  %v1043_v21 = vmul.f32 %v6385_v24, %v6410_v45 }
 0x655   :  { %5234 = vmatpush3.bf16.xpose.msk.msra.mxu1 %vm6301_vm6, %v5232_v8  ;;  %4662 = vmatprep.mubr.msk.f32.mxu1 %vm5867_vm5, %v5868_v3 }
 0x656   :  { %5235 = vmatprep.subr.bf16.mxu1 %v5864_v55 }
 0x657   :  { %v5749_v11 = vpop.eup %5748 }
 0x658   :  { %4663 = vmatmul.mubr.msk.f32.gmra.mrb[14].mxu1 %vm926_vm8, %v5749_v11 }
 0x659   :  { %4665 = vmatprep.mubr.msk.f32.mxu1 %vm5867_vm5, %v5868_v3 }
 0x65b   :  { %v5751_v9 = vpop.eup %5750 }
 0x65c   :  { %4666 = vmatmul.mubr.msk.f32.gmra.mrb[16].mxu1 %vm926_vm8, %v5751_v9 }
 0x65d   :  { %5238 = vmatpush3.bf16.xpose.msk.msra.mxu1 %vm6301_vm6, %v5236_v50  ;;  %4692 = vmatprep.mubr.msk.f32.mxu1 %vm5867_vm5, %v5868_v3 }
 0x65e   :  { %5239 = vmatprep.subr.bf16.mxu1 %v5864_v55 }
 0x665   :  { %5242 = vmatpush3.bf16.xpose.msk.msra.mxu1 %vm6301_vm6, %v5240_v17 }
 0x666   :  { %5243 = vmatprep.subr.bf16.mxu1 %v5864_v55 }
 0x66d   :  { %5246 = vmatpush3.bf16.xpose.msk.msra.mxu1 %vm6301_vm6, %v5244_v2 }
 0x66e   :  { %5247 = vmatprep.subr.bf16.mxu1 %v5864_v55 }
 0x675   :  { %5250 = vmatpush3.bf16.xpose.msk.msra.mxu1 %vm6301_vm6, %v5248_v47 }
 0x676   :  { %5251 = vmatprep.subr.bf16.mxu1 %v5864_v55 }
 0x67d   :  { %5254 = vmatpush3.bf16.xpose.msk.msra.mxu1 %vm6301_vm6, %v5252_v20  ;;  %v5600_v20 = vpack.i.bf16 %v1043_v21, %v1042_v7  ;;  %v1526_v7 = vld [vmem:[%s7507_s10 + $0x8] sm:$0xff] }
 0x67e   :  { %4767 = vmatprep.subr.mxu1 %v5868_v3 }
 0x684   :  { %4693 = vmatmul.mubr.msk.f32.vlgmr.msra.gmra.mrb[18].mxu1 %vm220_vm4, %v6410_v45 }
 0x685   :  { %4695 = vmatprep.mubr.msk.f32.mxu1 %vm5867_vm5, %v5868_v3  ;;  %4768 = vmatpush3.msk.msra.mxu1 %vm96_vm1, %v217_v58 }
 0x688   :  { %4696 = vmatmul.mubr.msk.f32.gmra.mrb[20].mxu1 %vm220_vm4, %v6404_v62 }
 0x689   :  { %4698 = vmatprep.mubr.msk.f32.mxu1 %vm5867_vm5, %v5868_v3 }
 0x68c   :  { %4699 = vmatmul.mubr.msk.f32.gmra.mrb[22].mxu1 %vm220_vm4, %v6415_v0 }
 0x68d   :  { %4769 = vmatprep.mubr.msk.f32.mxu1 %vm5867_vm5, %v5868_v3 }
 0x727   :  { %v1005_v36 = vpop.f32.mrb[12].mxu1 }
 0x728   :  { %v6636_v31 = vmul.f32 %v1005_v36, %v6577_v14  ;;  %v4661_v8 = vpop.f32.mrb[13].mxu1 }
 0x72b   :  { %v1010_v11 = vpop.f32.mrb[14].mxu1 }
 0x72c   :  { %v6639_v58 = vmul.f32 %v1010_v11, %v6579_v56  ;;  %v4664_v41 = vpop.f32.mrb[15].mxu1 }
 0x72f   :  { %v1015_v39 = vpop.f32.mrb[16].mxu1 }
 0x730   :  { %v6642_v9 = vmul.f32 %v1015_v39, %v6581_v13  ;;  %v4667_v50 = vpop.f32.mrb[17].mxu1  ;;  %v1044_v13 = vmul.f32 %v6387_v25, %v6404_v62 }
 0x732   :  { %v5605_v47 = vpack.i.bf16 %v1045_v59, %v1044_v13 }
 0x757   :  { %v1181_v1 = vpop.f32.mrb[18].mxu1 }
 0x758   :  { %v4694_v5 = vpop.f32.mrb[19].mxu1  ;;  %v1195_v17 = vsel %vm687_vm7, %v1181_v1, -inf }
 0x759   :  { %1196 = vmax.xlane.f32.xlu1 %v1195_v17 }
 0x75b   :  { %v1186_v29 = vpop.f32.mrb[20].mxu1 }
 0x75c   :  { %v4697_v54 = vpop.f32.mrb[21].mxu1  ;;  %v1198_v14 = vsel %vm687_vm7, %v1186_v29, -inf }
 0x75d   :  { %1199 = vmax.xlane.f32.xlu0 %v1198_v14 }
 0x75f   :  { %v1191_v2 = vpop.f32.mrb[22].mxu1 }
 0x760   :  { %v4700_v40 = vpop.f32.mrb[23].mxu1  ;;  %v1201_v56 = vsel %vm687_vm7, %v1191_v2, -inf }
 0x761   :  { %1202 = vmax.xlane.f32.xlu0 %v1201_v56 }
 0x76a   :  { %5606 = vrot.lane.b32.xlu1 %v5605_v47, %s5866_s27  ;;  %v1525_v47 = vld [vmem:[%s7507_s10] sm:$0xff] }
 0x76b   :  { %v5291_v21 = vpack.c.bf16 %v1526_v7, %v1525_v47 }
 0x76d   :  { %5292 = vmatprep.subr.bf16.mxu1 %v5291_v21 }
 0x777   :  { %5601 = vrot.lane.b32.xlu0 %v5600_v20, %s5866_s27 }
 0x7e6   :  { %v1197_v36 = vpop.xlane.xlu1 %1196 }
 0x7e7   :  { %v1204_v8 = vsub.f32 %v1181_v1, %v1197_v36 }
 0x7e9   :  { %v1207_v41 = vmul.f32 1.442695, %v1204_v8 }
 0x7ea   :  { %v1200_v11 = vpop.xlane.xlu0 %1199  ;;  %v5607_v50 = vpop.permute.xlu1 %5606 }
 0x7eb   :  { %v1205_v39 = vsub.f32 %v1186_v29, %v1200_v11  ;;  %5752 = vpow2.f32 %v1207_v41  ;;  %v5609_v0 = vunpack.i.h.bf16 %v5607_v50  ;;  %v5608_v56 = vunpack.i.l.bf16 %v5607_v50 }
 0x7ed   :  { %v1209_v17 = vmul.f32 1.442695, %v1205_v39  ;;  %v5271_v1 = vpack.c.bf16 %v5609_v0, %v5608_v56 }
 0x7ee   :  { %v1203_v62 = vpop.xlane.xlu0 %1202 }
 0x7ef   :  { %v1206_v54 = vsub.f32 %v1191_v2, %v1203_v62  ;;  %5754 = vpow2.f32 %v1209_v17 }
 0x7f1   :  { %v1211_v45 = vmul.f32 1.442695, %v1206_v54  ;;  %v1527_v54 = vld [vmem:[%s7507_s10 + $0x10] sm:$0xff] }
 0x7f2   :  { %v5602_v5 = vpop.permute.xlu0 %5601 }
 0x7f3   :  { %v5604_v14 = vunpack.i.h.bf16 %v5602_v5  ;;  %v5603_v40 = vunpack.i.l.bf16 %v5602_v5  ;;  %5756 = vpow2.f32 %v1211_v45 }
 0x7f5   :  { %v5268_v13 = vpack.c.bf16 %v5604_v14, %v5603_v40  ;;  %v5753_v59 = vpop.eup %5752  ;;  %v1528_v14 = vld [vmem:[%s7507_s10 + $0x18] sm:$0xff] }
 0x7f6   :  { %v5295_v56 = vpack.c.bf16 %v1528_v14, %v1527_v54 }
 0x7f7   :  { %5269 = vmatpush3.bf16.msra.mxu0 %v5268_v13 }
 0x7f8   :  { %5270 = vmatprep.subr.bf16.mxu0 %v5864_v55 }
 0x7f9   :  { %v5755_v29 = vpop.eup %5754 }
 0x7fb   :  { %5272 = vmatpush3.bf16.msra.mxu0 %v5271_v1 }
 0x7fc   :  { %5273 = vmatprep.subr.bf16.mxu0 %v5864_v55 }
 0x7fd   :  { %v5757_v2 = vpop.eup %5756 }
 0x7fe   :  { %4726 = vmatmul.mubr.msk.f32.vlgmr.msra.gmra.mrb[16].mxu0 %vm687_vm7, %v5753_v59 }
 0x7ff   :  { %5275 = vmatpush3.bf16.msra.mxu0 %v6489_v46  ;;  %4728 = vmatprep.mubr.msk.f32.mxu0 %vm5867_vm5, %v5868_v3 }
 0x800   :  { %5276 = vmatprep.subr.bf16.mxu0 %v5864_v55 }
 0x802   :  { %4729 = vmatmul.mubr.msk.f32.gmra.mrb[18].mxu0 %vm687_vm7, %v5755_v29 }
 0x803   :  { %5278 = vmatpush3.bf16.msra.mxu0 %v6504_v63  ;;  %4731 = vmatprep.mubr.msk.f32.mxu0 %vm5867_vm5, %v5868_v3 }
 0x804   :  { %5279 = vmatprep.subr.bf16.mxu0 %v5864_v55 }
 0x806   :  { %4732 = vmatmul.mubr.msk.f32.gmra.mrb[20].mxu0 %vm687_vm7, %v5757_v2 }
 0x807   :  { %5281 = vmatpush3.bf16.msra.mxu0 %v6517_v60  ;;  %4758 = vmatprep.mubr.msk.f32.mxu0 %vm5867_vm5, %v5868_v3 }
 0x808   :  { %5282 = vmatprep.subr.bf16.mxu0 %v5864_v55 }
 0x80b   :  { %5284 = vmatpush3.bf16.msra.mxu0 %v6530_v42 }
 0x80c   :  { %5285 = vmatprep.subr.bf16.mxu0 %v5864_v55 }
 0x80f   :  { %5287 = vmatpush3.bf16.msra.mxu0 %v6542_v10 }
 0x810   :  { %5288 = vmatprep.subr.bf16.mxu0 %v5864_v55 }
 0x813   :  { %5290 = vmatpush3.bf16.msra.mxu0 %v6552_v43 }
 0x816   :  { %4759 = vmatmul.mubr.msk.f32.vlgmr.msra.gmra.mrb[22].mxu0 %vm687_vm7, %v5753_v59 }
 0x817   :  { %4761 = vmatprep.mubr.msk.f32.mxu0 %vm5867_vm5, %v5868_v3 }
 0x81a   :  { %4762 = vmatmul.mubr.msk.f32.gmra.mrb[24].mxu0 %vm687_vm7, %v5755_v29 }
 0x81b   :  { %4764 = vmatprep.mubr.msk.f32.mxu0 %vm5867_vm5, %v5868_v3 }
 0x81e   :  { %4765 = vmatmul.mubr.msk.f32.gmra.mrb[26].mxu0 %vm687_vm7, %v5757_v2 }
 0x8d1   :  { %v1336_v20 = vpop.f32.mrb[16].mxu0 }
 0x8d2   :  { %v4727_v36 = vpop.f32.mrb[17].mxu0 }
 0x8d5   :  { %v1341_v8 = vpop.f32.mrb[18].mxu0 }
 0x8d6   :  { %v4730_v11 = vpop.f32.mrb[19].mxu0 }
 0x8d9   :  { %v1346_v41 = vpop.f32.mrb[20].mxu0 }
 0x8da   :  { %v4733_v62 = vpop.f32.mrb[21].mxu0 }
 0x8e9   :  { %v1416_v39 = vpop.f32.mrb[22].mxu0 }
 0x8ea   :  { %5758 = vrcp.f32 %v1416_v39  ;;  %v4760_v50 = vpop.f32.mrb[23].mxu0 }
 0x8ed   :  { %v1421_v5 = vpop.f32.mrb[24].mxu0 }
 0x8ee   :  { %5760 = vrcp.f32 %v1421_v5  ;;  %v4763_v17 = vpop.f32.mrb[25].mxu0 }
 0x8f1   :  { %v1426_v40 = vpop.f32.mrb[26].mxu0 }
 0x8f2   :  { %5762 = vrcp.f32 %v1426_v40  ;;  %v4766_v0 = vpop.f32.mrb[27].mxu0 }
 0x8f4   :  { %v5759_v13 = vpop.eup %5758 }
 0x8f5   :  { %4770 = vmatmul.mubr.msk.f32.vlgmr.msra.gmra.mrb[24].mxu1 %vm926_vm8, %v5759_v13 }
 0x8f6   :  { %4772 = vmatprep.mubr.msk.f32.mxu1 %vm5867_vm5, %v5868_v3  ;;  %5294 = vmatpush3.bf16.msra.mxu1 %v5291_v21 }
 0x8f7   :  { %5296 = vmatprep.subr.bf16.mxu1 %v5295_v56 }
 0x8f8   :  { %v5761_v45 = vpop.eup %5760 }
 0x8f9   :  { %4773 = vmatmul.mubr.msk.f32.gmra.mrb[26].mxu1 %vm926_vm8, %v5761_v45 }
 0x8fa   :  { %4775 = vmatprep.mubr.msk.f32.mxu1 %vm5867_vm5, %v5868_v3  ;;  %5298 = vmatpush3.bf16.msra.mxu1 %v5295_v56 }
 0x8fc   :  { %v5763_v1 = vpop.eup %5762 }
 0x8fd   :  { %4776 = vmatmul.mubr.msk.f32.gmra.mrb[28].mxu1 %vm926_vm8, %v5763_v1  ;;  %v5860_v1 = vld [vmem:[%s7530_s30 + $0x10] sm:$0xff] }
 0x8fe   :  { %4786 = vmatprep.mubr.msk.f32.mxu1 %vm220_vm4, %v6636_v31 }
 0x901   :  { %4787 = vmatmul.mubr.msk.f32.vlgmr.msra.gmra.mrb[30].mxu1 %vm220_vm4, %v6639_v58  ;;  %v6717_v58 = vld [vmem:[%s7508_s11] ss:$0 sm:$0xff] }
 0x902   :  { %4789 = vmatprep.mubr.msk.f32.mxu1 %vm220_vm4, %v6642_v9 }
 0x9c8   :  { %v1508_v59 = vpop.f32.mrb[24].mxu1 }
 0x9c9   :  { %v1522_v29 = vmul.f32 %v1508_v59, %v1336_v20  ;;  %v4771_v2 = vpop.f32.mrb[25].mxu1 }
 0x9cb   :  { %4790 = vmatmul.mubr.msk.f32.gmra.mrb[32].mxu1 %vm220_vm4, %v1522_v29 }
 0x9cc   :  { %v1513_v47 = vpop.f32.mrb[26].mxu1 }
 0x9cd   :  { %v1523_v7 = vmul.f32 %v1513_v47, %v1341_v8  ;;  %v4774_v21 = vpop.f32.mrb[27].mxu1 }
 0x9cf   :  { %4792 = vmatprep.mubr.msk.f32.mxu1 %vm220_vm4, %v1523_v7 }
 0x9d0   :  { %v1518_v36 = vpop.f32.mrb[28].mxu1 }
 0x9d1   :  { %v1524_v11 = vmul.f32 %v1518_v36, %v1346_v41  ;;  %v4777_v62 = vpop.f32.mrb[29].mxu1 }
 0x9d3   :  { %4793 = vmatmul.mubr.msk.f32.gmra.mrb[34].mxu1 %vm220_vm4, %v1524_v11 }
 0x9d4   :  { %v4788_v31 = vpop.f32.mrb[30].mxu1 }
 0x9d5   :  { %v1643_v9 = vadd.f32 %v4788_v31, %v6043_v30  ;;  %v1613_v20 = vpop.f32.mrb[31].mxu1  ;;  %v1765_v31 = vld [vmem:[%s7509_s14] sm:$0xff] }
 0x9d6   :  { %v1642_v39 = vadd.f32 %v1613_v20, %v6045_v32  ;;  %v1767_v20 = vld [vmem:[%s7509_s14 + $0x10] sm:$0xff] }
 0x9d7   :  { %v6722_v8 = vadd.f32 %v6717_v58, %v1643_v9  ;;  %v1766_v9 = vld [vmem:[%s7509_s14 + $0x8] sm:$0xff] }
 0x9d8   :  { %v6725_v50 = vadd.f32 %v6717_v58, %v1642_v39  ;;  %v5299_v39 = vpack.c.bf16 %v1766_v9, %v1765_v31 }
 0x9d9   :  { %v1666_v41 = vsel %vm220_vm4, %v6722_v8, 0.0 }
 0x9da   :  { %1667 = vadd.xlane.f32.xlu0 %v1666_v41  ;;  %v1663_v5 = vsel %vm220_vm4, %v6725_v50, 0.0  ;;  %v1768_v41 = vld [vmem:[%s7509_s14 + $0x18] sm:$0xff]  ;;  %5300 = vmatprep.subr.bf16.mxu1 %v5299_v39 }
 0x9db   :  { %1664 = vadd.xlane.f32.xlu1 %v1663_v5  ;;  %v5303_v5 = vpack.c.bf16 %v1768_v41, %v1767_v20  ;;  %5302 = vmatpush3.bf16.msra.mxu1 %v5299_v39 }
 0x9dd   :  { %5304 = vmatprep.subr.bf16.mxu1 %v5303_v5 }
 0x9df   :  { %5306 = vmatpush3.bf16.msra.mxu1 %v5303_v5 }
 0xa67   :  { %v1668_v17 = vpop.xlane.xlu0 %1667 }
 0xa68   :  { %v1682_v54 = vmul.f32 0.03125, %v1668_v17  ;;  %v1665_v40 = vpop.xlane.xlu1 %1664 }
 0xa69   :  { %v1681_v13 = vmul.f32 0.03125, %v1665_v40 }
 0xa6a   :  { %v6732_v30 = vsub.f32 %v6722_v8, %v1682_v54 }
 0xa6b   :  { %v1687_v2 = vsub.f32 %v6725_v50, %v1681_v13 }
 0xa6c   :  { %v1694_v32 = vmul.f32 %v6732_v30, %v6732_v30 }
 0xa6d   :  { %v1693_v11 = vmul.f32 %v1687_v2, %v1687_v2 }
 0xa6e   :  { %v1702_v14 = vsel %vm220_vm4, %v1694_v32, 0.0 }
 0xa6f   :  { %1703 = vadd.xlane.f32.xlu0 %v1702_v14  ;;  %v1699_v62 = vsel %vm220_vm4, %v1693_v11, 0.0 }
 0xa9e   :  { %v4791_v0 = vpop.f32.mrb[32].mxu1 }
 0xa9f   :  { %v1623_v56 = vpop.f32.mrb[33].mxu1  ;;  %v1645_v45 = vadd.f32 %v4791_v0, %v6051_v37 }
 0xaa0   :  { %v1644_v59 = vadd.f32 %v5860_v1, %v1623_v56 }
 0xaa1   :  { %v6746_v47 = vadd.f32 %v6717_v58, %v1645_v45 }
 0xaa2   :  { %v6742_v29 = vadd.f32 %v6717_v58, %v1644_v59 }
 0xaa3   :  { %v1672_v37 = vsel %vm220_vm4, %v6746_v47, 0.0 }
 0xaa4   :  { %v1669_v7 = vsel %vm220_vm4, %v6742_v29, 0.0 }
 0xaa5   :  { %1670 = vadd.xlane.f32.xlu1 %v1669_v7 }
 0xaa6   :  { %v4794_v21 = vpop.f32.mrb[34].mxu1 }
 0xaa7   :  { %v1633_v36 = vpop.f32.mrb[35].mxu1  ;;  %v1647_v7 = vadd.f32 %v5860_v1, %v4794_v21 }
 0xaa8   :  { %v1646_v40 = vadd.f32 %v1633_v36, %v6049_v35 }
 0xaa9   :  { %1673 = vadd.xlane.f32.xlu1 %v1672_v37  ;;  %v6781_v9 = vadd.f32 %v6717_v58, %v1647_v7  ;;  %v1946_v7 = vld [vmem:[%s7512_s16 + $0x18] sm:$0xff] }
 0xaaa   :  { %v6772_v37 = vadd.f32 %v6717_v58, %v1646_v40  ;;  %v6792_v58 = vld [vmem:[%s7510_s12] ss:$0 sm:$0xff] }
 0xaab   :  { %v1678_v39 = vsel %vm220_vm4, %v6781_v9, 0.0 }
 0xaac   :  { %v1675_v21 = vsel %vm220_vm4, %v6772_v37, 0.0 }
 0xaad   :  { %1700 = vadd.xlane.f32.xlu1 %v1699_v62 }
 0xafc   :  { %v1704_v17 = vpop.xlane.xlu0 %1703 }
 0xafd   :  { %v1718_v54 = vmul.f32 0.03125, %v1704_v17 }
 0xaff   :  { %v1724_v56 = vadd.f32 1e-06, %v1718_v54 }
 0xb01   :  { %5764 = vrsqrt.f32 %v1724_v56 }
 0xb0b   :  { %v5765_v41 = vpop.eup %5764 }
 0xb0c   :  { %v1736_v5 = vmul.f32 %v5765_v41, %v6732_v30 }
 0xb32   :  { %v1671_v32 = vpop.xlane.xlu1 %1670 }
 0xb33   :  { %v1683_v14 = vmul.f32 0.03125, %v1671_v32  ;;  %v1748_v32 = vmul.f32 %v6792_v58, %v1736_v5 }
 0xb35   :  { %v6767_v0 = vsub.f32 %v6742_v29, %v1683_v14  ;;  %v6798_v14 = vld [vmem:[%s7511_s13] ss:$0 sm:$0xff] }
 0xb36   :  { %v1674_v13 = vpop.xlane.xlu1 %1673  ;;  %v1760_v30 = vadd.f32 %v6798_v14, %v1748_v32 }
 0xb37   :  { %v1684_v45 = vmul.f32 0.03125, %v1674_v13  ;;  %v1695_v59 = vmul.f32 %v6767_v0, %v6767_v0  ;;  %v1944_v13 = vld [vmem:[%s7512_s16 + $0x8] sm:$0xff] }
 0xb39   :  { %v6775_v11 = vsub.f32 %v6746_v47, %v1684_v45  ;;  %v1705_v62 = vsel %vm220_vm4, %v1695_v59, 0.0  ;;  %v1945_v59 = vld [vmem:[%s7512_s16 + $0x10] sm:$0xff] }
 0xb3a   :  { %1706 = vadd.xlane.f32.xlu1 %v1705_v62  ;;  %v1701_v35 = vpop.xlane.xlu1 %1700  ;;  %v5311_v62 = vpack.c.bf16 %v1946_v7, %v1945_v59 }
 0xb3b   :  { %v1717_v36 = vmul.f32 0.03125, %v1701_v35  ;;  %v1696_v31 = vmul.f32 %v6775_v11, %v6775_v11  ;;  %v1947_v35 = vld [vmem:[%s7512_s16 + $0x20] sm:$0xff] }
 0xb3d   :  { %v1723_v20 = vadd.f32 1e-06, %v1717_v36  ;;  %v1708_v1 = vsel %vm220_vm4, %v1696_v31, 0.0  ;;  %v1948_v36 = vld [vmem:[%s7512_s16 + $0x28] sm:$0xff] }
 0xb3e   :  { %1709 = vadd.xlane.f32.xlu0 %v1708_v1  ;;  %1676 = vadd.xlane.f32.xlu1 %v1675_v21  ;;  %v5315_v31 = vpack.c.bf16 %v1948_v36, %v1947_v35  ;;  %v1950_v1 = vld [vmem:[%s7512_s16 + $0x38] sm:$0xff] }
 0xb3f   :  { %5766 = vrsqrt.f32 %v1723_v20  ;;  %v1949_v20 = vld [vmem:[%s7512_s16 + $0x30] sm:$0xff] }
 0xb40   :  { %v5319_v21 = vpack.c.bf16 %v1950_v1, %v1949_v20 }
 0xb42   :  { %1679 = vadd.xlane.f32.xlu0 %v1678_v39 }
 0xb49   :  { %v5767_v17 = vpop.eup %5766 }
 0xb4a   :  { %v1735_v54 = vmul.f32 %v5767_v17, %v1687_v2  ;;  %v1943_v2 = vld [vmem:[%s7512_s16] sm:$0xff] }
 0xb4b   :  { %v5307_v45 = vpack.c.bf16 %v1944_v13, %v1943_v2 }
 0xb4c   :  { %v1747_v40 = vmul.f32 %v6792_v58, %v1735_v54 }
 0xb4d   :  { %5308 = vmatprep.subr.bf16.mxu0 %v5307_v45 }
 0xb4e   :  { %v1759_v56 = vadd.f32 %v6798_v14, %v1747_v40  ;;  %5310 = vmatpush3.bf16.msra.mxu0 %v5307_v45 }
 0xb4f   :  { %5312 = vmatprep.subr.bf16.mxu0 %v5311_v62 }
 0xb50   :  { %4803 = vmatprep.mubr.msk.f32.mxu1 %vm220_vm4, %v1759_v56 }
 0xb51   :  { %4804 = vmatmul.mubr.msk.f32.vlgmr.msra.gmra.mrb[36].mxu1 %vm220_vm4, %v1760_v30 }
 0xb52   :  { %5314 = vmatpush3.bf16.msra.mxu0 %v5311_v62 }
 0xb53   :  { %5316 = vmatprep.subr.bf16.mxu0 %v5315_v31 }
 0xb56   :  { %5318 = vmatpush3.bf16.msra.mxu0 %v5315_v31 }
 0xb57   :  { %5320 = vmatprep.subr.bf16.mxu0 %v5319_v21 }
 0xb5a   :  { %5322 = vmatpush3.bf16.msra.mxu0 %v5319_v21 }
 0xb5b   :  { %5331 = vmatprep.subr.bf16.mxu0 %v5864_v55 }
 0xbc7   :  { %v1707_v39 = vpop.xlane.xlu1 %1706 }
 0xbc8   :  { %v1719_v41 = vmul.f32 0.03125, %v1707_v39 }
 0xbca   :  { %v1725_v5 = vadd.f32 1e-06, %v1719_v41 }
 0xbcb   :  { %v1710_v17 = vpop.xlane.xlu0 %1709  ;;  %v1677_v54 = vpop.xlane.xlu1 %1676 }
 0xbcc   :  { %5768 = vrsqrt.f32 %v1725_v5  ;;  %v1720_v32 = vmul.f32 0.03125, %v1710_v17  ;;  %v1685_v40 = vmul.f32 0.03125, %v1677_v54  ;;  %v6845_v17 = vld [vmem:[%s7513_s15] ss:$0 sm:$0xff] }
 0xbce   :  { %v1726_v56 = vadd.f32 1e-06, %v1720_v32  ;;  %v1691_v30 = vsub.f32 %v6772_v37, %v1685_v40 }
 0xbcf   :  { %v1680_v2 = vpop.xlane.xlu0 %1679 }
 0xbd0   :  { %5770 = vrsqrt.f32 %v1726_v56  ;;  %v1686_v13 = vmul.f32 0.03125, %v1680_v2  ;;  %v1697_v45 = vmul.f32 %v1691_v30, %v1691_v30 }
 0xbd2   :  { %v1692_v59 = vsub.f32 %v6781_v9, %v1686_v13  ;;  %v1711_v7 = vsel %vm220_vm4, %v1697_v45, 0.0 }
 0xbd3   :  { %1712 = vadd.xlane.f32.xlu1 %v1711_v7 }
 0xbd4   :  { %v1698_v62 = vmul.f32 %v1692_v59, %v1692_v59 }
 0xbd6   :  { %v5769_v35 = vpop.eup %5768  ;;  %v1714_v36 = vsel %vm220_vm4, %v1698_v62, 0.0 }
 0xbd7   :  { %1715 = vadd.xlane.f32.xlu0 %v1714_v36  ;;  %v1737_v31 = vmul.f32 %v5769_v35, %v6767_v0 }
 0xbd9   :  { %v1749_v20 = vmul.f32 %v6792_v58, %v1737_v31 }
 0xbda   :  { %v5771_v1 = vpop.eup %5770 }
 0xbdb   :  { %v1761_v21 = vadd.f32 %v6798_v14, %v1749_v20  ;;  %v1738_v39 = vmul.f32 %v5771_v1, %v6775_v11 }
 0xbdd   :  { %4806 = vmatprep.mubr.msk.f32.mxu1 %vm220_vm4, %v1761_v21  ;;  %v1750_v41 = vmul.f32 %v6792_v58, %v1738_v39 }
 0xbdf   :  { %v1762_v5 = vadd.f32 %v6798_v14, %v1750_v41 }
 0xbe1   :  { %4807 = vmatmul.mubr.msk.f32.gmra.mrb[38].mxu1 %vm220_vm4, %v1762_v5 }
 0xc24   :  { %v4805_v0 = vpop.f32.mrb[36].mxu1 }
 0xc25   :  { %v1866_v54 = vadd.f32 %v4805_v0, %v6845_v17  ;;  %v1860_v32 = vpop.f32.mrb[37].mxu1 }
 0xc26   :  { %v1861_v40 = vadd.f32 %v6845_v17, %v1860_v32 }
 0xc27   :  { %v1890_v11 = vmul.f32 %v1866_v54, %v1866_v54 }
 0xc28   :  { %v1889_v56 = vmul.f32 %v1861_v40, %v1861_v40 }
 0xc29   :  { %v1896_v2 = vmul.f32 %v1890_v11, %v1866_v54 }
 0xc2a   :  { %v1895_v13 = vmul.f32 %v1889_v56, %v1861_v40 }
 0xc2b   :  { %v1902_v45 = vmul.f32 0.044715, %v1896_v2 }
 0xc2c   :  { %v1901_v7 = vmul.f32 0.044715, %v1895_v13 }
 0xc2d   :  { %v1908_v62 = vadd.f32 %v1902_v45, %v1866_v54 }
 0xc2e   :  { %v1907_v35 = vadd.f32 %v1901_v7, %v1861_v40 }
 0xc2f   :  { %v1914_v36 = vmul.f32 0.7978846, %v1908_v62 }
 0xc30   :  { %v1913_v31 = vmul.f32 0.7978846, %v1907_v35 }
 0xc31   :  { %5772 = vtanh.f32 %v1914_v36 }
 0xc32   :  { %5774 = vtanh.f32 %v1913_v31 }
 0xc3b   :  { %v5773_v20 = vpop.eup %5772 }
 0xc3c   :  { %v5775_v1 = vpop.eup %5774  ;;  %v1926_v21 = vadd.f32 1.0, %v5773_v20 }
 0xc3d   :  { %v1925_v39 = vadd.f32 1.0, %v5775_v1 }
 0xc3e   :  { %v1932_v41 = vmul.f32 0.5, %v1926_v21 }
 0xc3f   :  { %v1931_v5 = vmul.f32 0.5, %v1925_v39 }
 0xc40   :  { %v1938_v32 = vmul.f32 %v1932_v41, %v1866_v54 }
 0xc41   :  { %v1937_v0 = vmul.f32 %v1931_v5, %v1861_v40 }
 0xc43   :  { %4828 = vmatprep.mubr.msk.f32.mxu0 %vm1951_vm9, %v1937_v0 }
 0xc44   :  { %4829 = vmatmul.mubr.msk.f32.vlgmr.msra.gmra.mrb[28].mxu0 %vm1951_vm9, %v1938_v32 }
 0xc60   :  { %v1713_v11 = vpop.xlane.xlu1 %1712 }
 0xc61   :  { %v1721_v56 = vmul.f32 0.03125, %v1713_v11 }
 0xc63   :  { %v1727_v2 = vadd.f32 1e-06, %v1721_v56 }
 0xc64   :  { %v1716_v13 = vpop.xlane.xlu0 %1715 }
 0xc65   :  { %5776 = vrsqrt.f32 %v1727_v2  ;;  %v1722_v45 = vmul.f32 0.03125, %v1716_v13 }
 0xc67   :  { %v1728_v7 = vadd.f32 1e-06, %v1722_v45 }
 0xc69   :  { %5778 = vrsqrt.f32 %v1728_v7 }
 0xc6f   :  { %v5777_v62 = vpop.eup %5776 }
 0xc70   :  { %v1739_v35 = vmul.f32 %v5777_v62, %v1691_v30 }
 0xc72   :  { %v1751_v36 = vmul.f32 %v6792_v58, %v1739_v35 }
 0xc73   :  { %v5779_v31 = vpop.eup %5778 }
 0xc74   :  { %v1763_v40 = vadd.f32 %v6798_v14, %v1751_v36  ;;  %v1740_v54 = vmul.f32 %v5779_v31, %v1692_v59 }
 0xc76   :  { %4809 = vmatprep.mubr.msk.f32.mxu1 %vm220_vm4, %v1763_v40  ;;  %v1752_v20 = vmul.f32 %v6792_v58, %v1740_v54 }
 0xc78   :  { %v1764_v1 = vadd.f32 %v6798_v14, %v1752_v20 }
 0xc7a   :  { %4810 = vmatmul.mubr.msk.f32.gmra.mrb[40].mxu1 %vm220_vm4, %v1764_v1  ;;  %v6864_v1 = vld [vmem:[%s7514_s17] ss:$0 sm:$0xff] }
 0xcb4   :  { %v4808_v21 = vpop.f32.mrb[38].mxu1 }
 0xcb5   :  { %v1876_v39 = vadd.f32 %v4808_v21, %v6845_v17  ;;  %v1870_v41 = vpop.f32.mrb[39].mxu1 }
 0xcb6   :  { %v1871_v30 = vadd.f32 %v6845_v17, %v1870_v41 }
 0xcb7   :  { %v1892_v5 = vmul.f32 %v1876_v39, %v1876_v39 }
 0xcb8   :  { %v1891_v0 = vmul.f32 %v1871_v30, %v1871_v30 }
 0xcb9   :  { %v1898_v32 = vmul.f32 %v1892_v5, %v1876_v39 }
 0xcba   :  { %v1897_v11 = vmul.f32 %v1891_v0, %v1871_v30 }
 0xcbb   :  { %v1904_v56 = vmul.f32 0.044715, %v1898_v32 }
 0xcbc   :  { %v1903_v59 = vmul.f32 0.044715, %v1897_v11 }
 0xcbd   :  { %v1910_v2 = vadd.f32 %v1904_v56, %v1876_v39 }
 0xcbe   :  { %v1909_v13 = vadd.f32 %v1903_v59, %v1871_v30 }
 0xcbf   :  { %v1916_v45 = vmul.f32 0.7978846, %v1910_v2 }
 0xcc0   :  { %v1915_v58 = vmul.f32 0.7978846, %v1909_v13 }
 0xcc1   :  { %5780 = vtanh.f32 %v1916_v45 }
 0xcc2   :  { %5782 = vtanh.f32 %v1915_v58 }
 0xccb   :  { %v5781_v14 = vpop.eup %5780 }
 0xccc   :  { %v5783_v7 = vpop.eup %5782  ;;  %v1928_v62 = vadd.f32 1.0, %v5781_v14 }
 0xccd   :  { %v1927_v35 = vadd.f32 1.0, %v5783_v7 }
 0xcce   :  { %v1934_v36 = vmul.f32 0.5, %v1928_v62 }
 0xccf   :  { %v1933_v31 = vmul.f32 0.5, %v1927_v35 }
 0xcd0   :  { %v1940_v54 = vmul.f32 %v1934_v36, %v1876_v39 }
 0xcd1   :  { %v1939_v40 = vmul.f32 %v1933_v31, %v1871_v30 }
 0xcd3   :  { %4831 = vmatprep.mubr.msk.f32.mxu0 %vm1951_vm9, %v1939_v40 }
 0xcd4   :  { %4832 = vmatmul.mubr.msk.f32.gmra.mrb[30].mxu0 %vm1951_vm9, %v1940_v54 }
 0xd17   :  { %v4830_v20 = vpop.f32.mrb[28].mxu0 }
 0xd18   :  { %v2066_v21 = vadd.f32 %v4830_v20, %v6722_v8  ;;  %v2036_v41 = vpop.f32.mrb[29].mxu0 }
 0xd19   :  { %v2065_v5 = vadd.f32 %v2036_v41, %v6725_v50 }
 0xd1a   :  { %v6869_v0 = vadd.f32 %v6864_v1, %v2066_v21 }
 0xd1b   :  { %v6872_v39 = vadd.f32 %v6864_v1, %v2065_v5 }
 0xd1c   :  { %v2091_v30 = vsel %vm220_vm4, %v6869_v0, 0.0 }
 0xd1d   :  { %2092 = vadd.xlane.f32.xlu0 %v2091_v30  ;;  %v2088_v32 = vsel %vm220_vm4, %v6872_v39, 0.0 }
 0xd1e   :  { %2089 = vadd.xlane.f32.xlu1 %v2088_v32 }
 0xd4d   :  { %v4811_v11 = vpop.f32.mrb[40].mxu1 }
 0xd4e   :  { %v1886_v8 = vadd.f32 %v4811_v11, %v6845_v17  ;;  %v1880_v56 = vpop.f32.mrb[41].mxu1 }
 0xd4f   :  { %v1881_v50 = vadd.f32 %v6845_v17, %v1880_v56 }
 0xd50   :  { %v1894_v59 = vmul.f32 %v1886_v8, %v1886_v8 }
 0xd51   :  { %v1893_v2 = vmul.f32 %v1881_v50, %v1881_v50 }
 0xd52   :  { %v1900_v13 = vmul.f32 %v1894_v59, %v1886_v8 }
 0xd53   :  { %v1899_v45 = vmul.f32 %v1893_v2, %v1881_v50 }
 0xd54   :  { %v1906_v58 = vmul.f32 0.044715, %v1900_v13 }
 0xd55   :  { %v1905_v14 = vmul.f32 0.044715, %v1899_v45 }
 0xd56   :  { %v1912_v7 = vadd.f32 %v1906_v58, %v1886_v8 }
 0xd57   :  { %v1911_v62 = vadd.f32 %v1905_v14, %v1881_v50 }
 0xd58   :  { %v1918_v35 = vmul.f32 0.7978846, %v1912_v7 }
 0xd59   :  { %v1917_v36 = vmul.f32 0.7978846, %v1911_v62 }
 0xd5a   :  { %5784 = vtanh.f32 %v1918_v35 }
 0xd5b   :  { %5786 = vtanh.f32 %v1917_v36 }
 0xd64   :  { %v5785_v31 = vpop.eup %5784 }
 0xd65   :  { %v5787_v40 = vpop.eup %5786  ;;  %v1930_v54 = vadd.f32 1.0, %v5785_v31  ;;  %v4094_v31 = vld [vmem:[%s7531_s25 + $0x20] sm:$0xff] }
 0xd66   :  { %v1929_v20 = vadd.f32 1.0, %v5787_v40  ;;  %v4095_v40 = vld [vmem:[%s7531_s25 + $0x28] sm:$0xff] }
 0xd67   :  { %v1936_v21 = vmul.f32 0.5, %v1930_v54  ;;  %v5323_v54 = vpack.c.bf16 %v4095_v40, %v4094_v31 }
 0xd68   :  { %v1935_v41 = vmul.f32 0.5, %v1929_v20  ;;  %v4096_v20 = vld [vmem:[%s7531_s25 + $0x30] sm:$0xff] }
 0xd69   :  { %v1942_v17 = vmul.f32 %v1936_v21, %v1886_v8  ;;  %5324 = vmatprep.subr.bf16.mxu1 %v5323_v54  ;;  %v4097_v21 = vld [vmem:[%s7531_s25 + $0x38] sm:$0xff] }
 0xd6a   :  { %v1941_v5 = vmul.f32 %v1935_v41, %v1881_v50  ;;  %5326 = vmatpush3.bf16.msra.mxu1 %v5323_v54  ;;  %v5327_v41 = vpack.c.bf16 %v4097_v21, %v4096_v20 }
 0xd6c   :  { %4834 = vmatprep.mubr.msk.f32.mxu0 %vm1951_vm9, %v1941_v5  ;;  %5328 = vmatprep.subr.bf16.mxu1 %v5327_v41 }
 0xd6d   :  { %4835 = vmatmul.mubr.msk.f32.gmra.mrb[32].mxu0 %vm1951_vm9, %v1942_v17 }
 0xd6e   :  { %4878 = vmatprep.mubr.msk.f32.mxu0 %vm5867_vm5, %v5868_v3  ;;  %5330 = vmatpush3.bf16.msra.mxu1 %v5327_v41 }
 0xd6f   :  { %5355 = vmatprep.subr.bf16.mxu1 %v5864_v55 }
 0xda7   :  { %v4833_v30 = vpop.f32.mrb[30].mxu0 }
 0xda8   :  { %v2068_v32 = vadd.f32 %v4833_v30, %v6746_v47  ;;  %v2046_v11 = vpop.f32.mrb[31].mxu0 }
 0xda9   :  { %v2067_v56 = vadd.f32 %v2046_v11, %v6742_v29 }
 0xdaa   :  { %v6887_v59 = vadd.f32 %v6864_v1, %v2068_v32  ;;  %v2093_v2 = vpop.xlane.xlu0 %2092 }
 0xdab   :  { %v6890_v50 = vadd.f32 %v6864_v1, %v2067_v56  ;;  %v2107_v8 = vmul.f32 0.03125, %v2093_v2  ;;  %v2090_v13 = vpop.xlane.xlu1 %2089 }
 0xdac   :  { %v2106_v45 = vmul.f32 0.03125, %v2090_v13  ;;  %v2097_v58 = vsel %vm220_vm4, %v6887_v59, 0.0 }
 0xdad   :  { %v2113_v14 = vsub.f32 %v6869_v0, %v2107_v8  ;;  %2098 = vadd.xlane.f32.xlu0 %v2097_v58  ;;  %v2094_v47 = vsel %vm220_vm4, %v6890_v50, 0.0 }
 0xdae   :  { %v2112_v29 = vsub.f32 %v6872_v39, %v2106_v45  ;;  %2095 = vadd.xlane.f32.xlu1 %v2094_v47 }
 0xdaf   :  { %v2119_v7 = vmul.f32 %v2113_v14, %v2113_v14 }
 0xdb0   :  { %v2118_v62 = vmul.f32 %v2112_v29, %v2112_v29 }
 0xdb1   :  { %v2127_v35 = vsel %vm220_vm4, %v2119_v7, 0.0 }
 0xdb2   :  { %2128 = vadd.xlane.f32.xlu0 %v2127_v35  ;;  %v2124_v36 = vsel %vm220_vm4, %v2118_v62, 0.0 }
 0xdb3   :  { %2125 = vadd.xlane.f32.xlu1 %v2124_v36 }
 0xe3a   :  { %v2099_v5 = vpop.xlane.xlu0 %2098 }
 0xe3b   :  { %v2109_v17 = vmul.f32 0.03125, %v2099_v5  ;;  %v2096_v30 = vpop.xlane.xlu1 %2095 }
 0xe3c   :  { %v2108_v32 = vmul.f32 0.03125, %v2096_v30 }
 0xe3d   :  { %v2115_v11 = vsub.f32 %v6887_v59, %v2109_v17  ;;  %v6932_v17 = vld [vmem:[%s7502_s6 + $0x1] ss:$0 sm:$0xff] }
 0xe3e   :  { %v2114_v56 = vsub.f32 %v6890_v50, %v2108_v32 }
 0xe3f   :  { %v2129_v2 = vpop.xlane.xlu0 %2128  ;;  %v2121_v8 = vmul.f32 %v2115_v11, %v2115_v11 }
 0xe40   :  { %v2143_v13 = vmul.f32 0.03125, %v2129_v2  ;;  %v4836_v45 = vpop.f32.mrb[32].mxu0  ;;  %v2126_v58 = vpop.xlane.xlu1 %2125  ;;  %v2120_v47 = vmul.f32 %v2114_v56, %v2114_v56 }
 0xe41   :  { %v2070_v7 = vadd.f32 %v4836_v45, %v6781_v9  ;;  %v2142_v62 = vmul.f32 0.03125, %v2126_v58  ;;  %v2056_v35 = vpop.f32.mrb[33].mxu0  ;;  %v2133_v36 = vsel %vm220_vm4, %v2121_v8, 0.0 }
 0xe42   :  { %v2149_v31 = vadd.f32 1e-06, %v2143_v13  ;;  %v2069_v40 = vadd.f32 %v2056_v35, %v6772_v37  ;;  %2134 = vadd.xlane.f32.xlu0 %v2133_v36  ;;  %v2130_v54 = vsel %vm220_vm4, %v2120_v47, 0.0 }
 0xe43   :  { %v6920_v20 = vadd.f32 %v6864_v1, %v2070_v7  ;;  %v2148_v21 = vadd.f32 1e-06, %v2142_v62  ;;  %2131 = vadd.xlane.f32.xlu1 %v2130_v54 }
 0xe44   :  { %5788 = vrsqrt.f32 %v2149_v31  ;;  %v6923_v41 = vadd.f32 %v6864_v1, %v2069_v40  ;;  %v6937_v1 = vld [vmem:[%s7503_s7 + $0x1] ss:$0 sm:$0xff] }
 0xe45   :  { %5790 = vrsqrt.f32 %v2148_v21  ;;  %v2103_v9 = vsel %vm220_vm4, %v6920_v20, 0.0 }
 0xe46   :  { %2104 = vadd.xlane.f32.xlu0 %v2103_v9  ;;  %v2100_v37 = vsel %vm220_vm4, %v6923_v41, 0.0 }
 0xe47   :  { %2101 = vadd.xlane.f32.xlu1 %v2100_v37 }
 0xe4e   :  { %v5789_v5 = vpop.eup %5788 }
 0xe4f   :  { %v5791_v30 = vpop.eup %5790  ;;  %v2161_v32 = vmul.f32 %v5789_v5, %v2113_v14 }
 0xe50   :  { %v2160_v2 = vmul.f32 %v5791_v30, %v2112_v29  ;;  %v6954_v30 = vld [vmem:[%s7504_s9 + $0x1] ss:$0 sm:$0xff] }
 0xe51   :  { %v2173_v8 = vmul.f32 %v6932_v17, %v2161_v32 }
 0xe52   :  { %v2172_v13 = vmul.f32 %v6932_v17, %v2160_v2 }
 0xe53   :  { %v2185_v58 = vadd.f32 %v6937_v1, %v2173_v8 }
 0xe54   :  { %v2184_v45 = vadd.f32 %v6937_v1, %v2172_v13 }
 0xe56   :  { %4845 = vmatprep.mubr.msk.f32.mxu1 %vm220_vm4, %v2184_v45 }
 0xe57   :  { %4846 = vmatmul.mubr.msk.f32.vlgmr.msra.gmra.mrb[42].mxu1 %vm220_vm4, %v2185_v58 }
 0xecf   :  { %v2135_v47 = vpop.xlane.xlu0 %2134 }
 0xed0   :  { %v2145_v14 = vmul.f32 0.03125, %v2135_v47  ;;  %v2132_v29 = vpop.xlane.xlu1 %2131 }
 0xed1   :  { %v2144_v7 = vmul.f32 0.03125, %v2132_v29 }
 0xed2   :  { %v2151_v62 = vadd.f32 1e-06, %v2145_v14 }
 0xed3   :  { %v2150_v35 = vadd.f32 1e-06, %v2144_v7 }
 0xed4   :  { %5792 = vrsqrt.f32 %v2151_v62  ;;  %v2102_v58 = vpop.xlane.xlu1 %2101 }
 0xed5   :  { %5794 = vrsqrt.f32 %v2150_v35 }
 0xede   :  { %v5793_v36 = vpop.eup %5792 }
 0xedf   :  { %v5795_v31 = vpop.eup %5794  ;;  %v2163_v40 = vmul.f32 %v5793_v36, %v2115_v11 }
 0xee0   :  { %v2162_v54 = vmul.f32 %v5795_v31, %v2114_v56 }
 0xee1   :  { %v2175_v21 = vmul.f32 %v6932_v17, %v2163_v40 }
 0xee2   :  { %v2174_v9 = vmul.f32 %v6932_v17, %v2162_v54 }
 0xee3   :  { %v2187_v5 = vadd.f32 %v6937_v1, %v2175_v21 }
 0xee4   :  { %v2186_v37 = vadd.f32 %v6937_v1, %v2174_v9 }
 0xee6   :  { %4848 = vmatprep.mubr.msk.f32.mxu1 %vm220_vm4, %v2186_v37 }
 0xee7   :  { %4849 = vmatmul.mubr.msk.f32.gmra.mrb[44].mxu1 %vm220_vm4, %v2187_v5 }
 0xf2a   :  { %v4847_v32 = vpop.f32.mrb[42].mxu1 }
 0xf2b   :  { %v6957_v11 = vadd.f32 %v4847_v32, %v6954_v30  ;;  %v2287_v56 = vpop.f32.mrb[43].mxu1 }
 0xf2c   :  { %v6960_v2 = vadd.f32 %v6954_v30, %v2287_v56 }
 0xf2d   :  { %v2317_v8 = vmul.f32 %v6957_v11, %v6199_v52  ;;  %v2320_v31 = vmul.f32 %v6957_v11, %v6218_v61  ;;  %v2323_v9 = vmul.f32 %v6957_v11, %v6229_v16 }
 0xf2e   :  { %v2316_v13 = vmul.f32 %v6960_v2, %v6195_v49  ;;  %v2319_v21 = vmul.f32 %v6960_v2, %v6201_v53  ;;  %v2322_v32 = vmul.f32 %v6960_v2, %v6236_v19 }
 0xf30   :  { %v5610_v45 = vpack.i.bf16 %v2317_v8, %v2316_v13  ;;  %v2325_v8 = vmul.f32 %v6960_v2, %v6243_v23  ;;  %v5625_v13 = vpack.i.bf16 %v2323_v9, %v2322_v32  ;;  %v2329_v32 = vmul.f32 %v6957_v11, %v6316_v18 }
 0xf32   :  { %5611 = vrot.lane.b32.xlu1 %v5610_v45, %s5865_s26 }
 0xfa4   :  { %v5612_v47 = vpop.permute.xlu1 %5611 }
 0xfa5   :  { %v5614_v14 = vunpack.i.h.bf16 %v5612_v47  ;;  %v5613_v29 = vunpack.i.l.bf16 %v5612_v47 }
 0xfa7   :  { %v5332_v7 = vpack.c.bf16 %v5614_v14, %v5613_v29  ;;  %v2326_v14 = vmul.f32 %v6957_v11, %v6259_v38 }
 0xfa9   :  { %5334 = vmatpush3.bf16.xpose.msk.msra.mxu0 %vm6301_vm6, %v5332_v7  ;;  %v2110_v7 = vmul.f32 0.03125, %v2102_v58  ;;  %v2328_v58 = vmul.f32 %v6960_v2, %v6314_v15 }
 0xfaa   :  { %5335 = vmatprep.subr.bf16.mxu0 %v5864_v55 }
 0xfba   :  { %v6970_v62 = vpop.f32.mrb[44].mxu1 }
 0xfbb   :  { %v2297_v35 = vpop.f32.mrb[45].mxu1 }
 0xfbc   :  { %v6973_v36 = vadd.f32 %v6954_v30, %v2297_v35  ;;  %v7001_v35 = vsub.f32 %v6923_v41, %v2110_v7 }
 0xfbe   :  { %v2321_v40 = vmul.f32 %v6973_v36, %v6210_v57  ;;  %v2318_v54 = vmul.f32 %v6973_v36, %v6197_v51  ;;  %v2324_v56 = vmul.f32 %v6973_v36, %v6249_v27  ;;  %v2327_v47 = vmul.f32 %v6973_v36, %v6254_v34 }
 0xfbf   :  { %v2336_v7 = vmul.f32 %v6973_v36, %v6383_v22 }
 0xfc0   :  { %v5620_v37 = vpack.i.bf16 %v2321_v40, %v2320_v31  ;;  %v5615_v5 = vpack.i.bf16 %v2319_v21, %v2318_v54  ;;  %v5630_v45 = vpack.i.bf16 %v2325_v8, %v2324_v56  ;;  %v5635_v29 = vpack.i.bf16 %v2327_v47, %v2326_v14  ;;  %v2105_v31 = vpop.xlane.xlu0 %2104 }
 0xfc1   :  { %v2122_v40 = vmul.f32 %v7001_v35, %v7001_v35  ;;  %v2111_v54 = vmul.f32 0.03125, %v2105_v31  ;;  %v5640_v56 = vpack.i.bf16 %v2329_v32, %v2328_v58  ;;  %v2330_v8 = vmul.f32 %v6973_v36, %v6325_v26 }
 0xfc2   :  { %5621 = vrot.lane.b32.xlu1 %v5620_v37, %s5865_s26  ;;  %5616 = vrot.lane.b32.xlu0 %v5615_v5, %s5865_s26  ;;  %v2333_v47 = vmul.f32 %v6973_v36, %v6352_v12  ;;  %v2332_v14 = vmul.f32 %v6957_v11, %v6337_v44  ;;  %v2337_v31 = vmul.f32 %v6960_v2, %v6385_v24 }
 0xfc3   :  { %v2136_v21 = vsel %vm220_vm4, %v2122_v40, 0.0  ;;  %v7007_v9 = vsub.f32 %v6920_v20, %v2111_v54  ;;  %v2339_v54 = vmul.f32 %v6973_v36, %v6379_v28 }
 0xfc4   :  { %v5660_v40 = vpack.i.bf16 %v2337_v31, %v2336_v7 }
 0xfc5   :  { %v2123_v37 = vmul.f32 %v7007_v9, %v7007_v9 }
 0xfc6   :  { %5626 = vrot.lane.b32.xlu1 %v5625_v13, %s5865_s26  ;;  %5631 = vrot.lane.b32.xlu0 %v5630_v45, %s5865_s26  ;;  %v2331_v13 = vmul.f32 %v6960_v2, %v6328_v33 }
 0xfc7   :  { %v2139_v5 = vsel %vm220_vm4, %v2123_v37, 0.0 }
 0xfc8   :  { %v5645_v45 = vpack.i.bf16 %v2331_v13, %v2330_v8 }
 0xfca   :  { %5636 = vrot.lane.b32.xlu1 %v5635_v29, %s5865_s26  ;;  %v5650_v29 = vpack.i.bf16 %v2333_v47, %v2332_v14 }
 0xfe5   :  { %2137 = vadd.xlane.f32.xlu0 %v2136_v21  ;;  %v2338_v21 = vmul.f32 %v6957_v11, %v6387_v25 }
 0xfe7   :  { %v5665_v37 = vpack.i.bf16 %v2339_v54, %v2338_v21 }
 0xfee   :  { %2140 = vadd.xlane.f32.xlu1 %v2139_v5 }
 0xffb   :  { %5641 = vrot.lane.b32.xlu0 %v5640_v56, %s5866_s27 }
 0xfff   :  { %5646 = vrot.lane.b32.xlu1 %v5645_v45, %s5866_s27 }
0x1003   :  { %5651 = vrot.lane.b32.xlu1 %v5650_v29, %s5866_s27 }
0x1007   :  { %5661 = vrot.lane.b32.xlu1 %v5660_v40, %s5866_s27 }
0x100b   :  { %5666 = vrot.lane.b32.xlu1 %v5665_v37, %s5866_s27 }
0x1034   :  { %v5617_v5 = vpop.permute.xlu0 %5616  ;;  %v5622_v8 = vpop.permute.xlu1 %5621 }
0x1035   :  { %v5619_v58 = vunpack.i.h.bf16 %v5617_v5  ;;  %v5618_v32 = vunpack.i.l.bf16 %v5617_v5  ;;  %v5624_v13 = vunpack.i.h.bf16 %v5622_v8  ;;  %v5623_v45 = vunpack.i.l.bf16 %v5622_v8  ;;  %v7059_v8 = vld [vmem:[%s7506_s5] sm:$0xf] }
0x1037   :  { %v5336_v56 = vpack.c.bf16 %v5619_v58, %v5618_v32  ;;  %v5340_v47 = vpack.c.bf16 %v5624_v13, %v5623_v45 }
0x1038   :  { %v5627_v14 = vpop.permute.xlu1 %5626  ;;  %v5632_v40 = vpop.permute.xlu0 %5631 }
0x1039   :  { %5338 = vmatpush3.bf16.xpose.msk.msra.mxu0 %vm6301_vm6, %v5336_v56  ;;  %v5629_v29 = vunpack.i.h.bf16 %v5627_v14  ;;  %v5628_v7 = vunpack.i.l.bf16 %v5627_v14  ;;  %v5634_v54 = vunpack.i.h.bf16 %v5632_v40  ;;  %v5633_v21 = vunpack.i.l.bf16 %v5632_v40 }
0x103a   :  { %5339 = vmatprep.subr.bf16.mxu0 %v5864_v55 }
0x103b   :  { %v5344_v31 = vpack.c.bf16 %v5629_v29, %v5628_v7  ;;  %v5348_v37 = vpack.c.bf16 %v5634_v54, %v5633_v21 }
0x103c   :  { %v5637_v5 = vpop.permute.xlu1 %5636 }
0x103d   :  { %v5639_v58 = vunpack.i.h.bf16 %v5637_v5  ;;  %v5638_v32 = vunpack.i.l.bf16 %v5637_v5 }
0x103f   :  { %v5352_v56 = vpack.c.bf16 %v5639_v58, %v5638_v32 }
0x1041   :  { %5342 = vmatpush3.bf16.xpose.msk.msra.mxu0 %vm6301_vm6, %v5340_v47 }
0x1042   :  { %5343 = vmatprep.subr.bf16.mxu0 %v5864_v55 }
0x1049   :  { %5346 = vmatpush3.bf16.xpose.msk.msra.mxu0 %vm6301_vm6, %v5344_v31 }
0x104a   :  { %5347 = vmatprep.subr.bf16.mxu0 %v5864_v55 }
0x1051   :  { %5350 = vmatpush3.bf16.xpose.msk.msra.mxu0 %vm6301_vm6, %v5348_v37 }
0x1052   :  { %5351 = vmatprep.subr.bf16.mxu0 %v5864_v55 }
0x1059   :  { %5354 = vmatpush3.bf16.xpose.msk.msra.mxu0 %vm6301_vm6, %v5352_v56 }
0x105a   :  { %4953 = vmatprep.subr.mxu0 %v5868_v3 }
0x1060   :  { %4879 = vmatmul.mubr.msk.f32.vlgmr.msra.gmra.mrb[34].mxu0 %vm220_vm4, %v6960_v2 }
0x1061   :  { %4881 = vmatprep.mubr.msk.f32.mxu0 %vm5867_vm5, %v5868_v3  ;;  %4954 = vmatpush3.msk.msra.mxu0 %vm96_vm1, %v7059_v8 }
0x1062   :  { %5415 = vmatprep.subr.bf16.mxu0 %v5864_v55 }
0x1064   :  { %4882 = vmatmul.mubr.msk.f32.gmra.mrb[36].mxu0 %vm220_vm4, %v6957_v11 }
0x1065   :  { %4884 = vmatprep.mubr.msk.f32.mxu0 %vm5867_vm5, %v5868_v3 }
0x1068   :  { %4885 = vmatmul.mubr.msk.f32.gmra.mrb[38].mxu0 %vm220_vm4, %v6973_v36 }
0x1069   :  { %4955 = vmatprep.mubr.msk.f32.mxu0 %vm5867_vm5, %v5868_v3 }
0x1072   :  { %v2138_v13 = vpop.xlane.xlu0 %2137 }
0x1073   :  { %v2146_v45 = vmul.f32 0.03125, %v2138_v13 }
0x1075   :  { %v2152_v47 = vadd.f32 1e-06, %v2146_v45 }
0x1076   :  { %v5642_v14 = vpop.permute.xlu0 %5641 }
0x1077   :  { %5796 = vrsqrt.f32 %v2152_v47  ;;  %v5644_v29 = vunpack.i.h.bf16 %v5642_v14  ;;  %v5643_v7 = vunpack.i.l.bf16 %v5642_v14 }
0x1079   :  { %v5356_v31 = vpack.c.bf16 %v5644_v29, %v5643_v7 }
0x107b   :  { %5357 = vmatpush3.bf16.msra.mxu1 %v5356_v31  ;;  %v2141_v40 = vpop.xlane.xlu1 %2140 }
0x107c   :  { %v2147_v54 = vmul.f32 0.03125, %v2141_v40  ;;  %5358 = vmatprep.subr.bf16.mxu1 %v5864_v55 }
0x107e   :  { %v2153_v21 = vadd.f32 1e-06, %v2147_v54 }
0x107f   :  { %v5647_v37 = vpop.permute.xlu1 %5646 }
0x1080   :  { %5798 = vrsqrt.f32 %v2153_v21  ;;  %v5649_v36 = vunpack.i.h.bf16 %v5647_v37  ;;  %v5648_v5 = vunpack.i.l.bf16 %v5647_v37 }
0x1081   :  { %v5797_v58 = vpop.eup %5796 }
0x1082   :  { %v5359_v32 = vpack.c.bf16 %v5649_v36, %v5648_v5  ;;  %v2164_v56 = vmul.f32 %v5797_v58, %v7001_v35 }
0x1083   :  { %v5652_v13 = vpop.permute.xlu1 %5651 }
0x1084   :  { %v5654_v45 = vunpack.i.h.bf16 %v5652_v13  ;;  %v5653_v47 = vunpack.i.l.bf16 %v5652_v13  ;;  %5360 = vmatpush3.bf16.msra.mxu1 %v5359_v32  ;;  %v2176_v14 = vmul.f32 %v6932_v17, %v2164_v56  ;;  %v2334_v32 = vmul.f32 %v6960_v2, %v6340_v48 }
0x1085   :  { %5361 = vmatprep.subr.bf16.mxu1 %v5864_v55  ;;  %v2335_v56 = vmul.f32 %v6957_v11, %v6345_v4 }
0x1086   :  { %v5362_v29 = vpack.c.bf16 %v5654_v45, %v5653_v47  ;;  %v2188_v7 = vadd.f32 %v6937_v1, %v2176_v14  ;;  %v7102_v45 = vadd.f32 %v6970_v62, %v6954_v30 }
0x1087   :  { %v5655_v13 = vpack.i.bf16 %v2335_v56, %v2334_v32 }
0x1088   :  { %4851 = vmatprep.mubr.msk.f32.mxu1 %vm220_vm4, %v2188_v7  ;;  %5363 = vmatpush3.bf16.msra.mxu1 %v5362_v29  ;;  %v2822_v2 = vmul.f32 %v7102_v45, %v6201_v53 }
0x1089   :  { %5364 = vmatprep.subr.bf16.mxu1 %v5864_v55 }
0x108a   :  { %v5799_v31 = vpop.eup %5798 }
0x108b   :  { %v2165_v40 = vmul.f32 %v5799_v31, %v7007_v9 }
0x108d   :  { %v2177_v35 = vmul.f32 %v6932_v17, %v2165_v40 }
0x108f   :  { %v2189_v54 = vadd.f32 %v6937_v1, %v2177_v35  ;;  %v2828_v35 = vmul.f32 %v7102_v45, %v6243_v23 }
0x1091   :  { %4852 = vmatmul.mubr.msk.f32.gmra.mrb[46].mxu1 %vm220_vm4, %v2189_v54 }
0x1092   :  { %4911 = vmatprep.mubr.msk.f32.mxu1 %vm5867_vm5, %v5868_v3 }
0x1133   :  { %v7085_v21 = vpop.f32.mrb[34].mxu0 }
0x1134   :  { %v4880_v37 = vpop.f32.mrb[35].mxu0  ;;  %v2489_v36 = vsel %vm687_vm7, %v7085_v21, -inf }
0x1135   :  { %2490 = vmax.xlane.f32.xlu0 %v2489_v36  ;;  %v2819_v37 = vmul.f32 %v7102_v45, %v6195_v49 }
0x1137   :  { %v7089_v5 = vpop.f32.mrb[36].mxu0 }
0x1138   :  { %v4883_v58 = vpop.f32.mrb[37].mxu0  ;;  %v2492_v31 = vsel %vm687_vm7, %v7089_v5, -inf }
0x113b   :  { %v7091_v9 = vpop.f32.mrb[38].mxu0 }
0x113c   :  { %v4886_v17 = vpop.f32.mrb[39].mxu0  ;;  %v2495_v1 = vsel %vm687_vm7, %v7091_v9, -inf }
0x113d   :  { %2496 = vmax.xlane.f32.xlu1 %v2495_v1 }
0x114b   :  { %5656 = vrot.lane.b32.xlu0 %v5655_v13, %s5866_s27 }
0x1164   :  { %v4853_v47 = vpop.f32.mrb[46].mxu1 }
0x1165   :  { %v7105_v14 = vadd.f32 %v4853_v47, %v6954_v30  ;;  %v2307_v29 = vpop.f32.mrb[47].mxu1  ;;  %v5662_v47 = vpop.permute.xlu1 %5661 }
0x1166   :  { %v7112_v11 = vadd.f32 %v6954_v30, %v2307_v29  ;;  %v2837_v30 = vmul.f32 %v7102_v45, %v6340_v48 }
0x1167   :  { %v2821_v7 = vmul.f32 %v7105_v14, %v6197_v51  ;;  %v2827_v62 = vmul.f32 %v7105_v14, %v6249_v27 }
0x1168   :  { %v2838_v53 = vmul.f32 %v7112_v11, %v6345_v4  ;;  %v2820_v27 = vmul.f32 %v7112_v11, %v6199_v52  ;;  %v2823_v23 = vmul.f32 %v7112_v11, %v6218_v61  ;;  %v2824_v4 = vmul.f32 %v7105_v14, %v6210_v57 }
0x1169   :  { %v5675_v40 = vpack.i.bf16 %v2822_v2, %v2821_v7  ;;  %v5690_v51 = vpack.i.bf16 %v2828_v35, %v2827_v62  ;;  %v2826_v48 = vmul.f32 %v7112_v11, %v6229_v16  ;;  %v2825_v52 = vmul.f32 %v7102_v45, %v6236_v19 }
0x116a   :  { %2493 = vmax.xlane.f32.xlu0 %v2492_v31  ;;  %v5715_v54 = vpack.i.bf16 %v2838_v53, %v2837_v30  ;;  %v5670_v36 = vpack.i.bf16 %v2820_v27, %v2819_v37  ;;  %v5680_v58 = vpack.i.bf16 %v2824_v4, %v2823_v23  ;;  %v2829_v49 = vmul.f32 %v7112_v11, %v6259_v38 }
0x116b   :  { %5676 = vrot.lane.b32.xlu1 %v5675_v40, %s5865_s26  ;;  %v5685_v17 = vpack.i.bf16 %v2826_v48, %v2825_v52  ;;  %v2830_v61 = vmul.f32 %v7105_v14, %v6254_v34  ;;  %v2832_v1 = vmul.f32 %v7112_v11, %v6316_v18  ;;  %v2831_v16 = vmul.f32 %v7102_v45, %v6314_v15 }
0x116c   :  { %v2833_v19 = vmul.f32 %v7105_v14, %v6325_v26  ;;  %v2834_v34 = vmul.f32 %v7102_v45, %v6328_v33  ;;  %v2835_v56 = vmul.f32 %v7112_v11, %v6337_v44  ;;  %v2836_v18 = vmul.f32 %v7105_v14, %v6352_v12  ;;  %v5667_v44 = vpop.permute.xlu1 %5666 }
0x116d   :  { %v5695_v57 = vpack.i.bf16 %v2830_v61, %v2829_v49  ;;  %v5700_v32 = vpack.i.bf16 %v2832_v1, %v2831_v16  ;;  %v5664_v31 = vunpack.i.h.bf16 %v5662_v47  ;;  %v5663_v40 = vunpack.i.l.bf16 %v5662_v47 }
0x116e   :  { %v5705_v38 = vpack.i.bf16 %v2834_v34, %v2833_v19  ;;  %v5710_v13 = vpack.i.bf16 %v2836_v18, %v2835_v56  ;;  %v5669_v35 = vunpack.i.h.bf16 %v5667_v44 }
0x116f   :  { %5691 = vrot.lane.b32.xlu1 %v5690_v51, %s5865_s26  ;;  %v5368_v12 = vpack.c.bf16 %v5664_v31, %v5663_v40  ;;  %v5668_v51 = vunpack.i.l.bf16 %v5667_v44 }
0x1173   :  { %5716 = vrot.lane.b32.xlu1 %v5715_v54, %s5866_s27 }
0x1180   :  { %5671 = vrot.lane.b32.xlu0 %v5670_v36, %s5865_s26 }
0x1184   :  { %5681 = vrot.lane.b32.xlu0 %v5680_v58, %s5865_s26 }
0x1188   :  { %5686 = vrot.lane.b32.xlu0 %v5685_v17, %s5865_s26 }
0x118c   :  { %5696 = vrot.lane.b32.xlu0 %v5695_v57, %s5865_s26 }
0x1190   :  { %5701 = vrot.lane.b32.xlu0 %v5700_v32, %s5866_s27 }
0x1194   :  { %5706 = vrot.lane.b32.xlu0 %v5705_v38, %s5866_s27 }
0x1198   :  { %5711 = vrot.lane.b32.xlu0 %v5710_v13, %s5866_s27 }
0x11c2   :  { %v2491_v15 = vpop.xlane.xlu0 %2490 }
0x11c3   :  { %v2498_v26 = vsub.f32 %v7085_v21, %v2491_v15  ;;  %v5371_v21 = vpack.c.bf16 %v5669_v35, %v5668_v51 }
0x11c5   :  { %v2501_v7 = vmul.f32 1.442695, %v2498_v26 }
0x11c6   :  { %v5657_v29 = vpop.permute.xlu0 %5656 }
0x11c7   :  { %v5659_v2 = vunpack.i.h.bf16 %v5657_v29  ;;  %v5658_v33 = vunpack.i.l.bf16 %v5657_v29  ;;  %5800 = vpow2.f32 %v2501_v7 }
0x11c9   :  { %v5365_v62 = vpack.c.bf16 %v5659_v2, %v5658_v33 }
0x11ca   :  { %v2497_v30 = vpop.xlane.xlu1 %2496 }
0x11cb   :  { %5366 = vmatpush3.bf16.msra.mxu1 %v5365_v62  ;;  %v2500_v27 = vsub.f32 %v7091_v9, %v2497_v30 }
0x11cc   :  { %5367 = vmatprep.subr.bf16.mxu1 %v5864_v55 }
0x11cd   :  { %v2505_v23 = vmul.f32 1.442695, %v2500_v27 }
0x11cf   :  { %5369 = vmatpush3.bf16.msra.mxu1 %v5368_v12 }
0x11d0   :  { %5370 = vmatprep.subr.bf16.mxu1 %v5864_v55 }
0x11d1   :  { %v5801_v53 = vpop.eup %5800 }
0x11d3   :  { %5372 = vmatpush3.bf16.msra.mxu1 %v5371_v21 }
0x11d4   :  { %5373 = vmatprep.subr.bf16.mxu1 %v5864_v55 }
0x11d6   :  { %4912 = vmatmul.mubr.msk.f32.vlgmr.msra.gmra.mrb[48].mxu1 %vm687_vm7, %v5801_v53 }
0x11d7   :  { %5375 = vmatpush3.bf16.msra.mxu1 %v6489_v46  ;;  %4914 = vmatprep.mubr.msk.f32.mxu1 %vm5867_vm5, %v5868_v3 }
0x11d8   :  { %5376 = vmatprep.subr.bf16.mxu1 %v5864_v55 }
0x11db   :  { %5378 = vmatpush3.bf16.msra.mxu1 %v6504_v63 }
0x11dc   :  { %5379 = vmatprep.subr.bf16.mxu1 %v5864_v55 }
0x11dd   :  { %v5677_v9 = vpop.permute.xlu1 %5676 }
0x11de   :  { %v5679_v49 = vunpack.i.h.bf16 %v5677_v9  ;;  %v5678_v61 = vunpack.i.l.bf16 %v5677_v9 }
0x11df   :  { %5381 = vmatpush3.bf16.msra.mxu1 %v6517_v60 }
0x11e0   :  { %5382 = vmatprep.subr.bf16.mxu1 %v5864_v55  ;;  %v5396_v57 = vpack.c.bf16 %v5679_v49, %v5678_v61 }
0x11e1   :  { %v5692_v13 = vpop.permute.xlu1 %5691 }
0x11e2   :  { %v5694_v15 = vunpack.i.h.bf16 %v5692_v13  ;;  %v5693_v26 = vunpack.i.l.bf16 %v5692_v13 }
0x11e3   :  { %5384 = vmatpush3.bf16.msra.mxu1 %v6530_v42 }
0x11e4   :  { %5385 = vmatprep.subr.bf16.mxu1 %v5864_v55  ;;  %v5408_v47 = vpack.c.bf16 %v5694_v15, %v5693_v26 }
0x11e5   :  { %v5717_v61 = vpop.permute.xlu1 %5716 }
0x11e7   :  { %5387 = vmatpush3.bf16.msra.mxu1 %v6542_v10 }
0x11e8   :  { %5388 = vmatprep.subr.bf16.mxu1 %v5864_v55 }
0x11eb   :  { %5390 = vmatpush3.bf16.msra.mxu1 %v6552_v43 }
0x11ec   :  { %5391 = vmatprep.subr.bf16.mxu1 %v5864_v55 }
0x11f7   :  { %v2494_v54 = vpop.xlane.xlu0 %2493 }
0x11f8   :  { %v2499_v37 = vsub.f32 %v7089_v5, %v2494_v54 }
0x11fa   :  { %v2503_v36 = vmul.f32 1.442695, %v2499_v37 }
0x11fb   :  { %v5672_v58 = vpop.permute.xlu0 %5671 }
0x11fc   :  { %5802 = vpow2.f32 %v2503_v36  ;;  %v5674_v52 = vunpack.i.h.bf16 %v5672_v58  ;;  %v5673_v17 = vunpack.i.l.bf16 %v5672_v58 }
0x11fd   :  { %5804 = vpow2.f32 %v2505_v23 }
0x11fe   :  { %v5392_v5 = vpack.c.bf16 %v5674_v52, %v5673_v17 }
0x11ff   :  { %v5682_v1 = vpop.permute.xlu0 %5681 }
0x1200   :  { %v5684_v16 = vunpack.i.h.bf16 %v5682_v1  ;;  %v5683_v32 = vunpack.i.l.bf16 %v5682_v1  ;;  %v5719_v1 = vunpack.i.h.bf16 %v5717_v61 }
0x1202   :  { %v5400_v19 = vpack.c.bf16 %v5684_v16, %v5683_v32  ;;  %v5718_v16 = vunpack.i.l.bf16 %v5717_v61 }
0x1203   :  { %v5687_v34 = vpop.permute.xlu0 %5686 }
0x1204   :  { %v5689_v38 = vunpack.i.h.bf16 %v5687_v34  ;;  %v5688_v56 = vunpack.i.l.bf16 %v5687_v34 }
0x1206   :  { %v5803_v4 = vpop.eup %5802  ;;  %v5404_v18 = vpack.c.bf16 %v5689_v38, %v5688_v56 }
0x1207   :  { %4915 = vmatmul.mubr.msk.f32.gmra.mrb[50].mxu1 %vm687_vm7, %v5803_v4  ;;  %v5805_v48 = vpop.eup %5804  ;;  %v5697_v29 = vpop.permute.xlu0 %5696 }
0x1208   :  { %4917 = vmatprep.mubr.msk.f32.mxu1 %vm5867_vm5, %v5868_v3  ;;  %v5699_v7 = vunpack.i.h.bf16 %v5697_v29  ;;  %v5698_v2 = vunpack.i.l.bf16 %v5697_v29 }
0x120a   :  { %v5412_v33 = vpack.c.bf16 %v5699_v7, %v5698_v2  ;;  %v2841_v7 = vmul.f32 %v7112_v11, %v6387_v25  ;;  %v2842_v2 = vmul.f32 %v7105_v14, %v6379_v28 }
0x120b   :  { %4918 = vmatmul.mubr.msk.f32.gmra.mrb[52].mxu1 %vm687_vm7, %v5805_v48  ;;  %v5702_v12 = vpop.permute.xlu0 %5701 }
0x120c   :  { %4944 = vmatprep.mubr.msk.f32.mxu1 %vm5867_vm5, %v5868_v3  ;;  %v5704_v54 = vunpack.i.h.bf16 %v5702_v12  ;;  %v5703_v27 = vunpack.i.l.bf16 %v5702_v12 }
0x120f   :  { %4945 = vmatmul.mubr.msk.f32.vlgmr.msra.gmra.mrb[54].mxu1 %vm687_vm7, %v5801_v53  ;;  %v5707_v30 = vpop.permute.xlu0 %5706 }
0x1210   :  { %5394 = vmatpush3.bf16.xpose.msk.msra.mxu1 %vm6301_vm6, %v5392_v5  ;;  %4947 = vmatprep.mubr.msk.f32.mxu1 %vm5867_vm5, %v5868_v3  ;;  %v5709_v58 = vunpack.i.h.bf16 %v5707_v30 }
0x1211   :  { %5395 = vmatprep.subr.bf16.mxu1 %v5864_v55 }
0x1213   :  { %4948 = vmatmul.mubr.msk.f32.gmra.mrb[56].mxu1 %vm687_vm7, %v5803_v4  ;;  %v5416_v4 = vpack.c.bf16 %v5704_v54, %v5703_v27  ;;  %v5712_v52 = vpop.permute.xlu0 %5711 }
0x1214   :  { %4950 = vmatprep.mubr.msk.f32.mxu1 %vm5867_vm5, %v5868_v3  ;;  %v5714_v9 = vunpack.i.h.bf16 %v5712_v52  ;;  %v5713_v49 = vunpack.i.l.bf16 %v5712_v52 }
0x1216   :  { %v5422_v32 = vpack.c.bf16 %v5714_v9, %v5713_v49 }
0x1217   :  { %4951 = vmatmul.mubr.msk.f32.gmra.mrb[58].mxu1 %vm687_vm7, %v5805_v48  ;;  %v5708_v48 = vunpack.i.l.bf16 %v5707_v30 }
0x1218   :  { %5398 = vmatpush3.bf16.xpose.msk.msra.mxu1 %vm6301_vm6, %v5396_v57  ;;  %4988 = vmatprep.mubr.msk.f32.mxu1 %vm5867_vm5, %v5868_v3 }
0x1219   :  { %5399 = vmatprep.subr.bf16.mxu1 %v5864_v55  ;;  %v5419_v5 = vpack.c.bf16 %v5709_v58, %v5708_v48 }
0x1220   :  { %5402 = vmatpush3.bf16.xpose.msk.msra.mxu1 %vm6301_vm6, %v5400_v19  ;;  %v5425_v19 = vpack.c.bf16 %v5719_v1, %v5718_v16 }
0x1221   :  { %5403 = vmatprep.subr.bf16.mxu1 %v5864_v55 }
0x1228   :  { %5406 = vmatpush3.bf16.xpose.msk.msra.mxu1 %vm6301_vm6, %v5404_v18 }
0x1229   :  { %5407 = vmatprep.subr.bf16.mxu1 %v5864_v55 }
0x1230   :  { %5410 = vmatpush3.bf16.xpose.msk.msra.mxu1 %vm6301_vm6, %v5408_v47 }
0x1231   :  { %5411 = vmatprep.subr.bf16.mxu1 %v5864_v55 }
0x1238   :  { %5414 = vmatpush3.bf16.xpose.msk.msra.mxu1 %vm6301_vm6, %v5412_v33  ;;  %v5725_v33 = vpack.i.bf16 %v2842_v2, %v2841_v7 }
0x1239   :  { %5063 = vmatprep.subr.mxu1 %v5868_v3 }
0x123f   :  { %4989 = vmatmul.mubr.msk.f32.vlgmr.msra.gmra.mrb[60].mxu1 %vm220_vm4, %v7102_v45 }
0x1240   :  { %4991 = vmatprep.mubr.msk.f32.mxu1 %vm5867_vm5, %v5868_v3  ;;  %5064 = vmatpush3.msk.msra.mxu1 %vm96_vm1, %v7059_v8 }
0x1243   :  { %4992 = vmatmul.mubr.msk.f32.gmra.mrb[62].mxu1 %vm220_vm4, %v7112_v11 }
0x1244   :  { %4994 = vmatprep.mubr.msk.f32.mxu1 %vm5867_vm5, %v5868_v3 }
0x1247   :  { %4995 = vmatmul.mubr.msk.f32.gmra.mrb[64].mxu1 %vm220_vm4, %v7105_v14 }
0x1248   :  { %5065 = vmatprep.mubr.msk.f32.mxu1 %vm5867_vm5, %v5868_v3 }
0x12a9   :  { %v7230_v6 = vpop.f32.mrb[48].mxu1 }
0x12aa   :  { %v4913_v31 = vpop.f32.mrb[49].mxu1 }
0x12ab   :  { %v2839_v31 = vmul.f32 %v7105_v14, %v6383_v22 }
0x12da   :  { %v7232_v40 = vpop.f32.mrb[50].mxu1 }
0x12db   :  { %v4916_v62 = vpop.f32.mrb[51].mxu1 }
0x12dc   :  { %v2840_v62 = vmul.f32 %v7102_v45, %v6385_v24 }
0x12de   :  { %v7234_v44 = vpop.f32.mrb[52].mxu1 }
0x12df   :  { %v4919_v8 = vpop.f32.mrb[53].mxu1 }
0x12e0   :  { %v5720_v8 = vpack.i.bf16 %v2840_v62, %v2839_v31 }
0x12e2   :  { %v2710_v35 = vpop.f32.mrb[54].mxu1 }
0x12e3   :  { %5806 = vrcp.f32 %v2710_v35  ;;  %v4946_v51 = vpop.f32.mrb[55].mxu1 }
0x12e6   :  { %v2715_v21 = vpop.f32.mrb[56].mxu1 }
0x12e7   :  { %5808 = vrcp.f32 %v2715_v21  ;;  %v4949_v53 = vpop.f32.mrb[57].mxu1 }
0x12ea   :  { %v2720_v37 = vpop.f32.mrb[58].mxu1 }
0x12eb   :  { %5810 = vrcp.f32 %v2720_v37  ;;  %v4952_v36 = vpop.f32.mrb[59].mxu1 }
0x12ed   :  { %v5807_v23 = vpop.eup %5806 }
0x12ee   :  { %4956 = vmatmul.mubr.msk.f32.vlgmr.msra.gmra.mrb[40].mxu0 %vm926_vm8, %v5807_v23 }
0x12ef   :  { %5417 = vmatpush3.bf16.msra.mxu0 %v5416_v4  ;;  %4958 = vmatprep.mubr.msk.f32.mxu0 %vm5867_vm5, %v5868_v3 }
0x12f0   :  { %5418 = vmatprep.subr.bf16.mxu0 %v5864_v55 }
0x12f1   :  { %v5809_v17 = vpop.eup %5808 }
0x12f2   :  { %4959 = vmatmul.mubr.msk.f32.gmra.mrb[42].mxu0 %vm926_vm8, %v5809_v17 }
0x12f3   :  { %5420 = vmatpush3.bf16.msra.mxu0 %v5419_v5  ;;  %4961 = vmatprep.mubr.msk.f32.mxu0 %vm5867_vm5, %v5868_v3 }
0x12f4   :  { %5421 = vmatprep.subr.bf16.mxu0 %v5864_v55 }
0x12f5   :  { %v5811_v57 = vpop.eup %5810 }
0x12f6   :  { %4962 = vmatmul.mubr.msk.f32.gmra.mrb[44].mxu0 %vm926_vm8, %v5811_v57  ;;  %v4159_v57 = vld [vmem:[%s7507_s10 + $0x38] sm:$0xff] }
0x12f7   :  { %5423 = vmatpush3.bf16.msra.mxu0 %v5422_v32  ;;  %5021 = vmatprep.mubr.msk.f32.mxu0 %vm5867_vm5, %v5868_v3 }
0x12f8   :  { %5424 = vmatprep.subr.bf16.mxu0 %v5864_v55 }
0x12fb   :  { %5426 = vmatpush3.bf16.msra.mxu0 %v5425_v19 }
0x12fc   :  { %5427 = vmatprep.subr.bf16.mxu0 %v5864_v55 }
0x1312   :  { %v2978_v34 = vpop.f32.mrb[60].mxu1 }
0x1313   :  { %v4990_v38 = vpop.f32.mrb[61].mxu1  ;;  %v2992_v56 = vsel %vm687_vm7, %v2978_v34, -inf }
0x1314   :  { %2993 = vmax.xlane.f32.xlu1 %v2992_v56 }
0x1316   :  { %v2983_v18 = vpop.f32.mrb[62].mxu1 }
0x1317   :  { %v4993_v13 = vpop.f32.mrb[63].mxu1  ;;  %v2995_v15 = vsel %vm687_vm7, %v2983_v18, -inf }
0x1318   :  { %2996 = vmax.xlane.f32.xlu0 %v2995_v15 }
0x131a   :  { %v2988_v26 = vpop.f32.mrb[64].mxu1 }
0x131b   :  { %v4996_v47 = vpop.f32.mrb[65].mxu1  ;;  %v2998_v29 = vsel %vm687_vm7, %v2988_v26, -inf }
0x131c   :  { %2999 = vmax.xlane.f32.xlu0 %v2998_v29  ;;  %v4167_v47 = vld [vmem:[%s7508_s11 + $0x1] ss:$0 sm:$0xff] }
0x1325   :  { %5726 = vrot.lane.b32.xlu1 %v5725_v33, %s5866_s27 }
0x1332   :  { %5721 = vrot.lane.b32.xlu0 %v5720_v8, %s5866_s27 }
0x13a1   :  { %v2994_v12 = vpop.xlane.xlu1 %2993 }
0x13a2   :  { %v3001_v35 = vsub.f32 %v2978_v34, %v2994_v12 }
0x13a4   :  { %v3004_v21 = vmul.f32 1.442695, %v3001_v35 }
0x13a5   :  { %v2997_v51 = vpop.xlane.xlu0 %2996  ;;  %v5727_v28 = vpop.permute.xlu1 %5726 }
0x13a6   :  { %v3002_v11 = vsub.f32 %v2983_v18, %v2997_v51  ;;  %5812 = vpow2.f32 %v3004_v21  ;;  %v5729_v22 = vunpack.i.h.bf16 %v5727_v28  ;;  %v5728_v14 = vunpack.i.l.bf16 %v5727_v28 }
0x13a8   :  { %v3006_v30 = vmul.f32 1.442695, %v3002_v11  ;;  %v5431_v45 = vpack.c.bf16 %v5729_v22, %v5728_v14 }
0x13a9   :  { %v3000_v25 = vpop.xlane.xlu0 %2999 }
0x13aa   :  { %v3003_v54 = vsub.f32 %v2988_v26, %v3000_v25  ;;  %5814 = vpow2.f32 %v3006_v30 }
0x13ac   :  { %v3008_v24 = vmul.f32 1.442695, %v3003_v54 }
0x13ad   :  { %v5722_v53 = vpop.permute.xlu0 %5721 }
0x13ae   :  { %v5724_v27 = vunpack.i.h.bf16 %v5722_v53  ;;  %v5723_v37 = vunpack.i.l.bf16 %v5722_v53  ;;  %5816 = vpow2.f32 %v3008_v24 }
0x13b0   :  { %v5428_v36 = vpack.c.bf16 %v5724_v27, %v5723_v37  ;;  %v5813_v23 = vpop.eup %5812 }
0x13b2   :  { %5429 = vmatpush3.bf16.msra.mxu0 %v5428_v36 }
0x13b3   :  { %5430 = vmatprep.subr.bf16.mxu0 %v5864_v55 }
0x13b4   :  { %v5815_v4 = vpop.eup %5814 }
0x13b6   :  { %5432 = vmatpush3.bf16.msra.mxu0 %v5431_v45 }
0x13b7   :  { %5433 = vmatprep.subr.bf16.mxu0 %v5864_v55 }
0x13b8   :  { %v5817_v58 = vpop.eup %5816 }
0x13b9   :  { %5022 = vmatmul.mubr.msk.f32.vlgmr.msra.gmra.mrb[46].mxu0 %vm687_vm7, %v5813_v23 }
0x13ba   :  { %5435 = vmatpush3.bf16.msra.mxu0 %v6489_v46  ;;  %5024 = vmatprep.mubr.msk.f32.mxu0 %vm5867_vm5, %v5868_v3 }
0x13bb   :  { %5436 = vmatprep.subr.bf16.mxu0 %v5864_v55 }
0x13bd   :  { %5025 = vmatmul.mubr.msk.f32.gmra.mrb[48].mxu0 %vm687_vm7, %v5815_v4 }
0x13be   :  { %5438 = vmatpush3.bf16.msra.mxu0 %v6504_v63  ;;  %5027 = vmatprep.mubr.msk.f32.mxu0 %vm5867_vm5, %v5868_v3 }
0x13bf   :  { %5439 = vmatprep.subr.bf16.mxu0 %v5864_v55 }
0x13c1   :  { %5028 = vmatmul.mubr.msk.f32.gmra.mrb[50].mxu0 %vm687_vm7, %v5817_v58  ;;  %v2802_v48 = vpop.f32.mrb[40].mxu0 }
0x13c2   :  { %v2816_v46 = vmul.f32 %v2802_v48, %v7230_v6  ;;  %5441 = vmatpush3.bf16.msra.mxu0 %v6517_v60  ;;  %v4957_v52 = vpop.f32.mrb[41].mxu0  ;;  %5054 = vmatprep.mubr.msk.f32.mxu0 %vm5867_vm5, %v5868_v3  ;;  %v4156_v6 = vld [vmem:[%s7507_s10 + $0x20] sm:$0xff]  ;;  %v4157_v60 = vld [vmem:[%s7507_s10 + $0x28] sm:$0xff] }
0x13c3   :  { %5442 = vmatprep.subr.bf16.mxu0 %v5864_v55 }
0x13c5   :  { %v2807_v63 = vpop.f32.mrb[42].mxu0 }
0x13c6   :  { %v2817_v17 = vmul.f32 %v2807_v63, %v7232_v40  ;;  %5444 = vmatpush3.bf16.msra.mxu0 %v6530_v42  ;;  %v4960_v5 = vpop.f32.mrb[43].mxu0  ;;  %v5451_v42 = vpack.c.bf16 %v4157_v60, %v4156_v6  ;;  %v4158_v40 = vld [vmem:[%s7507_s10 + $0x30] sm:$0xff] }
0x13c7   :  { %5445 = vmatprep.subr.bf16.mxu0 %v5864_v55  ;;  %v5455_v1 = vpack.c.bf16 %v4159_v57, %v4158_v40  ;;  %v4174_v57 = vld [vmem:[%s7509_s14 + $0x30] sm:$0xff] }
0x13c9   :  { %v2812_v9 = vpop.f32.mrb[44].mxu0 }
0x13ca   :  { %v2818_v49 = vmul.f32 %v2812_v9, %v7234_v44  ;;  %5447 = vmatpush3.bf16.msra.mxu0 %v6542_v10  ;;  %v4963_v61 = vpop.f32.mrb[45].mxu0 }
0x13cb   :  { %5448 = vmatprep.subr.bf16.mxu0 %v5864_v55  ;;  %v4172_v61 = vld [vmem:[%s7509_s14 + $0x20] sm:$0xff] }
0x13ce   :  { %5450 = vmatpush3.bf16.msra.mxu0 %v6552_v43 }
0x13cf   :  { %5452 = vmatprep.subr.bf16.mxu0 %v5451_v42 }
0x13d1   :  { %5055 = vmatmul.mubr.msk.f32.vlgmr.msra.gmra.mrb[52].mxu0 %vm687_vm7, %v5813_v23 }
0x13d2   :  { %5057 = vmatprep.mubr.msk.f32.mxu0 %vm5867_vm5, %v5868_v3  ;;  %5454 = vmatpush3.bf16.msra.mxu0 %v5451_v42  ;;  %v4173_v42 = vld [vmem:[%s7509_s14 + $0x28] sm:$0xff] }
0x13d3   :  { %5456 = vmatprep.subr.bf16.mxu0 %v5455_v1  ;;  %v5459_v40 = vpack.c.bf16 %v4173_v42, %v4172_v61 }
0x13d5   :  { %5058 = vmatmul.mubr.msk.f32.gmra.mrb[54].mxu0 %vm687_vm7, %v5815_v4  ;;  %5460 = vmatprep.subr.bf16.mxu1 %v5459_v40 }
0x13d6   :  { %5060 = vmatprep.mubr.msk.f32.mxu0 %vm5867_vm5, %v5868_v3  ;;  %5458 = vmatpush3.bf16.msra.mxu0 %v5455_v1  ;;  %v4175_v1 = vld [vmem:[%s7509_s14 + $0x38] sm:$0xff] }
0x13d9   :  { %5061 = vmatmul.mubr.msk.f32.gmra.mrb[56].mxu0 %vm687_vm7, %v5817_v58 }
0x13da   :  { %5082 = vmatprep.mubr.msk.f32.mxu0 %vm220_vm4, %v2816_v46 }
0x13dd   :  { %5083 = vmatmul.mubr.msk.f32.vlgmr.msra.gmra.mrb[58].mxu0 %vm220_vm4, %v2817_v17 }
0x13de   :  { %5085 = vmatprep.mubr.msk.f32.mxu0 %vm220_vm4, %v2818_v49 }
0x148c   :  { %v3133_v55 = vpop.f32.mrb[46].mxu0 }
0x148d   :  { %v5023_v10 = vpop.f32.mrb[47].mxu0 }
0x1490   :  { %v3138_v43 = vpop.f32.mrb[48].mxu0 }
0x1491   :  { %v5026_v44 = vpop.f32.mrb[49].mxu0 }
0x1494   :  { %v3143_v16 = vpop.f32.mrb[50].mxu0 }
0x1495   :  { %v5029_v32 = vpop.f32.mrb[51].mxu0 }
0x14a4   :  { %v3213_v19 = vpop.f32.mrb[52].mxu0 }
0x14a5   :  { %5818 = vrcp.f32 %v3213_v19  ;;  %v5056_v34 = vpop.f32.mrb[53].mxu0 }
0x14a8   :  { %v3218_v38 = vpop.f32.mrb[54].mxu0 }
0x14a9   :  { %5820 = vrcp.f32 %v3218_v38  ;;  %v5059_v56 = vpop.f32.mrb[55].mxu0 }
0x14ac   :  { %v3223_v18 = vpop.f32.mrb[56].mxu0 }
0x14ad   :  { %5822 = vrcp.f32 %v3223_v18  ;;  %v5062_v13 = vpop.f32.mrb[57].mxu0 }
0x14af   :  { %v5819_v15 = vpop.eup %5818 }
0x14b0   :  { %5066 = vmatmul.mubr.msk.f32.vlgmr.msra.gmra.mrb[66].mxu1 %vm926_vm8, %v5819_v15  ;;  %v5084_v26 = vpop.f32.mrb[58].mxu0 }
0x14b1   :  { %v3441_v29 = vadd.f32 %v5084_v26, %v6869_v0  ;;  %v3411_v7 = vpop.f32.mrb[59].mxu0  ;;  %5068 = vmatprep.mubr.msk.f32.mxu1 %vm5867_vm5, %v5868_v3  ;;  %5462 = vmatpush3.bf16.msra.mxu1 %v5459_v40 }
0x14b2   :  { %v3440_v2 = vadd.f32 %v3411_v7, %v6872_v39 }
0x14b3   :  { %v5821_v33 = vpop.eup %5820  ;;  %v7317_v31 = vadd.f32 %v4167_v47, %v3441_v29 }
0x14b4   :  { %v7319_v62 = vadd.f32 %v4167_v47, %v3440_v2  ;;  %5069 = vmatmul.mubr.msk.f32.gmra.mrb[68].mxu1 %vm926_vm8, %v5821_v33 }
0x14b5   :  { %v3467_v8 = vsel %vm220_vm4, %v7317_v31, 0.0  ;;  %5071 = vmatprep.mubr.msk.f32.mxu1 %vm5867_vm5, %v5868_v3 }
0x14b6   :  { %3468 = vadd.xlane.f32.xlu0 %v3467_v8  ;;  %v3464_v0 = vsel %vm220_vm4, %v7319_v62, 0.0 }
0x14b7   :  { %v5823_v12 = vpop.eup %5822  ;;  %3465 = vadd.xlane.f32.xlu1 %v3464_v0 }
0x14b8   :  { %5072 = vmatmul.mubr.msk.f32.gmra.mrb[70].mxu1 %vm926_vm8, %v5823_v12 }
0x1543   :  { %v3469_v37 = vpop.xlane.xlu0 %3468 }
0x1544   :  { %v3466_v14 = vpop.xlane.xlu1 %3465  ;;  %v3483_v24 = vmul.f32 0.03125, %v3469_v37 }
0x1545   :  { %v3482_v4 = vmul.f32 0.03125, %v3466_v14 }
0x1546   :  { %v7341_v48 = vsub.f32 %v7317_v31, %v3483_v24  ;;  %v4184_v24 = vld [vmem:[%s7512_s16 + $0x40] sm:$0xff] }
0x1547   :  { %v3488_v52 = vsub.f32 %v7319_v62, %v3482_v4 }
0x1548   :  { %v3495_v60 = vmul.f32 %v7341_v48, %v7341_v48 }
0x1549   :  { %v3494_v9 = vmul.f32 %v3488_v52, %v3488_v52 }
0x154a   :  { %v3503_v49 = vsel %vm220_vm4, %v3495_v60, 0.0 }
0x1583   :  { %v3305_v39 = vpop.f32.mrb[66].mxu1 }
0x1584   :  { %v3319_v35 = vmul.f32 %v3305_v39, %v3133_v55  ;;  %v5067_v51 = vpop.f32.mrb[67].mxu1  ;;  %v5463_v55 = vpack.c.bf16 %v4175_v1, %v4174_v57 }
0x1586   :  { %5086 = vmatmul.mubr.msk.f32.gmra.mrb[60].mxu0 %vm220_vm4, %v3319_v35  ;;  %5464 = vmatprep.subr.bf16.mxu1 %v5463_v55 }
0x1587   :  { %v3310_v21 = vpop.f32.mrb[68].mxu1  ;;  %5466 = vmatpush3.bf16.msra.mxu1 %v5463_v55 }
0x1588   :  { %v3320_v25 = vmul.f32 %v3310_v21, %v3138_v43  ;;  %v5070_v11 = vpop.f32.mrb[69].mxu1 }
0x158a   :  { %5088 = vmatprep.mubr.msk.f32.mxu0 %vm220_vm4, %v3320_v25 }
0x158b   :  { %v3315_v28 = vpop.f32.mrb[70].mxu1 }
0x158c   :  { %v3321_v3 = vmul.f32 %v3315_v28, %v3143_v16  ;;  %v5073_v53 = vpop.f32.mrb[71].mxu1  ;;  %v4170_v28 = vld [vmem:[%s7510_s12 + $0x1] ss:$0 sm:$0xff] }
0x158e   :  { %5089 = vmatmul.mubr.msk.f32.gmra.mrb[62].mxu0 %vm220_vm4, %v3321_v3 }
0x1659   :  { %v5087_v30 = vpop.f32.mrb[60].mxu0 }
0x165a   :  { %v3443_v54 = vadd.f32 %v5087_v30, %v6887_v59  ;;  %v3421_v27 = vpop.f32.mrb[61].mxu0 }
0x165b   :  { %v3442_v22 = vadd.f32 %v3421_v27, %v6890_v50 }
0x165c   :  { %v7334_v36 = vadd.f32 %v4167_v47, %v3443_v54  ;;  %v4171_v54 = vld [vmem:[%s7511_s13 + $0x1] ss:$0 sm:$0xff] }
0x165d   :  { %v7336_v45 = vadd.f32 %v4167_v47, %v3442_v22 }
0x165e   :  { %v3473_v23 = vsel %vm220_vm4, %v7334_v36, 0.0 }
0x165f   :  { %3474 = vadd.xlane.f32.xlu1 %v3473_v23  ;;  %v3470_v50 = vsel %vm220_vm4, %v7336_v45, 0.0  ;;  %v4185_v23 = vld [vmem:[%s7512_s16 + $0x48] sm:$0xff] }
0x1660   :  { %v5467_v4 = vpack.c.bf16 %v4185_v23, %v4184_v24 }
0x1661   :  { %v5090_v58 = vpop.f32.mrb[62].mxu0 }
0x1662   :  { %v3445_v59 = vadd.f32 %v5090_v58, %v6920_v20  ;;  %v3431_v46 = vpop.f32.mrb[63].mxu0  ;;  %5468 = vmatprep.subr.bf16.mxu0 %v5467_v4  ;;  %v4186_v58 = vld [vmem:[%s7512_s16 + $0x50] sm:$0xff] }
0x1663   :  { %v3444_v63 = vadd.f32 %v3431_v46, %v6923_v41  ;;  %3471 = vadd.xlane.f32.xlu1 %v3470_v50  ;;  %v3500_v41 = vsel %vm220_vm4, %v3494_v9, 0.0  ;;  %5470 = vmatpush3.bf16.msra.mxu0 %v5467_v4  ;;  %v4188_v46 = vld [vmem:[%s7512_s16 + $0x60] sm:$0xff]  ;;  %v4189_v50 = vld [vmem:[%s7512_s16 + $0x68] sm:$0xff] }
0x1664   :  { %v7348_v17 = vadd.f32 %v4167_v47, %v3445_v59 }
0x1665   :  { %v7350_v5 = vadd.f32 %v4167_v47, %v3444_v63  ;;  %v4190_v63 = vld [vmem:[%s7512_s16 + $0x70] sm:$0xff] }
0x1666   :  { %v3479_v6 = vsel %vm220_vm4, %v7348_v17, 0.0 }
0x1667   :  { %3480 = vadd.xlane.f32.xlu0 %v3479_v6  ;;  %v3476_v20 = vsel %vm220_vm4, %v7350_v5, 0.0  ;;  %v4191_v6 = vld [vmem:[%s7512_s16 + $0x78] sm:$0xff] }
0x1668   :  { %3477 = vadd.xlane.f32.xlu1 %v3476_v20  ;;  %v5479_v60 = vpack.c.bf16 %v4191_v6, %v4190_v63 }
0x166b   :  { %3504 = vadd.xlane.f32.xlu0 %v3503_v49 }
0x166c   :  { %3501 = vadd.xlane.f32.xlu1 %v3500_v41 }
0x16ec   :  { %v3475_v10 = vpop.xlane.xlu1 %3474 }
0x16ed   :  { %v3485_v43 = vmul.f32 0.03125, %v3475_v10 }
0x16ef   :  { %v7373_v44 = vsub.f32 %v7334_v36, %v3485_v43 }
0x16f0   :  { %v3472_v16 = vpop.xlane.xlu1 %3471 }
0x16f1   :  { %v3484_v32 = vmul.f32 0.03125, %v3472_v16  ;;  %v3497_v19 = vmul.f32 %v7373_v44, %v7373_v44 }
0x16f3   :  { %v7378_v34 = vsub.f32 %v7336_v45, %v3484_v32  ;;  %v3509_v38 = vsel %vm220_vm4, %v3497_v19, 0.0 }
0x16f4   :  { %3510 = vadd.xlane.f32.xlu0 %v3509_v38  ;;  %v3481_v56 = vpop.xlane.xlu0 %3480 }
0x16f5   :  { %v3487_v18 = vmul.f32 0.03125, %v3481_v56  ;;  %v3478_v13 = vpop.xlane.xlu1 %3477  ;;  %v3496_v15 = vmul.f32 %v7378_v34, %v7378_v34 }
0x16f6   :  { %v3486_v26 = vmul.f32 0.03125, %v3478_v13 }
0x16f7   :  { %v7384_v47 = vsub.f32 %v7348_v17, %v3487_v18  ;;  %v3506_v29 = vsel %vm220_vm4, %v3496_v15, 0.0 }
0x16f8   :  { %v7388_v7 = vsub.f32 %v7350_v5, %v3486_v26  ;;  %v3505_v2 = vpop.xlane.xlu0 %3504  ;;  %3507 = vadd.xlane.f32.xlu1 %v3506_v29 }
0x16f9   :  { %v3519_v33 = vmul.f32 0.03125, %v3505_v2  ;;  %v3502_v8 = vpop.xlane.xlu1 %3501  ;;  %v3499_v0 = vmul.f32 %v7384_v47, %v7384_v47 }
0x16fa   :  { %v3518_v12 = vmul.f32 0.03125, %v3502_v8  ;;  %v3498_v39 = vmul.f32 %v7388_v7, %v7388_v7 }
0x16fb   :  { %v3525_v35 = vadd.f32 1e-06, %v3519_v33  ;;  %v3515_v51 = vsel %vm220_vm4, %v3499_v0, 0.0 }
0x16fc   :  { %v3524_v21 = vadd.f32 1e-06, %v3518_v12  ;;  %3516 = vadd.xlane.f32.xlu0 %v3515_v51  ;;  %v3512_v25 = vsel %vm220_vm4, %v3498_v39, 0.0 }
0x16fd   :  { %5824 = vrsqrt.f32 %v3525_v35  ;;  %3513 = vadd.xlane.f32.xlu1 %v3512_v25 }
0x16fe   :  { %5826 = vrsqrt.f32 %v3524_v21 }
0x1707   :  { %v5825_v11 = vpop.eup %5824 }
0x1708   :  { %v5827_v3 = vpop.eup %5826  ;;  %v3537_v53 = vmul.f32 %v5825_v11, %v7341_v48  ;;  %v4187_v48 = vld [vmem:[%s7512_s16 + $0x58] sm:$0xff] }
0x1709   :  { %v3536_v30 = vmul.f32 %v5827_v3, %v3488_v52  ;;  %v5471_v59 = vpack.c.bf16 %v4187_v48, %v4186_v58  ;;  %v5475_v52 = vpack.c.bf16 %v4189_v50, %v4188_v46 }
0x170a   :  { %v3549_v27 = vmul.f32 %v4170_v28, %v3537_v53 }
0x170b   :  { %v3548_v37 = vmul.f32 %v4170_v28, %v3536_v30  ;;  %5472 = vmatprep.subr.bf16.mxu0 %v5471_v59 }
0x170c   :  { %v3561_v14 = vadd.f32 %v4171_v54, %v3549_v27  ;;  %5474 = vmatpush3.bf16.msra.mxu0 %v5471_v59 }
0x170d   :  { %v3560_v22 = vadd.f32 %v4171_v54, %v3548_v37  ;;  %5476 = vmatprep.subr.bf16.mxu0 %v5475_v52 }
0x170f   :  { %5099 = vmatprep.mubr.msk.f32.mxu1 %vm220_vm4, %v3560_v22 }
0x1710   :  { %5100 = vmatmul.mubr.msk.f32.vlgmr.msra.gmra.mrb[72].mxu1 %vm220_vm4, %v3561_v14  ;;  %5478 = vmatpush3.bf16.msra.mxu0 %v5475_v52 }
0x1711   :  { %5480 = vmatprep.subr.bf16.mxu0 %v5479_v60 }
0x1714   :  { %5482 = vmatpush3.bf16.msra.mxu0 %v5479_v60 }
0x1781   :  { %v3511_v20 = vpop.xlane.xlu0 %3510 }
0x1782   :  { %v3521_v9 = vmul.f32 0.03125, %v3511_v20 }
0x1784   :  { %v3527_v49 = vadd.f32 1e-06, %v3521_v9 }
0x1785   :  { %v3508_v41 = vpop.xlane.xlu1 %3507 }
0x1786   :  { %5828 = vrsqrt.f32 %v3527_v49  ;;  %v3520_v61 = vmul.f32 0.03125, %v3508_v41 }
0x1788   :  { %v3526_v42 = vadd.f32 1e-06, %v3520_v61 }
0x1789   :  { %v3517_v40 = vpop.xlane.xlu0 %3516 }
0x178a   :  { %5830 = vrsqrt.f32 %v3526_v42  ;;  %v3523_v57 = vmul.f32 0.03125, %v3517_v40  ;;  %v3514_v1 = vpop.xlane.xlu1 %3513 }
0x178b   :  { %v3522_v55 = vmul.f32 0.03125, %v3514_v1 }
0x178c   :  { %v3529_v10 = vadd.f32 1e-06, %v3523_v57 }
0x178d   :  { %v3528_v43 = vadd.f32 1e-06, %v3522_v55 }
0x178e   :  { %5832 = vrsqrt.f32 %v3529_v10 }
0x178f   :  { %5834 = vrsqrt.f32 %v3528_v43 }
0x1790   :  { %v5829_v16 = vpop.eup %5828 }
0x1791   :  { %v3539_v32 = vmul.f32 %v5829_v16, %v7373_v44 }
0x1793   :  { %v3551_v56 = vmul.f32 %v4170_v28, %v3539_v32 }
0x1794   :  { %v5831_v19 = vpop.eup %5830 }
0x1795   :  { %v3538_v38 = vmul.f32 %v5831_v19, %v7378_v34  ;;  %v3563_v2 = vadd.f32 %v4171_v54, %v3551_v56  ;;  %v4177_v34 = vld [vmem:[%s7513_s15 + $0x1] ss:$0 sm:$0xff] }
0x1797   :  { %v3550_v18 = vmul.f32 %v4170_v28, %v3538_v38 }
0x1798   :  { %v5833_v13 = vpop.eup %5832 }
0x1799   :  { %v5835_v15 = vpop.eup %5834  ;;  %v3562_v26 = vadd.f32 %v4171_v54, %v3550_v18  ;;  %v3541_v29 = vmul.f32 %v5833_v13, %v7384_v47 }
0x179a   :  { %v3540_v33 = vmul.f32 %v5835_v15, %v7388_v7 }
0x179b   :  { %5102 = vmatprep.mubr.msk.f32.mxu1 %vm220_vm4, %v3562_v26  ;;  %v3553_v8 = vmul.f32 %v4170_v28, %v3541_v29 }
0x179c   :  { %5103 = vmatmul.mubr.msk.f32.gmra.mrb[74].mxu1 %vm220_vm4, %v3563_v2  ;;  %v3552_v0 = vmul.f32 %v4170_v28, %v3540_v33 }
0x179d   :  { %v3565_v12 = vadd.f32 %v4171_v54, %v3553_v8 }
0x179e   :  { %v3564_v44 = vadd.f32 %v4171_v54, %v3552_v0 }
0x17a0   :  { %5105 = vmatprep.mubr.msk.f32.mxu1 %vm220_vm4, %v3564_v44 }
0x17a1   :  { %5106 = vmatmul.mubr.msk.f32.gmra.mrb[76].mxu1 %vm220_vm4, %v3565_v12 }
0x17e3   :  { %v5101_v47 = vpop.f32.mrb[72].mxu1 }
0x17e4   :  { %v3669_v39 = vadd.f32 %v5101_v47, %v4177_v34  ;;  %v3663_v35 = vpop.f32.mrb[73].mxu1 }
0x17e5   :  { %v3664_v7 = vadd.f32 %v4177_v34, %v3663_v35 }
0x17e6   :  { %v3693_v51 = vmul.f32 %v3669_v39, %v3669_v39 }
0x17e7   :  { %v3692_v21 = vmul.f32 %v3664_v7, %v3664_v7 }
0x17e8   :  { %v3699_v25 = vmul.f32 %v3693_v51, %v3669_v39 }
0x17e9   :  { %v3698_v11 = vmul.f32 %v3692_v21, %v3664_v7 }
0x17ea   :  { %v3705_v3 = vmul.f32 0.044715, %v3699_v25 }
0x17eb   :  { %v3704_v28 = vmul.f32 0.044715, %v3698_v11 }
0x17ec   :  { %v3711_v53 = vadd.f32 %v3705_v3, %v3669_v39 }
0x17ed   :  { %v3710_v30 = vadd.f32 %v3704_v28, %v3664_v7  ;;  %v4199_v28 = vld [vmem:[%s7514_s17 + $0x1] ss:$0 sm:$0xff] }
0x17ee   :  { %v3717_v54 = vmul.f32 0.7978846, %v3711_v53 }
0x17ef   :  { %v3716_v27 = vmul.f32 0.7978846, %v3710_v30 }
0x17f0   :  { %5836 = vtanh.f32 %v3717_v54 }
0x17f1   :  { %5838 = vtanh.f32 %v3716_v27 }
0x17fa   :  { %v5837_v37 = vpop.eup %5836 }
0x17fb   :  { %v5839_v22 = vpop.eup %5838  ;;  %v3729_v14 = vadd.f32 1.0, %v5837_v37 }
0x17fc   :  { %v3728_v24 = vadd.f32 1.0, %v5839_v22 }
0x17fd   :  { %v3735_v23 = vmul.f32 0.5, %v3729_v14 }
0x17fe   :  { %v3734_v4 = vmul.f32 0.5, %v3728_v24 }
0x17ff   :  { %v3741_v48 = vmul.f32 %v3735_v23, %v3669_v39 }
0x1800   :  { %v3740_v58 = vmul.f32 %v3734_v4, %v3664_v7 }
0x1802   :  { %5124 = vmatprep.mubr.msk.f32.mxu0 %vm1951_vm9, %v3740_v58 }
0x1803   :  { %5125 = vmatmul.mubr.msk.f32.vlgmr.msra.gmra.mrb[64].mxu0 %vm1951_vm9, %v3741_v48 }
0x186f   :  { %v5104_v59 = vpop.f32.mrb[74].mxu1 }
0x1870   :  { %v3679_v46 = vadd.f32 %v5104_v59, %v4177_v34  ;;  %v3673_v50 = vpop.f32.mrb[75].mxu1 }
0x1871   :  { %v3674_v52 = vadd.f32 %v4177_v34, %v3673_v50 }
0x1872   :  { %v3695_v63 = vmul.f32 %v3679_v46, %v3679_v46 }
0x1873   :  { %v3694_v6 = vmul.f32 %v3674_v52, %v3674_v52 }
0x1874   :  { %v3701_v60 = vmul.f32 %v3695_v63, %v3679_v46  ;;  %v5107_v20 = vpop.f32.mrb[76].mxu1 }
0x1875   :  { %v3700_v9 = vmul.f32 %v3694_v6, %v3674_v52  ;;  %v3689_v49 = vadd.f32 %v5107_v20, %v4177_v34  ;;  %v3683_v41 = vpop.f32.mrb[77].mxu1 }
0x1876   :  { %v3707_v61 = vmul.f32 0.044715, %v3701_v60  ;;  %v3684_v42 = vadd.f32 %v4177_v34, %v3683_v41 }
0x1877   :  { %v3706_v40 = vmul.f32 0.044715, %v3700_v9  ;;  %v3697_v57 = vmul.f32 %v3689_v49, %v3689_v49 }
0x1878   :  { %v3713_v1 = vadd.f32 %v3707_v61, %v3679_v46  ;;  %v3696_v55 = vmul.f32 %v3684_v42, %v3684_v42 }
0x1879   :  { %v3712_v10 = vadd.f32 %v3706_v40, %v3674_v52  ;;  %v3703_v43 = vmul.f32 %v3697_v57, %v3689_v49 }
0x187a   :  { %v3719_v16 = vmul.f32 0.7978846, %v3713_v1  ;;  %v3702_v32 = vmul.f32 %v3696_v55, %v3684_v42 }
0x187b   :  { %v3718_v19 = vmul.f32 0.7978846, %v3712_v10  ;;  %v3709_v38 = vmul.f32 0.044715, %v3703_v43 }
0x187c   :  { %5840 = vtanh.f32 %v3719_v16  ;;  %v3708_v56 = vmul.f32 0.044715, %v3702_v32 }
0x187d   :  { %5842 = vtanh.f32 %v3718_v19  ;;  %v3715_v18 = vadd.f32 %v3709_v38, %v3689_v49 }
0x187e   :  { %v3714_v13 = vadd.f32 %v3708_v56, %v3684_v42 }
0x187f   :  { %v3721_v15 = vmul.f32 0.7978846, %v3715_v18 }
0x1880   :  { %v3720_v26 = vmul.f32 0.7978846, %v3714_v13 }
0x1881   :  { %5844 = vtanh.f32 %v3721_v15 }
0x1882   :  { %5846 = vtanh.f32 %v3720_v26 }
0x1886   :  { %v5841_v29 = vpop.eup %5840 }
0x1887   :  { %v5843_v2 = vpop.eup %5842  ;;  %v3731_v33 = vadd.f32 1.0, %v5841_v29 }
0x1888   :  { %v3730_v8 = vadd.f32 1.0, %v5843_v2 }
0x1889   :  { %v3737_v0 = vmul.f32 0.5, %v3731_v33 }
0x188a   :  { %v3736_v44 = vmul.f32 0.5, %v3730_v8 }
0x188b   :  { %v5845_v12 = vpop.eup %5844  ;;  %v3743_v35 = vmul.f32 %v3737_v0, %v3679_v46 }
0x188c   :  { %v5847_v34 = vpop.eup %5846  ;;  %v3742_v47 = vmul.f32 %v3736_v44, %v3674_v52  ;;  %v3733_v39 = vadd.f32 1.0, %v5845_v12 }
0x188d   :  { %v3732_v7 = vadd.f32 1.0, %v5847_v34 }
0x188e   :  { %5127 = vmatprep.mubr.msk.f32.mxu0 %vm1951_vm9, %v3742_v47  ;;  %v3739_v51 = vmul.f32 0.5, %v3733_v39 }
0x188f   :  { %5128 = vmatmul.mubr.msk.f32.gmra.mrb[66].mxu0 %vm1951_vm9, %v3743_v35  ;;  %v3738_v21 = vmul.f32 0.5, %v3732_v7 }
0x1890   :  { %v3745_v11 = vmul.f32 %v3739_v51, %v3689_v49 }
0x1891   :  { %v3744_v25 = vmul.f32 %v3738_v21, %v3684_v42 }
0x1893   :  { %5130 = vmatprep.mubr.msk.f32.mxu0 %vm1951_vm9, %v3744_v25  ;;  %v4200_v25 = vld [vmem:[%s7515_s18] ss:$0 sm:$0xff] }
0x1894   :  { %5131 = vmatmul.mubr.msk.f32.gmra.mrb[68].mxu0 %vm1951_vm9, %v3745_v11 }
0x18d6   :  { %v5126_v3 = vpop.f32.mrb[64].mxu0 }
0x18d7   :  { %v3869_v53 = vadd.f32 %v5126_v3, %v7317_v31  ;;  %v3839_v30 = vpop.f32.mrb[65].mxu0 }
0x18d8   :  { %v3868_v54 = vadd.f32 %v3839_v30, %v7319_v62 }
0x18d9   :  { %v3883_v27 = vadd.f32 %v4199_v28, %v3869_v53 }
0x18da   :  { %v3882_v37 = vadd.f32 %v4199_v28, %v3868_v54 }
0x18db   :  { %v3893_v22 = vsel %vm220_vm4, %v3883_v27, 0.0 }
0x18dc   :  { %3894 = vadd.xlane.f32.xlu0 %v3893_v22  ;;  %v3890_v14 = vsel %vm220_vm4, %v3882_v37, 0.0 }
0x18dd   :  { %3891 = vadd.xlane.f32.xlu1 %v3890_v14 }
0x1962   :  { %v5129_v24 = vpop.f32.mrb[66].mxu0 }
0x1963   :  { %v3871_v23 = vadd.f32 %v5129_v24, %v7334_v36  ;;  %v3849_v4 = vpop.f32.mrb[67].mxu0 }
0x1964   :  { %v3870_v58 = vadd.f32 %v3849_v4, %v7336_v45 }
0x1965   :  { %v3885_v48 = vadd.f32 %v4199_v28, %v3871_v23 }
0x1966   :  { %v3884_v59 = vadd.f32 %v4199_v28, %v3870_v58 }
0x1967   :  { %v5132_v31 = vpop.f32.mrb[68].mxu0  ;;  %v3899_v46 = vsel %vm220_vm4, %v3885_v48, 0.0 }
0x1968   :  { %v3873_v62 = vadd.f32 %v5132_v31, %v7348_v17  ;;  %3900 = vadd.xlane.f32.xlu0 %v3899_v46  ;;  %v3859_v50 = vpop.f32.mrb[69].mxu0  ;;  %v3896_v52 = vsel %vm220_vm4, %v3884_v59, 0.0 }
0x1969   :  { %v3872_v63 = vadd.f32 %v3859_v50, %v7350_v5  ;;  %v3895_v6 = vpop.xlane.xlu0 %3894  ;;  %3897 = vadd.xlane.f32.xlu1 %v3896_v52 }
0x196a   :  { %v3887_v60 = vadd.f32 %v4199_v28, %v3873_v62  ;;  %v3909_v36 = vmul.f32 0.03125, %v3895_v6  ;;  %v3892_v20 = vpop.xlane.xlu1 %3891 }
0x196b   :  { %v3886_v9 = vadd.f32 %v4199_v28, %v3872_v63  ;;  %v3908_v45 = vmul.f32 0.03125, %v3892_v20  ;;  %v4201_v28 = vld [vmem:[%s7516_s19] ss:$0 sm:$0xff] }
0x196c   :  { %v3915_v49 = vsub.f32 %v3883_v27, %v3909_v36  ;;  %v3905_v41 = vsel %vm220_vm4, %v3887_v60, 0.0 }
0x196d   :  { %v3914_v61 = vsub.f32 %v3882_v37, %v3908_v45  ;;  %3906 = vadd.xlane.f32.xlu0 %v3905_v41  ;;  %v3902_v17 = vsel %vm220_vm4, %v3886_v9, 0.0 }
0x196e   :  { %3903 = vadd.xlane.f32.xlu1 %v3902_v17  ;;  %v3921_v42 = vmul.f32 %v3915_v49, %v3915_v49 }
0x196f   :  { %v3920_v40 = vmul.f32 %v3914_v61, %v3914_v61 }
0x1970   :  { %v3929_v57 = vsel %vm220_vm4, %v3921_v42, 0.0 }
0x1971   :  { %3930 = vadd.xlane.f32.xlu0 %v3929_v57  ;;  %v3926_v5 = vsel %vm220_vm4, %v3920_v40, 0.0 }
0x1972   :  { %3927 = vadd.xlane.f32.xlu1 %v3926_v5 }
0x19f5   :  { %v3901_v1 = vpop.xlane.xlu0 %3900 }
0x19f6   :  { %v3911_v55 = vmul.f32 0.03125, %v3901_v1  ;;  %v3898_v10 = vpop.xlane.xlu1 %3897 }
0x19f7   :  { %v3910_v43 = vmul.f32 0.03125, %v3898_v10 }
0x19f8   :  { %v3917_v16 = vsub.f32 %v3885_v48, %v3911_v55 }
0x19f9   :  { %v3916_v32 = vsub.f32 %v3884_v59, %v3910_v43 }
0x19fa   :  { %v3907_v19 = vpop.xlane.xlu0 %3906  ;;  %v3923_v38 = vmul.f32 %v3917_v16, %v3917_v16 }
0x19fb   :  { %v3913_v56 = vmul.f32 0.03125, %v3907_v19  ;;  %v3904_v18 = vpop.xlane.xlu1 %3903  ;;  %v3922_v13 = vmul.f32 %v3916_v32, %v3916_v32 }
0x19fc   :  { %v3912_v15 = vmul.f32 0.03125, %v3904_v18  ;;  %v3935_v26 = vsel %vm220_vm4, %v3923_v38, 0.0 }
0x19fd   :  { %v3919_v29 = vsub.f32 %v3887_v60, %v3913_v56  ;;  %3936 = vadd.xlane.f32.xlu0 %v3935_v26  ;;  %v3932_v2 = vsel %vm220_vm4, %v3922_v13, 0.0 }
0x19fe   :  { %v3918_v33 = vsub.f32 %v3886_v9, %v3912_v15  ;;  %v3931_v8 = vpop.xlane.xlu0 %3930  ;;  %3933 = vadd.xlane.f32.xlu1 %v3932_v2 }
0x19ff   :  { %v3945_v0 = vmul.f32 0.03125, %v3931_v8  ;;  %v3928_v44 = vpop.xlane.xlu1 %3927  ;;  %v3925_v12 = vmul.f32 %v3919_v29, %v3919_v29 }
0x1a00   :  { %v3944_v34 = vmul.f32 0.03125, %v3928_v44  ;;  %v3924_v47 = vmul.f32 %v3918_v33, %v3918_v33 }
0x1a01   :  { %v3951_v39 = vadd.f32 1e-06, %v3945_v0  ;;  %v3941_v35 = vsel %vm220_vm4, %v3925_v12, 0.0 }
0x1a02   :  { %v3950_v7 = vadd.f32 1e-06, %v3944_v34  ;;  %3942 = vadd.xlane.f32.xlu0 %v3941_v35  ;;  %v3938_v51 = vsel %vm220_vm4, %v3924_v47, 0.0 }
0x1a03   :  { %5848 = vrsqrt.f32 %v3951_v39  ;;  %3939 = vadd.xlane.f32.xlu1 %v3938_v51 }
0x1a04   :  { %5850 = vrsqrt.f32 %v3950_v7 }
0x1a0d   :  { %v5849_v21 = vpop.eup %5848 }
0x1a0e   :  { %v5851_v11 = vpop.eup %5850  ;;  %v3963_v3 = vmul.f32 %v5849_v21, %v3915_v49 }
0x1a0f   :  { %v3962_v53 = vmul.f32 %v5851_v11, %v3914_v61 }
0x1a10   :  { %v3975_v30 = vmul.f32 %v4200_v25, %v3963_v3 }
0x1a11   :  { %v3974_v54 = vmul.f32 %v4200_v25, %v3962_v53 }
0x1a12   :  { %v3987_v27 = vadd.f32 %v4201_v28, %v3975_v30 }
0x1a13   :  { %v3986_v37 = vadd.f32 %v4201_v28, %v3974_v54 }
0x1a14   :  { %3993 = vst.msk [vmem:[%s7517_s20 + $0x8] sm:$0xff] %vm220_vm4, %v3987_v27 }
0x1a15   :  { %3992 = vst.msk [vmem:[%s7517_s20] sm:$0xff] %vm220_vm4, %v3986_v37 }
0x1a8a   :  { %v3937_v22 = vpop.xlane.xlu0 %3936 }
0x1a8b   :  { %v3947_v14 = vmul.f32 0.03125, %v3937_v22  ;;  %v3934_v24 = vpop.xlane.xlu1 %3933 }
0x1a8c   :  { %v3946_v23 = vmul.f32 0.03125, %v3934_v24 }
0x1a8d   :  { %v3953_v4 = vadd.f32 1e-06, %v3947_v14 }
0x1a8e   :  { %v3952_v58 = vadd.f32 1e-06, %v3946_v23 }
0x1a8f   :  { %5852 = vrsqrt.f32 %v3953_v4  ;;  %v3943_v48 = vpop.xlane.xlu0 %3942 }
0x1a90   :  { %5854 = vrsqrt.f32 %v3952_v58  ;;  %v3949_v59 = vmul.f32 0.03125, %v3943_v48  ;;  %v3940_v31 = vpop.xlane.xlu1 %3939 }
0x1a91   :  { %v3948_v46 = vmul.f32 0.03125, %v3940_v31 }
0x1a92   :  { %v3955_v62 = vadd.f32 1e-06, %v3949_v59 }
0x1a93   :  { %v3954_v50 = vadd.f32 1e-06, %v3948_v46 }
0x1a94   :  { %5856 = vrsqrt.f32 %v3955_v62 }
0x1a95   :  { %5858 = vrsqrt.f32 %v3954_v50 }
0x1a99   :  { %v5853_v52 = vpop.eup %5852 }
0x1a9a   :  { %v5855_v63 = vpop.eup %5854  ;;  %v3965_v6 = vmul.f32 %v5853_v52, %v3917_v16 }
0x1a9b   :  { %v3964_v60 = vmul.f32 %v5855_v63, %v3916_v32 }
0x1a9c   :  { %v3977_v36 = vmul.f32 %v4200_v25, %v3965_v6 }
0x1a9d   :  { %v3976_v20 = vmul.f32 %v4200_v25, %v3964_v60 }
0x1a9e   :  { %v5857_v9 = vpop.eup %5856  ;;  %v3989_v45 = vadd.f32 %v4201_v28, %v3977_v36 }
0x1a9f   :  { %v5859_v49 = vpop.eup %5858  ;;  %v3988_v41 = vadd.f32 %v4201_v28, %v3976_v20  ;;  %v3967_v61 = vmul.f32 %v5857_v9, %v3919_v29 }
0x1aa0   :  { %4202 = vst.msk [vmem:[%s7517_s20 + $0x18] sm:$0xff] %vm220_vm4, %v3989_v45  ;;  %v3966_v17 = vmul.f32 %v5859_v49, %v3918_v33 }
0x1aa1   :  { %3994 = vst.msk [vmem:[%s7517_s20 + $0x10] sm:$0xff] %vm220_vm4, %v3988_v41  ;;  %v3979_v42 = vmul.f32 %v4200_v25, %v3967_v61 }
0x1aa2   :  { %v3978_v40 = vmul.f32 %v4200_v25, %v3966_v17 }
0x1aa3   :  { %v3991_v57 = vadd.f32 %v4201_v28, %v3979_v42 }
0x1aa4   :  { %v3990_v5 = vadd.f32 %v4201_v28, %v3978_v40 }
0x1aa5   :  { %4204 = vst.msk [vmem:[%s7517_s20 + $0x28] sm:$0xff] %vm220_vm4, %v3991_v57 }
0x1aa6   :  { %4203 = vst.msk [vmem:[%s7517_s20 + $0x20] sm:$0xff] %vm220_vm4, %v3990_v5 }

</bundles_post_ra>
